<compile_context>
chip_gen: v6e
topology: v6e:2x2x1
jax: 0.10.0
libtpu: 0.0.40
codegen_flags: <defaults>
</compile_context>

<pallas_src>
import functools
import math

import jax
import jax.numpy as jnp
from jax import lax
from jax.experimental import pallas as pl
from jax.experimental.pallas import tpu as pltpu

# ------------------------- configuration (small) -------------------------
SEG_LEN = 8
D_MODEL = 32
K_DIM = 32
D_FF = 64
REUSE_SEG_NUM = 2
FIRST_LAYER_NUM = 2    # 'right' encoder
SECOND_LAYER_NUM = 2   # 'reverse' encoder
VOCAB = 16
MEM_LEN = REUSE_SEG_NUM * SEG_LEN
KLEN = MEM_LEN + SEG_LEN          # memory + current segment
NUM_ENC = 2                       # forward ('right') + reverse encoder

# TODO(synk): batching the two encoders on one grid axis requires equal layer
# counts; true for this config (2 == 2).  Unequal counts would need two calls.
assert FIRST_LAYER_NUM == SECOND_LAYER_NUM
LAYERS = FIRST_LAYER_NUM

_SCALE = 1.0 / math.sqrt(K_DIM)
_LN_EPS = 1e-5

# --------------- packed weight slab layout (row offsets, 32 lanes) ----------
_OFF_WQ = 0
_OFF_WK = _OFF_WQ + D_MODEL          # 32
_OFF_WV = _OFF_WK + D_MODEL          # 64
_OFF_WO = _OFF_WV + D_MODEL          # 96
_OFF_W2 = _OFF_WO + K_DIM            # 128
_OFF_R = _OFF_W2 + D_FF              # 192
_OFF_VEC = _OFF_R + KLEN             # 216
_VEC_ROWS = 16                       # 11 used + 5 zero pad (keeps rows % 8 == 0)
_WMAT_ROWS = _OFF_VEC + _VEC_ROWS    # 232
# vector rows inside the vec block:
#   0 bq, 1 bk, 2 bv, 3 bo, 4 ln1g, 5 ln1b, 6 b2, 7 ln2g, 8 ln2b, 9 u, 10 v
_WFF_ROWS = 40                       # 32 rows w1 + 1 row b1 + 7 zero pad


# ------------------------------ Pallas kernel -----------------------------
def fused_encoder_kernel(states_ref, wmat_ref, wff_ref, out_ref, cat_ref, *,
                         n_seg):
    """One grid step = one full encoder: all segments x all layers, fused.

    states_ref: (n_seg*SEG_LEN, D_MODEL)  token embeddings for this encoder.
    wmat_ref:   (LAYERS, _WMAT_ROWS, D_MODEL) packed 32-lane weight slab.
    wff_ref:    (LAYERS, _WFF_ROWS, D_FF)    packed 64-lane FF slab (w1 | b1).
    cat_ref:    VMEM scratch (LAYERS, KLEN, D_MODEL). Rows [0:MEM_LEN] hold the
                XL memory (pre-layer states of the previous REUSE_SEG_NUM
                segments); rows [MEM_LEN:] are overwritten each segment with
                the current pre-layer state, so attention K/V input is just
                cat_ref[j] (no concatenate).
    """
    # Fresh memory at the start of this encoder's sweep.
    cat_ref[...] = jnp.zeros_like(cat_ref)

    dn = (((1,), (1,)), ((), ()))                  # contract feature dims

    # n_seg is static at trace time (it sets the block shape), so the segment
    # loop is fully unrolled; layers are unrolled too.
    # TODO(synk): for very long sequences switch this to pl.loop + pl.ds to
    # bound code size.
    for seg in range(n_seg):
        row = seg * SEG_LEN
        state = states_ref[row:row + SEG_LEN, :]   # (SEG_LEN, D_MODEL)

        # Mask: forbid attending to memory slots of not-yet-filled segments.
        if seg < REUSE_SEG_NUM:
            kpos = lax.broadcasted_iota(jnp.int32, (SEG_LEN, KLEN), 1)
            mask_bias = jnp.where(kpos < (REUSE_SEG_NUM - seg) * SEG_LEN,
                                  -1e9, 0.0).astype(jnp.float32)
        else:
            mask_bias = None

        for j in range(LAYERS):                    # static unroll
            # Record the current (pre-layer) state into the ring buffer.
            cat_ref[j, MEM_LEN:, :] = state
            cat = cat_ref[j]                       # (KLEN, D_MODEL)

            # Per-layer weights: aligned full-lane-width sublane slices.
            wq = wmat_ref[j, _OFF_WQ:_OFF_WQ + D_MODEL, :]
            wk = wmat_ref[j, _OFF_WK:_OFF_WK + D_MODEL, :]
            wv = wmat_ref[j, _OFF_WV:_OFF_WV + D_MODEL, :]
            wo = wmat_ref[j, _OFF_WO:_OFF_WO + K_DIM, :]
            w2 = wmat_ref[j, _OFF_W2:_OFF_W2 + D_FF, :]
            r = wmat_ref[j, _OFF_R:_OFF_R + KLEN, :]     # = flip(R) @ Wr_j
            vec = wmat_ref[j, _OFF_VEC:_OFF_VEC + _VEC_ROWS, :]
            bq, bk, bv, bo = vec[0:1, :], vec[1:2, :], vec[2:3, :], vec[3:4, :]
            ln1g, ln1b = vec[4:5, :], vec[5:6, :]
            b2, ln2g, ln2b = vec[6:7, :], vec[7:8, :], vec[8:9, :]
            u_vec, v_vec = vec[9:10, :], vec[10:11, :]
            w1 = wff_ref[j, 0:D_MODEL, :]
            b1 = wff_ref[j, D_MODEL:D_MODEL + 1, :]

            # Three separate projections: each result lands naturally in
            # lanes 0..K_DIM-1; q uses only the SEG_LEN current rows.
            q = jnp.dot(state, wq, preferred_element_type=jnp.float32) + bq
            k = jnp.dot(cat, wk, preferred_element_type=jnp.float32) + bk
            vv = jnp.dot(cat, wv, preferred_element_type=jnp.float32) + bv

            ac = lax.dot_general(q + u_vec, k, dn,
                                 preferred_element_type=jnp.float32)
            bd = lax.dot_general(q + v_vec, r, dn,
                                 preferred_element_type=jnp.float32)
            score = (ac + bd) * _SCALE             # (SEG_LEN, KLEN)
            if mask_bias is not None:
                score = score + mask_bias

            m = jnp.max(score, axis=-1, keepdims=True)
            p = jnp.exp(score - m)
            denom = jnp.sum(p, axis=-1, keepdims=True)
            attn = p * pl.reciprocal(denom, approx=True)

            attn_out = jnp.dot(attn, vv, preferred_element_type=jnp.float32)
            proj = jnp.dot(attn_out, wo,
                           preferred_element_type=jnp.float32) + bo

            # residual + LayerNorm 1
            x = state + proj
            mu = jnp.mean(x, axis=-1, keepdims=True)
            var = jnp.mean((x - mu) ** 2, axis=-1, keepdims=True)
            x = (x - mu) * lax.rsqrt(var + _LN_EPS) * ln1g + ln1b

            # feed-forward
            h = jnp.maximum(
                jnp.dot(x, w1, preferred_element_type=jnp.float32) + b1, 0.0)
            f = jnp.dot(h, w2, preferred_element_type=jnp.float32) + b2

            # residual + LayerNorm 2
            y = x + f
            mu2 = jnp.mean(y, axis=-1, keepdims=True)
            var2 = jnp.mean((y - mu2) ** 2, axis=-1, keepdims=True)
            state = (y - mu2) * lax.rsqrt(var2 + _LN_EPS) * ln2g + ln2b

            # Ring shift: next segment's memory = rows [SEG_LEN:] of cat
            # (old slots 1..R-1 followed by the just-recorded pre-layer state).
            cat_ref[j, 0:MEM_LEN, :] = cat[SEG_LEN:, :]

        out_ref[row:row + SEG_LEN, :] = state


# ------------------------- pallas_call wrapper -----------------------------
def run_fused_encoders(states, wmat, wff, n_seg):
    """states: (NUM_ENC, n_seg*SEG_LEN, D_MODEL); wmat/wff: packed weight slabs."""
    total = n_seg * SEG_LEN
    kernel = functools.partial(fused_encoder_kernel, n_seg=n_seg)
    grid_spec = pltpu.PrefetchScalarGridSpec(
        num_scalar_prefetch=0,
        grid=(NUM_ENC,),
        in_specs=[
            pl.BlockSpec((None, total, D_MODEL), lambda e: (e, 0, 0)),
            pl.BlockSpec((None, LAYERS, _WMAT_ROWS, D_MODEL),
                         lambda e: (e, 0, 0, 0)),
            pl.BlockSpec((None, LAYERS, _WFF_ROWS, D_FF),
                         lambda e: (e, 0, 0, 0)),
        ],
        out_specs=pl.BlockSpec((None, total, D_MODEL), lambda e: (e, 0, 0)),
        scratch_shapes=[pltpu.VMEM((LAYERS, KLEN, D_MODEL), jnp.float32)],
    )
    return pl.pallas_call(
        kernel,
        grid_spec=grid_spec,
        out_shape=jax.ShapeDtypeStruct((NUM_ENC, total, D_MODEL), jnp.float32),
        compiler_params=pltpu.CompilerParams(
            dimension_semantics=("parallel",)),
    )(states, wmat, wff)


# ------------------------------ plain-JAX glue -----------------------------
def sinusoid_pos_encode(length, dim):
    pos = jnp.arange(length, dtype=jnp.float32)[:, None]
    i = jnp.arange(dim, dtype=jnp.float32)[None, :]
    angle = pos / jnp.power(10000.0, (2.0 * jnp.floor(i / 2.0)) / dim)
    even = (jnp.arange(dim) % 2) == 0
    return jnp.where(even[None, :], jnp.sin(angle), jnp.cos(angle)).astype(jnp.float32)


def pack_encoder_params(enc, rel):
    """Pack one encoder's per-layer params into two stacked slabs."""
    L = len(enc['layers'])
    u, v = enc['u'], enc['v']
    wmat_layers, wff_layers = [], []
    for j in range(L):
        p = enc['layers'][j]
        r_j = rel @ p['wr']                                      # (KLEN, K_DIM)
        vec = jnp.concatenate(
            [p['bq'], p['bk'], p['bv'], p['bo'],
             p['ln1g'], p['ln1b'], p['b2'], p['ln2g'], p['ln2b'],
             u, v,
             jnp.zeros((_VEC_ROWS - 11, D_MODEL), jnp.float32)], axis=0)
        wmat_layers.append(jnp.concatenate(
            [p['wq'], p['wk'], p['wv'], p['wo'], p['w2'], r_j, vec], axis=0))
        wff_layers.append(jnp.concatenate(
            [p['w1'], p['b1'],
             jnp.zeros((_WFF_ROWS - D_MODEL - 1, D_FF), jnp.float32)], axis=0))
    return jnp.stack(wmat_layers, axis=0), jnp.stack(wff_layers, axis=0)


def pack_both_encoders(enc_right, enc_rev, R):
    rel = jnp.flip(R, axis=0)
    mr, fr = pack_encoder_params(enc_right, rel)
    mv, fv = pack_encoder_params(enc_rev, rel)
    return jnp.stack([mr, mv], axis=0), jnp.stack([fr, fv], axis=0)


@functools.partial(jax.jit, static_argnames=("pad_idx",))
def xl_encoder_forward(src, emb, wmat, wff, pad_idx):
    """Mirror of xl_Encoder.forward; returns (seq_len, 2*d_model)."""
    seq_len = src.shape[-1]
    rev_src = jnp.flip(src, axis=1)

    pad_n = (-seq_len) % SEG_LEN
    if pad_n:
        pad = jnp.full((1, pad_n), pad_idx, dtype=src.dtype)
        src_p = jnp.concatenate([src, pad], axis=-1)
        rev_p = jnp.concatenate([rev_src, pad], axis=-1)
    else:
        src_p, rev_p = src, rev_src
    n_seg = src_p.shape[-1] // SEG_LEN

    tokens = jnp.stack([src_p[0], rev_p[0]], axis=0)     # (2, n_seg*SEG_LEN)
    states = jnp.take(emb, tokens, axis=0)               # (2, total, D_MODEL)

    out = run_fused_encoders(states, wmat, wff, n_seg)   # (2, total, D_MODEL)
    out = out[:, :seq_len]

    result = out[0]
    reverse_result = jnp.flip(out[1], axis=0)
    return jnp.concatenate([result, reverse_result], axis=-1)


# ----------------------------- parameter init ------------------------------
def init_layer_params(key):
    ks = jax.random.split(key, 8)
    s = 0.05
    return {
        'wq': s * jax.random.normal(ks[0], (D_MODEL, K_DIM), jnp.float32),
        'bq': jnp.zeros((1, K_DIM), jnp.float32),
        'wk': s * jax.random.normal(ks[1], (D_MODEL, K_DIM), jnp.float32),
        'bk': jnp.zeros((1, K_DIM), jnp.float32),
        'wv': s * jax.random.normal(ks[2], (D_MODEL, K_DIM), jnp.float32),
        'bv': jnp.zeros((1, K_DIM), jnp.float32),
        'wr': s * jax.random.normal(ks[3], (K_DIM, K_DIM), jnp.float32),
        'wo': s * jax.random.normal(ks[4], (K_DIM, D_MODEL), jnp.float32),
        'bo': jnp.zeros((1, D_MODEL), jnp.float32),
        'ln1g': jnp.ones((1, D_MODEL), jnp.float32),
        'ln1b': jnp.zeros((1, D_MODEL), jnp.float32),
        'w1': s * jax.random.normal(ks[5], (D_MODEL, D_FF), jnp.float32),
        'b1': jnp.zeros((1, D_FF), jnp.float32),
        'w2': s * jax.random.normal(ks[6], (D_FF, D_MODEL), jnp.float32),
        'b2': jnp.zeros((1, D_MODEL), jnp.float32),
        'ln2g': jnp.ones((1, D_MODEL), jnp.float32),
        'ln2b': jnp.zeros((1, D_MODEL), jnp.float32),
    }


def init_encoder_params(key, layer_num):
    k_layer, k_u, k_v = jax.random.split(key, 3)
    layer = init_layer_params(k_layer)
    # get_clones uses copy.deepcopy -> every layer starts with identical weights
    return {
        'layers': [layer] * layer_num,
        'u': jax.random.normal(k_u, (1, K_DIM), jnp.float32),
        'v': jax.random.normal(k_v, (1, K_DIM), jnp.float32),
    }


# ---------------------------------- main -----------------------------------
if __name__ == "__main__":
    root = jax.random.PRNGKey(0)
    k_emb, k_src, k_right, k_rev = jax.random.split(root, 4)

    embedding_matrix = 0.1 * jax.random.normal(k_emb, (VOCAB, D_MODEL), jnp.float32)
    R = sinusoid_pos_encode(KLEN, K_DIM)

    enc_right = init_encoder_params(k_right, FIRST_LAYER_NUM)
    enc_rev = init_encoder_params(k_rev, SECOND_LAYER_NUM)
    wmat, wff = pack_both_encoders(enc_right, enc_rev, R)

    seq_len = 20          # not a multiple of SEG_LEN -> exercises the pad branch
    pad_idx = 0
    src = jax.random.randint(k_src, (1, seq_len), 0, VOCAB, dtype=jnp.int32)

    out = xl_encoder_forward(src, embedding_matrix, wmat, wff, pad_idx)
    out = jax.block_until_ready(out)

    assert out.shape == (seq_len, 2 * D_MODEL), out.shape
    assert bool(jnp.all(jnp.isfinite(out)))
    print("KERNEL_OK")
</pallas_src>

<mosaic_0001>
module attributes {stable_mosaic.version = 11 : i64} {
  func.func @fused_encoder_kernel(%arg0: i32, %arg1: memref<1x24x32xf32, #tpu.memory_space<vmem>>, %arg2: memref<1x2x232x32xf32, #tpu.memory_space<vmem>>, %arg3: memref<1x2x40x64xf32, #tpu.memory_space<vmem>>, %arg4: memref<1x24x32xf32, #tpu.memory_space<vmem>>, %arg5: memref<2x24x32xf32, #tpu.memory_space<vmem>>) attributes {dimension_semantics = [#tpu.dimension_semantics<parallel>], iteration_bounds = array<i64: 2>, scalar_prefetch = 0 : i64, scratch_operands = 1 : i64, tpu.core_type = #tpu.core_type<tc>, window_params = [{transform_indices = @transform_0, window_bounds = array<i64: 1, 24, 32>}, {transform_indices = @transform_1, window_bounds = array<i64: 1, 2, 232, 32>}, {transform_indices = @transform_2, window_bounds = array<i64: 1, 2, 40, 64>}, {transform_indices = @transform_3, window_bounds = array<i64: 1, 24, 32>}]} {
    %cst = arith.constant 0.000000e+00 : f32
    %0 = vector.broadcast %cst : f32 to vector<2x24x32xf32>
    %c0 = arith.constant 0 : index
    %c0_0 = arith.constant 0 : index
    %c0_1 = arith.constant 0 : index
    %1 = vector.load %arg5[%c0, %c0_0, %c0_1] : memref<2x24x32xf32, #tpu.memory_space<vmem>>, vector<2x24x32xf32>
    tpu.vector_store %arg5[%c0, %c0_0, %c0_1], %0 {strides = array<i32>} : memref<2x24x32xf32, #tpu.memory_space<vmem>>, vector<2x24x32xf32>,
    %c0_2 = arith.constant 0 : index
    %c0_3 = arith.constant 0 : index
    %c0_4 = arith.constant 0 : index
    %2 = vector.load %arg1[%c0_2, %c0_3, %c0_4] : memref<1x24x32xf32, #tpu.memory_space<vmem>>, vector<1x8x32xf32>
    %3 = vector.shape_cast %2 : vector<1x8x32xf32> to vector<8x32xf32>
    %4 = tpu.iota {dimensions = array<i32: 1>} : vector<8x24xi32>
    %c16_i32 = arith.constant 16 : i32
    %5 = vector.broadcast %c16_i32 : i32 to vector<8x24xi32>
    %6 = arith.cmpi slt, %4, %5 : vector<8x24xi32>
    %cst_5 = arith.constant -1.000000e+09 : f32
    %cst_6 = arith.constant 0.000000e+00 : f32
    %7 = vector.broadcast %cst_5 : f32 to vector<8x24xf32>
    %8 = vector.broadcast %cst_6 : f32 to vector<8x24xf32>
    %9 = arith.select %6, %7, %8 : vector<8x24xi1>, vector<8x24xf32>
    %c0_7 = arith.constant 0 : index
    %c16 = arith.constant 16 : index
    %c0_8 = arith.constant 0 : index
    %10 = vector.load %arg5[%c0_7, %c16, %c0_8] : memref<2x24x32xf32, #tpu.memory_space<vmem>>, vector<1x8x32xf32>
    %11 = vector.shape_cast %10 : vector<1x8x32xf32> to vector<8x32xf32>
    %12 = vector.shape_cast %3 : vector<8x32xf32> to vector<1x8x32xf32>
    tpu.vector_store %arg5[%c0_7, %c16, %c0_8], %12 {strides = array<i32>} : memref<2x24x32xf32, #tpu.memory_space<vmem>>, vector<1x8x32xf32>,
    %c0_9 = arith.constant 0 : index
    %c0_10 = arith.constant 0 : index
    %c0_11 = arith.constant 0 : index
    %13 = vector.load %arg5[%c0_9, %c0_10, %c0_11] : memref<2x24x32xf32, #tpu.memory_space<vmem>>, vector<1x24x32xf32>
    %14 = vector.shape_cast %13 : vector<1x24x32xf32> to vector<24x32xf32>
    %c0_12 = arith.constant 0 : index
    %c0_13 = arith.constant 0 : index
    %c0_14 = arith.constant 0 : index
    %c0_15 = arith.constant 0 : index
    %15 = vector.load %arg2[%c0_12, %c0_13, %c0_14, %c0_15] : memref<1x2x232x32xf32, #tpu.memory_space<vmem>>, vector<1x1x32x32xf32>
    %16 = vector.shape_cast %15 : vector<1x1x32x32xf32> to vector<32x32xf32>
    %c0_16 = arith.constant 0 : index
    %c0_17 = arith.constant 0 : index
    %c32 = arith.constant 32 : index
    %c0_18 = arith.constant 0 : index
    %17 = vector.load %arg2[%c0_16, %c0_17, %c32, %c0_18] : memref<1x2x232x32xf32, #tpu.memory_space<vmem>>, vector<1x1x32x32xf32>
    %18 = vector.shape_cast %17 : vector<1x1x32x32xf32> to vector<32x32xf32>
    %c0_19 = arith.constant 0 : index
    %c0_20 = arith.constant 0 : index
    %c64 = arith.constant 64 : index
    %c0_21 = arith.constant 0 : index
    %19 = vector.load %arg2[%c0_19, %c0_20, %c64, %c0_21] : memref<1x2x232x32xf32, #tpu.memory_space<vmem>>, vector<1x1x32x32xf32>
    %20 = vector.shape_cast %19 : vector<1x1x32x32xf32> to vector<32x32xf32>
    %c0_22 = arith.constant 0 : index
    %c0_23 = arith.constant 0 : index
    %c96 = arith.constant 96 : index
    %c0_24 = arith.constant 0 : index
    %21 = vector.load %arg2[%c0_22, %c0_23, %c96, %c0_24] : memref<1x2x232x32xf32, #tpu.memory_space<vmem>>, vector<1x1x32x32xf32>
    %22 = vector.shape_cast %21 : vector<1x1x32x32xf32> to vector<32x32xf32>
    %c0_25 = arith.constant 0 : index
    %c0_26 = arith.constant 0 : index
    %c128 = arith.constant 128 : index
    %c0_27 = arith.constant 0 : index
    %23 = vector.load %arg2[%c0_25, %c0_26, %c128, %c0_27] : memref<1x2x232x32xf32, #tpu.memory_space<vmem>>, vector<1x1x64x32xf32>
    %24 = vector.shape_cast %23 : vector<1x1x64x32xf32> to vector<64x32xf32>
    %c0_28 = arith.constant 0 : index
    %c0_29 = arith.constant 0 : index
    %c192 = arith.constant 192 : index
    %c0_30 = arith.constant 0 : index
    %25 = vector.load %arg2[%c0_28, %c0_29, %c192, %c0_30] : memref<1x2x232x32xf32, #tpu.memory_space<vmem>>, vector<1x1x24x32xf32>
    %26 = vector.shape_cast %25 : vector<1x1x24x32xf32> to vector<24x32xf32>
    %c0_31 = arith.constant 0 : index
    %c0_32 = arith.constant 0 : index
    %c216 = arith.constant 216 : index
    %c0_33 = arith.constant 0 : index
    %27 = vector.load %arg2[%c0_31, %c0_32, %c216, %c0_33] : memref<1x2x232x32xf32, #tpu.memory_space<vmem>>, vector<1x1x16x32xf32>
    %28 = vector.shape_cast %27 : vector<1x1x16x32xf32> to vector<16x32xf32>
    %29 = vector.extract_strided_slice %28 {offsets = [0, 0], sizes = [1, 32], strides = [1, 1]} : vector<16x32xf32> to vector<1x32xf32>
    %30 = vector.extract_strided_slice %28 {offsets = [1, 0], sizes = [1, 32], strides = [1, 1]} : vector<16x32xf32> to vector<1x32xf32>
    %31 = vector.extract_strided_slice %28 {offsets = [2, 0], sizes = [1, 32], strides = [1, 1]} : vector<16x32xf32> to vector<1x32xf32>
    %32 = vector.extract_strided_slice %28 {offsets = [3, 0], sizes = [1, 32], strides = [1, 1]} : vector<16x32xf32> to vector<1x32xf32>
    %33 = vector.extract_strided_slice %28 {offsets = [4, 0], sizes = [1, 32], strides = [1, 1]} : vector<16x32xf32> to vector<1x32xf32>
    %34 = vector.extract_strided_slice %28 {offsets = [5, 0], sizes = [1, 32], strides = [1, 1]} : vector<16x32xf32> to vector<1x32xf32>
    %35 = vector.extract_strided_slice %28 {offsets = [6, 0], sizes = [1, 32], strides = [1, 1]} : vector<16x32xf32> to vector<1x32xf32>
    %36 = vector.extract_strided_slice %28 {offsets = [7, 0], sizes = [1, 32], strides = [1, 1]} : vector<16x32xf32> to vector<1x32xf32>
    %37 = vector.extract_strided_slice %28 {offsets = [8, 0], sizes = [1, 32], strides = [1, 1]} : vector<16x32xf32> to vector<1x32xf32>
    %38 = vector.extract_strided_slice %28 {offsets = [9, 0], sizes = [1, 32], strides = [1, 1]} : vector<16x32xf32> to vector<1x32xf32>
    %39 = vector.extract_strided_slice %28 {offsets = [10, 0], sizes = [1, 32], strides = [1, 1]} : vector<16x32xf32> to vector<1x32xf32>
    %c0_34 = arith.constant 0 : index
    %c0_35 = arith.constant 0 : index
    %c0_36 = arith.constant 0 : index
    %c0_37 = arith.constant 0 : index
    %40 = vector.load %arg3[%c0_34, %c0_35, %c0_36, %c0_37] : memref<1x2x40x64xf32, #tpu.memory_space<vmem>>, vector<1x1x32x64xf32>
    %41 = vector.shape_cast %40 : vector<1x1x32x64xf32> to vector<32x64xf32>
    %c0_38 = arith.constant 0 : index
    %c0_39 = arith.constant 0 : index
    %c32_40 = arith.constant 32 : index
    %c0_41 = arith.constant 0 : index
    %42 = vector.load %arg3[%c0_38, %c0_39, %c32_40, %c0_41] : memref<1x2x40x64xf32, #tpu.memory_space<vmem>>, vector<1x1x1x64xf32>
    %43 = vector.shape_cast %42 : vector<1x1x1x64xf32> to vector<1x64xf32>
    %cst_42 = arith.constant dense<0.000000e+00> : vector<8x32xf32>
    %44 = tpu.matmul %3, %16, %cst_42 {dimension_numbers = #tpu.dot_dimension_numbers<[1], [0], [0], [1], [0, 0, 1, 1], [], []>} : vector<8x32xf32>, vector<32x32xf32>, vector<8x32xf32> -> vector<8x32xf32>
    %45 = vector.broadcast %29 : vector<1x32xf32> to vector<8x32xf32>
    %46 = arith.addf %44, %45 : vector<8x32xf32>
    %cst_43 = arith.constant dense<0.000000e+00> : vector<24x32xf32>
    %47 = tpu.matmul %14, %18, %cst_43 {dimension_numbers = #tpu.dot_dimension_numbers<[1], [0], [0], [1], [0, 0, 1, 1], [], []>} : vector<24x32xf32>, vector<32x32xf32>, vector<24x32xf32> -> vector<24x32xf32>
    %48 = vector.broadcast %30 : vector<1x32xf32> to vector<24x32xf32>
    %49 = arith.addf %47, %48 : vector<24x32xf32>
    %cst_44 = arith.constant dense<0.000000e+00> : vector<24x32xf32>
    %50 = tpu.matmul %14, %20, %cst_44 {dimension_numbers = #tpu.dot_dimension_numbers<[1], [0], [0], [1], [0, 0, 1, 1], [], []>} : vector<24x32xf32>, vector<32x32xf32>, vector<24x32xf32> -> vector<24x32xf32>
    %51 = vector.broadcast %31 : vector<1x32xf32> to vector<24x32xf32>
    %52 = arith.addf %50, %51 : vector<24x32xf32>
    %53 = vector.broadcast %38 : vector<1x32xf32> to vector<8x32xf32>
    %54 = arith.addf %46, %53 : vector<8x32xf32>
    %cst_45 = arith.constant dense<0.000000e+00> : vector<8x24xf32>
    %55 = tpu.matmul %54, %49, %cst_45 {dimension_numbers = #tpu.dot_dimension_numbers<[1], [1], [0], [0], [0, 0, 1, 0], [], []>} : vector<8x32xf32>, vector<24x32xf32>, vector<8x24xf32> -> vector<8x24xf32>
    %56 = vector.broadcast %39 : vector<1x32xf32> to vector<8x32xf32>
    %57 = arith.addf %46, %56 : vector<8x32xf32>
    %cst_46 = arith.constant dense<0.000000e+00> : vector<8x24xf32>
    %58 = tpu.matmul %57, %26, %cst_46 {dimension_numbers = #tpu.dot_dimension_numbers<[1], [1], [0], [0], [0, 0, 1, 0], [], []>} : vector<8x32xf32>, vector<24x32xf32>, vector<8x24xf32> -> vector<8x24xf32>
    %59 = arith.addf %55, %58 : vector<8x24xf32>
    %cst_47 = arith.constant 0.176776692 : f32
    %60 = vector.broadcast %cst_47 : f32 to vector<8x24xf32>
    %61 = arith.mulf %59, %60 : vector<8x24xf32>
    %62 = arith.addf %61, %9 : vector<8x24xf32>
    %cst_48 = arith.constant dense<0xFF800000> : vector<8xf32>
    %63 = vector.multi_reduction <maximumf>, %62, %cst_48 [1] : vector<8x24xf32> to vector<8xf32>
    %64 = vector.shape_cast %63 : vector<8xf32> to vector<8x1xf32>
    %65 = vector.broadcast %64 : vector<8x1xf32> to vector<8x24xf32>
    %66 = arith.subf %62, %65 : vector<8x24xf32>
    %67 = math.exp %66 : vector<8x24xf32>
    %cst_49 = arith.constant dense<0.000000e+00> : vector<8xf32>
    %68 = vector.multi_reduction <add>, %67, %cst_49 [1] : vector<8x24xf32> to vector<8xf32>
    %69 = vector.shape_cast %68 : vector<8xf32> to vector<8x1xf32>
    %70 = tpu.reciprocal %69 {approx = true} : vector<8x1xf32> -> vector<8x1xf32>
    %71 = vector.broadcast %70 : vector<8x1xf32> to vector<8x24xf32>
    %72 = arith.mulf %67, %71 : vector<8x24xf32>
    %cst_50 = arith.constant dense<0.000000e+00> : vector<8x32xf32>
    %73 = tpu.matmul %72, %52, %cst_50 {dimension_numbers = #tpu.dot_dimension_numbers<[1], [0], [0], [1], [0, 0, 1, 1], [], []>} : vector<8x24xf32>, vector<24x32xf32>, vector<8x32xf32> -> vector<8x32xf32>
    %cst_51 = arith.constant dense<0.000000e+00> : vector<8x32xf32>
    %74 = tpu.matmul %73, %22, %cst_51 {dimension_numbers = #tpu.dot_dimension_numbers<[1], [0], [0], [1], [0, 0, 1, 1], [], []>} : vector<8x32xf32>, vector<32x32xf32>, vector<8x32xf32> -> vector<8x32xf32>
    %75 = vector.broadcast %32 : vector<1x32xf32> to vector<8x32xf32>
    %76 = arith.addf %74, %75 : vector<8x32xf32>
    %77 = arith.addf %3, %76 : vector<8x32xf32>
    %cst_52 = arith.constant dense<0.000000e+00> : vector<8xf32>
    %78 = vector.multi_reduction <add>, %77, %cst_52 [1] : vector<8x32xf32> to vector<8xf32>
    %79 = vector.shape_cast %78 : vector<8xf32> to vector<8x1xf32>
    %cst_53 = arith.constant 3.200000e+01 : f32
    %80 = vector.broadcast %cst_53 : f32 to vector<8x1xf32>
    %81 = arith.divf %79, %80 : vector<8x1xf32>
    %82 = vector.broadcast %81 : vector<8x1xf32> to vector<8x32xf32>
    %83 = arith.subf %77, %82 : vector<8x32xf32>
    %84 = arith.mulf %83, %83 : vector<8x32xf32>
    %cst_54 = arith.constant dense<0.000000e+00> : vector<8xf32>
    %85 = vector.multi_reduction <add>, %84, %cst_54 [1] : vector<8x32xf32> to vector<8xf32>
    %86 = vector.shape_cast %85 : vector<8xf32> to vector<8x1xf32>
    %cst_55 = arith.constant 3.200000e+01 : f32
    %87 = vector.broadcast %cst_55 : f32 to vector<8x1xf32>
    %88 = arith.divf %86, %87 : vector<8x1xf32>
    %89 = vector.broadcast %81 : vector<8x1xf32> to vector<8x32xf32>
    %90 = arith.subf %77, %89 : vector<8x32xf32>
    %cst_56 = arith.constant 9.99999974E-6 : f32
    %91 = vector.broadcast %cst_56 : f32 to vector<8x1xf32>
    %92 = arith.addf %88, %91 : vector<8x1xf32>
    %93 = math.rsqrt %92 : vector<8x1xf32>
    %94 = vector.broadcast %93 : vector<8x1xf32> to vector<8x32xf32>
    %95 = arith.mulf %90, %94 : vector<8x32xf32>
    %96 = vector.broadcast %33 : vector<1x32xf32> to vector<8x32xf32>
    %97 = arith.mulf %95, %96 : vector<8x32xf32>
    %98 = vector.broadcast %34 : vector<1x32xf32> to vector<8x32xf32>
    %99 = arith.addf %97, %98 : vector<8x32xf32>
    %cst_57 = arith.constant dense<0.000000e+00> : vector<8x64xf32>
    %100 = tpu.matmul %99, %41, %cst_57 {dimension_numbers = #tpu.dot_dimension_numbers<[1], [0], [0], [1], [0, 0, 1, 1], [], []>} : vector<8x32xf32>, vector<32x64xf32>, vector<8x64xf32> -> vector<8x64xf32>
    %101 = vector.broadcast %43 : vector<1x64xf32> to vector<8x64xf32>
    %102 = arith.addf %100, %101 : vector<8x64xf32>
    %cst_58 = arith.constant 0.000000e+00 : f32
    %103 = vector.broadcast %cst_58 : f32 to vector<8x64xf32>
    %104 = arith.maximumf %102, %103 : vector<8x64xf32>
    %cst_59 = arith.constant dense<0.000000e+00> : vector<8x32xf32>
    %105 = tpu.matmul %104, %24, %cst_59 {dimension_numbers = #tpu.dot_dimension_numbers<[1], [0], [0], [1], [0, 0, 1, 1], [], []>} : vector<8x64xf32>, vector<64x32xf32>, vector<8x32xf32> -> vector<8x32xf32>
    %106 = vector.broadcast %35 : vector<1x32xf32> to vector<8x32xf32>
    %107 = arith.addf %105, %106 : vector<8x32xf32>
    %108 = arith.addf %99, %107 : vector<8x32xf32>
    %cst_60 = arith.constant dense<0.000000e+00> : vector<8xf32>
    %109 = vector.multi_reduction <add>, %108, %cst_60 [1] : vector<8x32xf32> to vector<8xf32>
    %110 = vector.shape_cast %109 : vector<8xf32> to vector<8x1xf32>
    %cst_61 = arith.constant 3.200000e+01 : f32
    %111 = vector.broadcast %cst_61 : f32 to vector<8x1xf32>
    %112 = arith.divf %110, %111 : vector<8x1xf32>
    %113 = vector.broadcast %112 : vector<8x1xf32> to vector<8x32xf32>
    %114 = arith.subf %108, %113 : vector<8x32xf32>
    %115 = arith.mulf %114, %114 : vector<8x32xf32>
    %cst_62 = arith.constant dense<0.000000e+00> : vector<8xf32>
    %116 = vector.multi_reduction <add>, %115, %cst_62 [1] : vector<8x32xf32> to vector<8xf32>
    %117 = vector.shape_cast %116 : vector<8xf32> to vector<8x1xf32>
    %cst_63 = arith.constant 3.200000e+01 : f32
    %118 = vector.broadcast %cst_63 : f32 to vector<8x1xf32>
    %119 = arith.divf %117, %118 : vector<8x1xf32>
    %120 = vector.broadcast %112 : vector<8x1xf32> to vector<8x32xf32>
    %121 = arith.subf %108, %120 : vector<8x32xf32>
    %cst_64 = arith.constant 9.99999974E-6 : f32
    %122 = vector.broadcast %cst_64 : f32 to vector<8x1xf32>
    %123 = arith.addf %119, %122 : vector<8x1xf32>
    %124 = math.rsqrt %123 : vector<8x1xf32>
    %125 = vector.broadcast %124 : vector<8x1xf32> to vector<8x32xf32>
    %126 = arith.mulf %121, %125 : vector<8x32xf32>
    %127 = vector.broadcast %36 : vector<1x32xf32> to vector<8x32xf32>
    %128 = arith.mulf %126, %127 : vector<8x32xf32>
    %129 = vector.broadcast %37 : vector<1x32xf32> to vector<8x32xf32>
    %130 = arith.addf %128, %129 : vector<8x32xf32>
    %131 = vector.extract_strided_slice %14 {offsets = [8, 0], sizes = [16, 32], strides = [1, 1]} : vector<24x32xf32> to vector<16x32xf32>
    %c0_65 = arith.constant 0 : index
    %c0_66 = arith.constant 0 : index
    %c0_67 = arith.constant 0 : index
    %132 = vector.load %arg5[%c0_65, %c0_66, %c0_67] : memref<2x24x32xf32, #tpu.memory_space<vmem>>, vector<1x16x32xf32>
    %133 = vector.shape_cast %132 : vector<1x16x32xf32> to vector<16x32xf32>
    %134 = vector.shape_cast %131 : vector<16x32xf32> to vector<1x16x32xf32>
    tpu.vector_store %arg5[%c0_65, %c0_66, %c0_67], %134 {strides = array<i32>} : memref<2x24x32xf32, #tpu.memory_space<vmem>>, vector<1x16x32xf32>,
    %c1 = arith.constant 1 : index
    %c16_68 = arith.constant 16 : index
    %c0_69 = arith.constant 0 : index
    %135 = vector.load %arg5[%c1, %c16_68, %c0_69] : memref<2x24x32xf32, #tpu.memory_space<vmem>>, vector<1x8x32xf32>
    %136 = vector.shape_cast %135 : vector<1x8x32xf32> to vector<8x32xf32>
    %137 = vector.shape_cast %130 : vector<8x32xf32> to vector<1x8x32xf32>
    tpu.vector_store %arg5[%c1, %c16_68, %c0_69], %137 {strides = array<i32>} : memref<2x24x32xf32, #tpu.memory_space<vmem>>, vector<1x8x32xf32>,
    %c1_70 = arith.constant 1 : index
    %c0_71 = arith.constant 0 : index
    %c0_72 = arith.constant 0 : index
    %138 = vector.load %arg5[%c1_70, %c0_71, %c0_72] : memref<2x24x32xf32, #tpu.memory_space<vmem>>, vector<1x24x32xf32>
    %139 = vector.shape_cast %138 : vector<1x24x32xf32> to vector<24x32xf32>
    %c0_73 = arith.constant 0 : index
    %c1_74 = arith.constant 1 : index
    %c0_75 = arith.constant 0 : index
    %c0_76 = arith.constant 0 : index
    %140 = vector.load %arg2[%c0_73, %c1_74, %c0_75, %c0_76] : memref<1x2x232x32xf32, #tpu.memory_space<vmem>>, vector<1x1x32x32xf32>
    %141 = vector.shape_cast %140 : vector<1x1x32x32xf32> to vector<32x32xf32>
    %c0_77 = arith.constant 0 : index
    %c1_78 = arith.constant 1 : index
    %c32_79 = arith.constant 32 : index
    %c0_80 = arith.constant 0 : index
    %142 = vector.load %arg2[%c0_77, %c1_78, %c32_79, %c0_80] : memref<1x2x232x32xf32, #tpu.memory_space<vmem>>, vector<1x1x32x32xf32>
    %143 = vector.shape_cast %142 : vector<1x1x32x32xf32> to vector<32x32xf32>
    %c0_81 = arith.constant 0 : index
    %c1_82 = arith.constant 1 : index
    %c64_83 = arith.constant 64 : index
    %c0_84 = arith.constant 0 : index
    %144 = vector.load %arg2[%c0_81, %c1_82, %c64_83, %c0_84] : memref<1x2x232x32xf32, #tpu.memory_space<vmem>>, vector<1x1x32x32xf32>
    %145 = vector.shape_cast %144 : vector<1x1x32x32xf32> to vector<32x32xf32>
    %c0_85 = arith.constant 0 : index
    %c1_86 = arith.constant 1 : index
    %c96_87 = arith.constant 96 : index
    %c0_88 = arith.constant 0 : index
    %146 = vector.load %arg2[%c0_85, %c1_86, %c96_87, %c0_88] : memref<1x2x232x32xf32, #tpu.memory_space<vmem>>, vector<1x1x32x32xf32>
    %147 = vector.shape_cast %146 : vector<1x1x32x32xf32> to vector<32x32xf32>
    %c0_89 = arith.constant 0 : index
    %c1_90 = arith.constant 1 : index
    %c128_91 = arith.constant 128 : index
    %c0_92 = arith.constant 0 : index
    %148 = vector.load %arg2[%c0_89, %c1_90, %c128_91, %c0_92] : memref<1x2x232x32xf32, #tpu.memory_space<vmem>>, vector<1x1x64x32xf32>
    %149 = vector.shape_cast %148 : vector<1x1x64x32xf32> to vector<64x32xf32>
    %c0_93 = arith.constant 0 : index
    %c1_94 = arith.constant 1 : index
    %c192_95 = arith.constant 192 : index
    %c0_96 = arith.constant 0 : index
    %150 = vector.load %arg2[%c0_93, %c1_94, %c192_95, %c0_96] : memref<1x2x232x32xf32, #tpu.memory_space<vmem>>, vector<1x1x24x32xf32>
    %151 = vector.shape_cast %150 : vector<1x1x24x32xf32> to vector<24x32xf32>
    %c0_97 = arith.constant 0 : index
    %c1_98 = arith.constant 1 : index
    %c216_99 = arith.constant 216 : index
    %c0_100 = arith.constant 0 : index
    %152 = vector.load %arg2[%c0_97, %c1_98, %c216_99, %c0_100] : memref<1x2x232x32xf32, #tpu.memory_space<vmem>>, vector<1x1x16x32xf32>
    %153 = vector.shape_cast %152 : vector<1x1x16x32xf32> to vector<16x32xf32>
    %154 = vector.extract_strided_slice %153 {offsets = [0, 0], sizes = [1, 32], strides = [1, 1]} : vector<16x32xf32> to vector<1x32xf32>
    %155 = vector.extract_strided_slice %153 {offsets = [1, 0], sizes = [1, 32], strides = [1, 1]} : vector<16x32xf32> to vector<1x32xf32>
    %156 = vector.extract_strided_slice %153 {offsets = [2, 0], sizes = [1, 32], strides = [1, 1]} : vector<16x32xf32> to vector<1x32xf32>
    %157 = vector.extract_strided_slice %153 {offsets = [3, 0], sizes = [1, 32], strides = [1, 1]} : vector<16x32xf32> to vector<1x32xf32>
    %158 = vector.extract_strided_slice %153 {offsets = [4, 0], sizes = [1, 32], strides = [1, 1]} : vector<16x32xf32> to vector<1x32xf32>
    %159 = vector.extract_strided_slice %153 {offsets = [5, 0], sizes = [1, 32], strides = [1, 1]} : vector<16x32xf32> to vector<1x32xf32>
    %160 = vector.extract_strided_slice %153 {offsets = [6, 0], sizes = [1, 32], strides = [1, 1]} : vector<16x32xf32> to vector<1x32xf32>
    %161 = vector.extract_strided_slice %153 {offsets = [7, 0], sizes = [1, 32], strides = [1, 1]} : vector<16x32xf32> to vector<1x32xf32>
    %162 = vector.extract_strided_slice %153 {offsets = [8, 0], sizes = [1, 32], strides = [1, 1]} : vector<16x32xf32> to vector<1x32xf32>
    %163 = vector.extract_strided_slice %153 {offsets = [9, 0], sizes = [1, 32], strides = [1, 1]} : vector<16x32xf32> to vector<1x32xf32>
    %164 = vector.extract_strided_slice %153 {offsets = [10, 0], sizes = [1, 32], strides = [1, 1]} : vector<16x32xf32> to vector<1x32xf32>
    %c0_101 = arith.constant 0 : index
    %c1_102 = arith.constant 1 : index
    %c0_103 = arith.constant 0 : index
    %c0_104 = arith.constant 0 : index
    %165 = vector.load %arg3[%c0_101, %c1_102, %c0_103, %c0_104] : memref<1x2x40x64xf32, #tpu.memory_space<vmem>>, vector<1x1x32x64xf32>
    %166 = vector.shape_cast %165 : vector<1x1x32x64xf32> to vector<32x64xf32>
    %c0_105 = arith.constant 0 : index
    %c1_106 = arith.constant 1 : index
    %c32_107 = arith.constant 32 : index
    %c0_108 = arith.constant 0 : index
    %167 = vector.load %arg3[%c0_105, %c1_106, %c32_107, %c0_108] : memref<1x2x40x64xf32, #tpu.memory_space<vmem>>, vector<1x1x1x64xf32>
    %168 = vector.shape_cast %167 : vector<1x1x1x64xf32> to vector<1x64xf32>
    %cst_109 = arith.constant dense<0.000000e+00> : vector<8x32xf32>
    %169 = tpu.matmul %130, %141, %cst_109 {dimension_numbers = #tpu.dot_dimension_numbers<[1], [0], [0], [1], [0, 0, 1, 1], [], []>} : vector<8x32xf32>, vector<32x32xf32>, vector<8x32xf32> -> vector<8x32xf32>
    %170 = vector.broadcast %154 : vector<1x32xf32> to vector<8x32xf32>
    %171 = arith.addf %169, %170 : vector<8x32xf32>
    %cst_110 = arith.constant dense<0.000000e+00> : vector<24x32xf32>
    %172 = tpu.matmul %139, %143, %cst_110 {dimension_numbers = #tpu.dot_dimension_numbers<[1], [0], [0], [1], [0, 0, 1, 1], [], []>} : vector<24x32xf32>, vector<32x32xf32>, vector<24x32xf32> -> vector<24x32xf32>
    %173 = vector.broadcast %155 : vector<1x32xf32> to vector<24x32xf32>
    %174 = arith.addf %172, %173 : vector<24x32xf32>
    %cst_111 = arith.constant dense<0.000000e+00> : vector<24x32xf32>
    %175 = tpu.matmul %139, %145, %cst_111 {dimension_numbers = #tpu.dot_dimension_numbers<[1], [0], [0], [1], [0, 0, 1, 1], [], []>} : vector<24x32xf32>, vector<32x32xf32>, vector<24x32xf32> -> vector<24x32xf32>
    %176 = vector.broadcast %156 : vector<1x32xf32> to vector<24x32xf32>
    %177 = arith.addf %175, %176 : vector<24x32xf32>
    %178 = vector.broadcast %163 : vector<1x32xf32> to vector<8x32xf32>
    %179 = arith.addf %171, %178 : vector<8x32xf32>
    %cst_112 = arith.constant dense<0.000000e+00> : vector<8x24xf32>
    %180 = tpu.matmul %179, %174, %cst_112 {dimension_numbers = #tpu.dot_dimension_numbers<[1], [1], [0], [0], [0, 0, 1, 0], [], []>} : vector<8x32xf32>, vector<24x32xf32>, vector<8x24xf32> -> vector<8x24xf32>
    %181 = vector.broadcast %164 : vector<1x32xf32> to vector<8x32xf32>
    %182 = arith.addf %171, %181 : vector<8x32xf32>
    %cst_113 = arith.constant dense<0.000000e+00> : vector<8x24xf32>
    %183 = tpu.matmul %182, %151, %cst_113 {dimension_numbers = #tpu.dot_dimension_numbers<[1], [1], [0], [0], [0, 0, 1, 0], [], []>} : vector<8x32xf32>, vector<24x32xf32>, vector<8x24xf32> -> vector<8x24xf32>
    %184 = arith.addf %180, %183 : vector<8x24xf32>
    %cst_114 = arith.constant 0.176776692 : f32
    %185 = vector.broadcast %cst_114 : f32 to vector<8x24xf32>
    %186 = arith.mulf %184, %185 : vector<8x24xf32>
    %187 = arith.addf %186, %9 : vector<8x24xf32>
    %cst_115 = arith.constant dense<0xFF800000> : vector<8xf32>
    %188 = vector.multi_reduction <maximumf>, %187, %cst_115 [1] : vector<8x24xf32> to vector<8xf32>
    %189 = vector.shape_cast %188 : vector<8xf32> to vector<8x1xf32>
    %190 = vector.broadcast %189 : vector<8x1xf32> to vector<8x24xf32>
    %191 = arith.subf %187, %190 : vector<8x24xf32>
    %192 = math.exp %191 : vector<8x24xf32>
    %cst_116 = arith.constant dense<0.000000e+00> : vector<8xf32>
    %193 = vector.multi_reduction <add>, %192, %cst_116 [1] : vector<8x24xf32> to vector<8xf32>
    %194 = vector.shape_cast %193 : vector<8xf32> to vector<8x1xf32>
    %195 = tpu.reciprocal %194 {approx = true} : vector<8x1xf32> -> vector<8x1xf32>
    %196 = vector.broadcast %195 : vector<8x1xf32> to vector<8x24xf32>
    %197 = arith.mulf %192, %196 : vector<8x24xf32>
    %cst_117 = arith.constant dense<0.000000e+00> : vector<8x32xf32>
    %198 = tpu.matmul %197, %177, %cst_117 {dimension_numbers = #tpu.dot_dimension_numbers<[1], [0], [0], [1], [0, 0, 1, 1], [], []>} : vector<8x24xf32>, vector<24x32xf32>, vector<8x32xf32> -> vector<8x32xf32>
    %cst_118 = arith.constant dense<0.000000e+00> : vector<8x32xf32>
    %199 = tpu.matmul %198, %147, %cst_118 {dimension_numbers = #tpu.dot_dimension_numbers<[1], [0], [0], [1], [0, 0, 1, 1], [], []>} : vector<8x32xf32>, vector<32x32xf32>, vector<8x32xf32> -> vector<8x32xf32>
    %200 = vector.broadcast %157 : vector<1x32xf32> to vector<8x32xf32>
    %201 = arith.addf %199, %200 : vector<8x32xf32>
    %202 = arith.addf %130, %201 : vector<8x32xf32>
    %cst_119 = arith.constant dense<0.000000e+00> : vector<8xf32>
    %203 = vector.multi_reduction <add>, %202, %cst_119 [1] : vector<8x32xf32> to vector<8xf32>
    %204 = vector.shape_cast %203 : vector<8xf32> to vector<8x1xf32>
    %cst_120 = arith.constant 3.200000e+01 : f32
    %205 = vector.broadcast %cst_120 : f32 to vector<8x1xf32>
    %206 = arith.divf %204, %205 : vector<8x1xf32>
    %207 = vector.broadcast %206 : vector<8x1xf32> to vector<8x32xf32>
    %208 = arith.subf %202, %207 : vector<8x32xf32>
    %209 = arith.mulf %208, %208 : vector<8x32xf32>
    %cst_121 = arith.constant dense<0.000000e+00> : vector<8xf32>
    %210 = vector.multi_reduction <add>, %209, %cst_121 [1] : vector<8x32xf32> to vector<8xf32>
    %211 = vector.shape_cast %210 : vector<8xf32> to vector<8x1xf32>
    %cst_122 = arith.constant 3.200000e+01 : f32
    %212 = vector.broadcast %cst_122 : f32 to vector<8x1xf32>
    %213 = arith.divf %211, %212 : vector<8x1xf32>
    %214 = vector.broadcast %206 : vector<8x1xf32> to vector<8x32xf32>
    %215 = arith.subf %202, %214 : vector<8x32xf32>
    %cst_123 = arith.constant 9.99999974E-6 : f32
    %216 = vector.broadcast %cst_123 : f32 to vector<8x1xf32>
    %217 = arith.addf %213, %216 : vector<8x1xf32>
    %218 = math.rsqrt %217 : vector<8x1xf32>
    %219 = vector.broadcast %218 : vector<8x1xf32> to vector<8x32xf32>
    %220 = arith.mulf %215, %219 : vector<8x32xf32>
    %221 = vector.broadcast %158 : vector<1x32xf32> to vector<8x32xf32>
    %222 = arith.mulf %220, %221 : vector<8x32xf32>
    %223 = vector.broadcast %159 : vector<1x32xf32> to vector<8x32xf32>
    %224 = arith.addf %222, %223 : vector<8x32xf32>
    %cst_124 = arith.constant dense<0.000000e+00> : vector<8x64xf32>
    %225 = tpu.matmul %224, %166, %cst_124 {dimension_numbers = #tpu.dot_dimension_numbers<[1], [0], [0], [1], [0, 0, 1, 1], [], []>} : vector<8x32xf32>, vector<32x64xf32>, vector<8x64xf32> -> vector<8x64xf32>
    %226 = vector.broadcast %168 : vector<1x64xf32> to vector<8x64xf32>
    %227 = arith.addf %225, %226 : vector<8x64xf32>
    %cst_125 = arith.constant 0.000000e+00 : f32
    %228 = vector.broadcast %cst_125 : f32 to vector<8x64xf32>
    %229 = arith.maximumf %227, %228 : vector<8x64xf32>
    %cst_126 = arith.constant dense<0.000000e+00> : vector<8x32xf32>
    %230 = tpu.matmul %229, %149, %cst_126 {dimension_numbers = #tpu.dot_dimension_numbers<[1], [0], [0], [1], [0, 0, 1, 1], [], []>} : vector<8x64xf32>, vector<64x32xf32>, vector<8x32xf32> -> vector<8x32xf32>
    %231 = vector.broadcast %160 : vector<1x32xf32> to vector<8x32xf32>
    %232 = arith.addf %230, %231 : vector<8x32xf32>
    %233 = arith.addf %224, %232 : vector<8x32xf32>
    %cst_127 = arith.constant dense<0.000000e+00> : vector<8xf32>
    %234 = vector.multi_reduction <add>, %233, %cst_127 [1] : vector<8x32xf32> to vector<8xf32>
    %235 = vector.shape_cast %234 : vector<8xf32> to vector<8x1xf32>
    %cst_128 = arith.constant 3.200000e+01 : f32
    %236 = vector.broadcast %cst_128 : f32 to vector<8x1xf32>
    %237 = arith.divf %235, %236 : vector<8x1xf32>
    %238 = vector.broadcast %237 : vector<8x1xf32> to vector<8x32xf32>
    %239 = arith.subf %233, %238 : vector<8x32xf32>
    %240 = arith.mulf %239, %239 : vector<8x32xf32>
    %cst_129 = arith.constant dense<0.000000e+00> : vector<8xf32>
    %241 = vector.multi_reduction <add>, %240, %cst_129 [1] : vector<8x32xf32> to vector<8xf32>
    %242 = vector.shape_cast %241 : vector<8xf32> to vector<8x1xf32>
    %cst_130 = arith.constant 3.200000e+01 : f32
    %243 = vector.broadcast %cst_130 : f32 to vector<8x1xf32>
    %244 = arith.divf %242, %243 : vector<8x1xf32>
    %245 = vector.broadcast %237 : vector<8x1xf32> to vector<8x32xf32>
    %246 = arith.subf %233, %245 : vector<8x32xf32>
    %cst_131 = arith.constant 9.99999974E-6 : f32
    %247 = vector.broadcast %cst_131 : f32 to vector<8x1xf32>
    %248 = arith.addf %244, %247 : vector<8x1xf32>
    %249 = math.rsqrt %248 : vector<8x1xf32>
    %250 = vector.broadcast %249 : vector<8x1xf32> to vector<8x32xf32>
    %251 = arith.mulf %246, %250 : vector<8x32xf32>
    %252 = vector.broadcast %161 : vector<1x32xf32> to vector<8x32xf32>
    %253 = arith.mulf %251, %252 : vector<8x32xf32>
    %254 = vector.broadcast %162 : vector<1x32xf32> to vector<8x32xf32>
    %255 = arith.addf %253, %254 : vector<8x32xf32>
    %256 = vector.extract_strided_slice %139 {offsets = [8, 0], sizes = [16, 32], strides = [1, 1]} : vector<24x32xf32> to vector<16x32xf32>
    %c1_132 = arith.constant 1 : index
    %c0_133 = arith.constant 0 : index
    %c0_134 = arith.constant 0 : index
    %257 = vector.load %arg5[%c1_132, %c0_133, %c0_134] : memref<2x24x32xf32, #tpu.memory_space<vmem>>, vector<1x16x32xf32>
    %258 = vector.shape_cast %257 : vector<1x16x32xf32> to vector<16x32xf32>
    %259 = vector.shape_cast %256 : vector<16x32xf32> to vector<1x16x32xf32>
    tpu.vector_store %arg5[%c1_132, %c0_133, %c0_134], %259 {strides = array<i32>} : memref<2x24x32xf32, #tpu.memory_space<vmem>>, vector<1x16x32xf32>,
    %c0_135 = arith.constant 0 : index
    %c0_136 = arith.constant 0 : index
    %c0_137 = arith.constant 0 : index
    %260 = vector.load %arg4[%c0_135, %c0_136, %c0_137] : memref<1x24x32xf32, #tpu.memory_space<vmem>>, vector<1x8x32xf32>
    %261 = vector.shape_cast %260 : vector<1x8x32xf32> to vector<8x32xf32>
    %262 = vector.shape_cast %255 : vector<8x32xf32> to vector<1x8x32xf32>
    tpu.vector_store %arg4[%c0_135, %c0_136, %c0_137], %262 {strides = array<i32>} : memref<1x24x32xf32, #tpu.memory_space<vmem>>, vector<1x8x32xf32>,
    %c0_138 = arith.constant 0 : index
    %c8 = arith.constant 8 : index
    %c0_139 = arith.constant 0 : index
    %263 = vector.load %arg1[%c0_138, %c8, %c0_139] : memref<1x24x32xf32, #tpu.memory_space<vmem>>, vector<1x8x32xf32>
    %264 = vector.shape_cast %263 : vector<1x8x32xf32> to vector<8x32xf32>
    %265 = tpu.iota {dimensions = array<i32: 1>} : vector<8x24xi32>
    %c8_i32 = arith.constant 8 : i32
    %266 = vector.broadcast %c8_i32 : i32 to vector<8x24xi32>
    %267 = arith.cmpi slt, %265, %266 : vector<8x24xi32>
    %cst_140 = arith.constant -1.000000e+09 : f32
    %cst_141 = arith.constant 0.000000e+00 : f32
    %268 = vector.broadcast %cst_140 : f32 to vector<8x24xf32>
    %269 = vector.broadcast %cst_141 : f32 to vector<8x24xf32>
    %270 = arith.select %267, %268, %269 : vector<8x24xi1>, vector<8x24xf32>
    %c0_142 = arith.constant 0 : index
    %c16_143 = arith.constant 16 : index
    %c0_144 = arith.constant 0 : index
    %271 = vector.load %arg5[%c0_142, %c16_143, %c0_144] : memref<2x24x32xf32, #tpu.memory_space<vmem>>, vector<1x8x32xf32>
    %272 = vector.shape_cast %271 : vector<1x8x32xf32> to vector<8x32xf32>
    %273 = vector.shape_cast %264 : vector<8x32xf32> to vector<1x8x32xf32>
    tpu.vector_store %arg5[%c0_142, %c16_143, %c0_144], %273 {strides = array<i32>} : memref<2x24x32xf32, #tpu.memory_space<vmem>>, vector<1x8x32xf32>,
    %c0_145 = arith.constant 0 : index
    %c0_146 = arith.constant 0 : index
    %c0_147 = arith.constant 0 : index
    %274 = vector.load %arg5[%c0_145, %c0_146, %c0_147] : memref<2x24x32xf32, #tpu.memory_space<vmem>>, vector<1x24x32xf32>
    %275 = vector.shape_cast %274 : vector<1x24x32xf32> to vector<24x32xf32>
    %c0_148 = arith.constant 0 : index
    %c0_149 = arith.constant 0 : index
    %c0_150 = arith.constant 0 : index
    %c0_151 = arith.constant 0 : index
    %276 = vector.load %arg2[%c0_148, %c0_149, %c0_150, %c0_151] : memref<1x2x232x32xf32, #tpu.memory_space<vmem>>, vector<1x1x32x32xf32>
    %277 = vector.shape_cast %276 : vector<1x1x32x32xf32> to vector<32x32xf32>
    %c0_152 = arith.constant 0 : index
    %c0_153 = arith.constant 0 : index
    %c32_154 = arith.constant 32 : index
    %c0_155 = arith.constant 0 : index
    %278 = vector.load %arg2[%c0_152, %c0_153, %c32_154, %c0_155] : memref<1x2x232x32xf32, #tpu.memory_space<vmem>>, vector<1x1x32x32xf32>
    %279 = vector.shape_cast %278 : vector<1x1x32x32xf32> to vector<32x32xf32>
    %c0_156 = arith.constant 0 : index
    %c0_157 = arith.constant 0 : index
    %c64_158 = arith.constant 64 : index
    %c0_159 = arith.constant 0 : index
    %280 = vector.load %arg2[%c0_156, %c0_157, %c64_158, %c0_159] : memref<1x2x232x32xf32, #tpu.memory_space<vmem>>, vector<1x1x32x32xf32>
    %281 = vector.shape_cast %280 : vector<1x1x32x32xf32> to vector<32x32xf32>
    %c0_160 = arith.constant 0 : index
    %c0_161 = arith.constant 0 : index
    %c96_162 = arith.constant 96 : index
    %c0_163 = arith.constant 0 : index
    %282 = vector.load %arg2[%c0_160, %c0_161, %c96_162, %c0_163] : memref<1x2x232x32xf32, #tpu.memory_space<vmem>>, vector<1x1x32x32xf32>
    %283 = vector.shape_cast %282 : vector<1x1x32x32xf32> to vector<32x32xf32>
    %c0_164 = arith.constant 0 : index
    %c0_165 = arith.constant 0 : index
    %c128_166 = arith.constant 128 : index
    %c0_167 = arith.constant 0 : index
    %284 = vector.load %arg2[%c0_164, %c0_165, %c128_166, %c0_167] : memref<1x2x232x32xf32, #tpu.memory_space<vmem>>, vector<1x1x64x32xf32>
    %285 = vector.shape_cast %284 : vector<1x1x64x32xf32> to vector<64x32xf32>
    %c0_168 = arith.constant 0 : index
    %c0_169 = arith.constant 0 : index
    %c192_170 = arith.constant 192 : index
    %c0_171 = arith.constant 0 : index
    %286 = vector.load %arg2[%c0_168, %c0_169, %c192_170, %c0_171] : memref<1x2x232x32xf32, #tpu.memory_space<vmem>>, vector<1x1x24x32xf32>
    %287 = vector.shape_cast %286 : vector<1x1x24x32xf32> to vector<24x32xf32>
    %c0_172 = arith.constant 0 : index
    %c0_173 = arith.constant 0 : index
    %c216_174 = arith.constant 216 : index
    %c0_175 = arith.constant 0 : index
    %288 = vector.load %arg2[%c0_172, %c0_173, %c216_174, %c0_175] : memref<1x2x232x32xf32, #tpu.memory_space<vmem>>, vector<1x1x16x32xf32>
    %289 = vector.shape_cast %288 : vector<1x1x16x32xf32> to vector<16x32xf32>
    %290 = vector.extract_strided_slice %289 {offsets = [0, 0], sizes = [1, 32], strides = [1, 1]} : vector<16x32xf32> to vector<1x32xf32>
    %291 = vector.extract_strided_slice %289 {offsets = [1, 0], sizes = [1, 32], strides = [1, 1]} : vector<16x32xf32> to vector<1x32xf32>
    %292 = vector.extract_strided_slice %289 {offsets = [2, 0], sizes = [1, 32], strides = [1, 1]} : vector<16x32xf32> to vector<1x32xf32>
    %293 = vector.extract_strided_slice %289 {offsets = [3, 0], sizes = [1, 32], strides = [1, 1]} : vector<16x32xf32> to vector<1x32xf32>
    %294 = vector.extract_strided_slice %289 {offsets = [4, 0], sizes = [1, 32], strides = [1, 1]} : vector<16x32xf32> to vector<1x32xf32>
    %295 = vector.extract_strided_slice %289 {offsets = [5, 0], sizes = [1, 32], strides = [1, 1]} : vector<16x32xf32> to vector<1x32xf32>
    %296 = vector.extract_strided_slice %289 {offsets = [6, 0], sizes = [1, 32], strides = [1, 1]} : vector<16x32xf32> to vector<1x32xf32>
    %297 = vector.extract_strided_slice %289 {offsets = [7, 0], sizes = [1, 32], strides = [1, 1]} : vector<16x32xf32> to vector<1x32xf32>
    %298 = vector.extract_strided_slice %289 {offsets = [8, 0], sizes = [1, 32], strides = [1, 1]} : vector<16x32xf32> to vector<1x32xf32>
    %299 = vector.extract_strided_slice %289 {offsets = [9, 0], sizes = [1, 32], strides = [1, 1]} : vector<16x32xf32> to vector<1x32xf32>
    %300 = vector.extract_strided_slice %289 {offsets = [10, 0], sizes = [1, 32], strides = [1, 1]} : vector<16x32xf32> to vector<1x32xf32>
    %c0_176 = arith.constant 0 : index
    %c0_177 = arith.constant 0 : index
    %c0_178 = arith.constant 0 : index
    %c0_179 = arith.constant 0 : index
    %301 = vector.load %arg3[%c0_176, %c0_177, %c0_178, %c0_179] : memref<1x2x40x64xf32, #tpu.memory_space<vmem>>, vector<1x1x32x64xf32>
    %302 = vector.shape_cast %301 : vector<1x1x32x64xf32> to vector<32x64xf32>
    %c0_180 = arith.constant 0 : index
    %c0_181 = arith.constant 0 : index
    %c32_182 = arith.constant 32 : index
    %c0_183 = arith.constant 0 : index
    %303 = vector.load %arg3[%c0_180, %c0_181, %c32_182, %c0_183] : memref<1x2x40x64xf32, #tpu.memory_space<vmem>>, vector<1x1x1x64xf32>
    %304 = vector.shape_cast %303 : vector<1x1x1x64xf32> to vector<1x64xf32>
    %cst_184 = arith.constant dense<0.000000e+00> : vector<8x32xf32>
    %305 = tpu.matmul %264, %277, %cst_184 {dimension_numbers = #tpu.dot_dimension_numbers<[1], [0], [0], [1], [0, 0, 1, 1], [], []>} : vector<8x32xf32>, vector<32x32xf32>, vector<8x32xf32> -> vector<8x32xf32>
    %306 = vector.broadcast %290 : vector<1x32xf32> to vector<8x32xf32>
    %307 = arith.addf %305, %306 : vector<8x32xf32>
    %cst_185 = arith.constant dense<0.000000e+00> : vector<24x32xf32>
    %308 = tpu.matmul %275, %279, %cst_185 {dimension_numbers = #tpu.dot_dimension_numbers<[1], [0], [0], [1], [0, 0, 1, 1], [], []>} : vector<24x32xf32>, vector<32x32xf32>, vector<24x32xf32> -> vector<24x32xf32>
    %309 = vector.broadcast %291 : vector<1x32xf32> to vector<24x32xf32>
    %310 = arith.addf %308, %309 : vector<24x32xf32>
    %cst_186 = arith.constant dense<0.000000e+00> : vector<24x32xf32>
    %311 = tpu.matmul %275, %281, %cst_186 {dimension_numbers = #tpu.dot_dimension_numbers<[1], [0], [0], [1], [0, 0, 1, 1], [], []>} : vector<24x32xf32>, vector<32x32xf32>, vector<24x32xf32> -> vector<24x32xf32>
    %312 = vector.broadcast %292 : vector<1x32xf32> to vector<24x32xf32>
    %313 = arith.addf %311, %312 : vector<24x32xf32>
    %314 = vector.broadcast %299 : vector<1x32xf32> to vector<8x32xf32>
    %315 = arith.addf %307, %314 : vector<8x32xf32>
    %cst_187 = arith.constant dense<0.000000e+00> : vector<8x24xf32>
    %316 = tpu.matmul %315, %310, %cst_187 {dimension_numbers = #tpu.dot_dimension_numbers<[1], [1], [0], [0], [0, 0, 1, 0], [], []>} : vector<8x32xf32>, vector<24x32xf32>, vector<8x24xf32> -> vector<8x24xf32>
    %317 = vector.broadcast %300 : vector<1x32xf32> to vector<8x32xf32>
    %318 = arith.addf %307, %317 : vector<8x32xf32>
    %cst_188 = arith.constant dense<0.000000e+00> : vector<8x24xf32>
    %319 = tpu.matmul %318, %287, %cst_188 {dimension_numbers = #tpu.dot_dimension_numbers<[1], [1], [0], [0], [0, 0, 1, 0], [], []>} : vector<8x32xf32>, vector<24x32xf32>, vector<8x24xf32> -> vector<8x24xf32>
    %320 = arith.addf %316, %319 : vector<8x24xf32>
    %cst_189 = arith.constant 0.176776692 : f32
    %321 = vector.broadcast %cst_189 : f32 to vector<8x24xf32>
    %322 = arith.mulf %320, %321 : vector<8x24xf32>
    %323 = arith.addf %322, %270 : vector<8x24xf32>
    %cst_190 = arith.constant dense<0xFF800000> : vector<8xf32>
    %324 = vector.multi_reduction <maximumf>, %323, %cst_190 [1] : vector<8x24xf32> to vector<8xf32>
    %325 = vector.shape_cast %324 : vector<8xf32> to vector<8x1xf32>
    %326 = vector.broadcast %325 : vector<8x1xf32> to vector<8x24xf32>
    %327 = arith.subf %323, %326 : vector<8x24xf32>
    %328 = math.exp %327 : vector<8x24xf32>
    %cst_191 = arith.constant dense<0.000000e+00> : vector<8xf32>
    %329 = vector.multi_reduction <add>, %328, %cst_191 [1] : vector<8x24xf32> to vector<8xf32>
    %330 = vector.shape_cast %329 : vector<8xf32> to vector<8x1xf32>
    %331 = tpu.reciprocal %330 {approx = true} : vector<8x1xf32> -> vector<8x1xf32>
    %332 = vector.broadcast %331 : vector<8x1xf32> to vector<8x24xf32>
    %333 = arith.mulf %328, %332 : vector<8x24xf32>
    %cst_192 = arith.constant dense<0.000000e+00> : vector<8x32xf32>
    %334 = tpu.matmul %333, %313, %cst_192 {dimension_numbers = #tpu.dot_dimension_numbers<[1], [0], [0], [1], [0, 0, 1, 1], [], []>} : vector<8x24xf32>, vector<24x32xf32>, vector<8x32xf32> -> vector<8x32xf32>
    %cst_193 = arith.constant dense<0.000000e+00> : vector<8x32xf32>
    %335 = tpu.matmul %334, %283, %cst_193 {dimension_numbers = #tpu.dot_dimension_numbers<[1], [0], [0], [1], [0, 0, 1, 1], [], []>} : vector<8x32xf32>, vector<32x32xf32>, vector<8x32xf32> -> vector<8x32xf32>
    %336 = vector.broadcast %293 : vector<1x32xf32> to vector<8x32xf32>
    %337 = arith.addf %335, %336 : vector<8x32xf32>
    %338 = arith.addf %264, %337 : vector<8x32xf32>
    %cst_194 = arith.constant dense<0.000000e+00> : vector<8xf32>
    %339 = vector.multi_reduction <add>, %338, %cst_194 [1] : vector<8x32xf32> to vector<8xf32>
    %340 = vector.shape_cast %339 : vector<8xf32> to vector<8x1xf32>
    %cst_195 = arith.constant 3.200000e+01 : f32
    %341 = vector.broadcast %cst_195 : f32 to vector<8x1xf32>
    %342 = arith.divf %340, %341 : vector<8x1xf32>
    %343 = vector.broadcast %342 : vector<8x1xf32> to vector<8x32xf32>
    %344 = arith.subf %338, %343 : vector<8x32xf32>
    %345 = arith.mulf %344, %344 : vector<8x32xf32>
    %cst_196 = arith.constant dense<0.000000e+00> : vector<8xf32>
    %346 = vector.multi_reduction <add>, %345, %cst_196 [1] : vector<8x32xf32> to vector<8xf32>
    %347 = vector.shape_cast %346 : vector<8xf32> to vector<8x1xf32>
    %cst_197 = arith.constant 3.200000e+01 : f32
    %348 = vector.broadcast %cst_197 : f32 to vector<8x1xf32>
    %349 = arith.divf %347, %348 : vector<8x1xf32>
    %350 = vector.broadcast %342 : vector<8x1xf32> to vector<8x32xf32>
    %351 = arith.subf %338, %350 : vector<8x32xf32>
    %cst_198 = arith.constant 9.99999974E-6 : f32
    %352 = vector.broadcast %cst_198 : f32 to vector<8x1xf32>
    %353 = arith.addf %349, %352 : vector<8x1xf32>
    %354 = math.rsqrt %353 : vector<8x1xf32>
    %355 = vector.broadcast %354 : vector<8x1xf32> to vector<8x32xf32>
    %356 = arith.mulf %351, %355 : vector<8x32xf32>
    %357 = vector.broadcast %294 : vector<1x32xf32> to vector<8x32xf32>
    %358 = arith.mulf %356, %357 : vector<8x32xf32>
    %359 = vector.broadcast %295 : vector<1x32xf32> to vector<8x32xf32>
    %360 = arith.addf %358, %359 : vector<8x32xf32>
    %cst_199 = arith.constant dense<0.000000e+00> : vector<8x64xf32>
    %361 = tpu.matmul %360, %302, %cst_199 {dimension_numbers = #tpu.dot_dimension_numbers<[1], [0], [0], [1], [0, 0, 1, 1], [], []>} : vector<8x32xf32>, vector<32x64xf32>, vector<8x64xf32> -> vector<8x64xf32>
    %362 = vector.broadcast %304 : vector<1x64xf32> to vector<8x64xf32>
    %363 = arith.addf %361, %362 : vector<8x64xf32>
    %cst_200 = arith.constant 0.000000e+00 : f32
    %364 = vector.broadcast %cst_200 : f32 to vector<8x64xf32>
    %365 = arith.maximumf %363, %364 : vector<8x64xf32>
    %cst_201 = arith.constant dense<0.000000e+00> : vector<8x32xf32>
    %366 = tpu.matmul %365, %285, %cst_201 {dimension_numbers = #tpu.dot_dimension_numbers<[1], [0], [0], [1], [0, 0, 1, 1], [], []>} : vector<8x64xf32>, vector<64x32xf32>, vector<8x32xf32> -> vector<8x32xf32>
    %367 = vector.broadcast %296 : vector<1x32xf32> to vector<8x32xf32>
    %368 = arith.addf %366, %367 : vector<8x32xf32>
    %369 = arith.addf %360, %368 : vector<8x32xf32>
    %cst_202 = arith.constant dense<0.000000e+00> : vector<8xf32>
    %370 = vector.multi_reduction <add>, %369, %cst_202 [1] : vector<8x32xf32> to vector<8xf32>
    %371 = vector.shape_cast %370 : vector<8xf32> to vector<8x1xf32>
    %cst_203 = arith.constant 3.200000e+01 : f32
    %372 = vector.broadcast %cst_203 : f32 to vector<8x1xf32>
    %373 = arith.divf %371, %372 : vector<8x1xf32>
    %374 = vector.broadcast %373 : vector<8x1xf32> to vector<8x32xf32>
    %375 = arith.subf %369, %374 : vector<8x32xf32>
    %376 = arith.mulf %375, %375 : vector<8x32xf32>
    %cst_204 = arith.constant dense<0.000000e+00> : vector<8xf32>
    %377 = vector.multi_reduction <add>, %376, %cst_204 [1] : vector<8x32xf32> to vector<8xf32>
    %378 = vector.shape_cast %377 : vector<8xf32> to vector<8x1xf32>
    %cst_205 = arith.constant 3.200000e+01 : f32
    %379 = vector.broadcast %cst_205 : f32 to vector<8x1xf32>
    %380 = arith.divf %378, %379 : vector<8x1xf32>
    %381 = vector.broadcast %373 : vector<8x1xf32> to vector<8x32xf32>
    %382 = arith.subf %369, %381 : vector<8x32xf32>
    %cst_206 = arith.constant 9.99999974E-6 : f32
    %383 = vector.broadcast %cst_206 : f32 to vector<8x1xf32>
    %384 = arith.addf %380, %383 : vector<8x1xf32>
    %385 = math.rsqrt %384 : vector<8x1xf32>
    %386 = vector.broadcast %385 : vector<8x1xf32> to vector<8x32xf32>
    %387 = arith.mulf %382, %386 : vector<8x32xf32>
    %388 = vector.broadcast %297 : vector<1x32xf32> to vector<8x32xf32>
    %389 = arith.mulf %387, %388 : vector<8x32xf32>
    %390 = vector.broadcast %298 : vector<1x32xf32> to vector<8x32xf32>
    %391 = arith.addf %389, %390 : vector<8x32xf32>
    %392 = vector.extract_strided_slice %275 {offsets = [8, 0], sizes = [16, 32], strides = [1, 1]} : vector<24x32xf32> to vector<16x32xf32>
    %c0_207 = arith.constant 0 : index
    %c0_208 = arith.constant 0 : index
    %c0_209 = arith.constant 0 : index
    %393 = vector.load %arg5[%c0_207, %c0_208, %c0_209] : memref<2x24x32xf32, #tpu.memory_space<vmem>>, vector<1x16x32xf32>
    %394 = vector.shape_cast %393 : vector<1x16x32xf32> to vector<16x32xf32>
    %395 = vector.shape_cast %392 : vector<16x32xf32> to vector<1x16x32xf32>
    tpu.vector_store %arg5[%c0_207, %c0_208, %c0_209], %395 {strides = array<i32>} : memref<2x24x32xf32, #tpu.memory_space<vmem>>, vector<1x16x32xf32>,
    %c1_210 = arith.constant 1 : index
    %c16_211 = arith.constant 16 : index
    %c0_212 = arith.constant 0 : index
    %396 = vector.load %arg5[%c1_210, %c16_211, %c0_212] : memref<2x24x32xf32, #tpu.memory_space<vmem>>, vector<1x8x32xf32>
    %397 = vector.shape_cast %396 : vector<1x8x32xf32> to vector<8x32xf32>
    %398 = vector.shape_cast %391 : vector<8x32xf32> to vector<1x8x32xf32>
    tpu.vector_store %arg5[%c1_210, %c16_211, %c0_212], %398 {strides = array<i32>} : memref<2x24x32xf32, #tpu.memory_space<vmem>>, vector<1x8x32xf32>,
    %c1_213 = arith.constant 1 : index
    %c0_214 = arith.constant 0 : index
    %c0_215 = arith.constant 0 : index
    %399 = vector.load %arg5[%c1_213, %c0_214, %c0_215] : memref<2x24x32xf32, #tpu.memory_space<vmem>>, vector<1x24x32xf32>
    %400 = vector.shape_cast %399 : vector<1x24x32xf32> to vector<24x32xf32>
    %c0_216 = arith.constant 0 : index
    %c1_217 = arith.constant 1 : index
    %c0_218 = arith.constant 0 : index
    %c0_219 = arith.constant 0 : index
    %401 = vector.load %arg2[%c0_216, %c1_217, %c0_218, %c0_219] : memref<1x2x232x32xf32, #tpu.memory_space<vmem>>, vector<1x1x32x32xf32>
    %402 = vector.shape_cast %401 : vector<1x1x32x32xf32> to vector<32x32xf32>
    %c0_220 = arith.constant 0 : index
    %c1_221 = arith.constant 1 : index
    %c32_222 = arith.constant 32 : index
    %c0_223 = arith.constant 0 : index
    %403 = vector.load %arg2[%c0_220, %c1_221, %c32_222, %c0_223] : memref<1x2x232x32xf32, #tpu.memory_space<vmem>>, vector<1x1x32x32xf32>
    %404 = vector.shape_cast %403 : vector<1x1x32x32xf32> to vector<32x32xf32>
    %c0_224 = arith.constant 0 : index
    %c1_225 = arith.constant 1 : index
    %c64_226 = arith.constant 64 : index
    %c0_227 = arith.constant 0 : index
    %405 = vector.load %arg2[%c0_224, %c1_225, %c64_226, %c0_227] : memref<1x2x232x32xf32, #tpu.memory_space<vmem>>, vector<1x1x32x32xf32>
    %406 = vector.shape_cast %405 : vector<1x1x32x32xf32> to vector<32x32xf32>
    %c0_228 = arith.constant 0 : index
    %c1_229 = arith.constant 1 : index
    %c96_230 = arith.constant 96 : index
    %c0_231 = arith.constant 0 : index
    %407 = vector.load %arg2[%c0_228, %c1_229, %c96_230, %c0_231] : memref<1x2x232x32xf32, #tpu.memory_space<vmem>>, vector<1x1x32x32xf32>
    %408 = vector.shape_cast %407 : vector<1x1x32x32xf32> to vector<32x32xf32>
    %c0_232 = arith.constant 0 : index
    %c1_233 = arith.constant 1 : index
    %c128_234 = arith.constant 128 : index
    %c0_235 = arith.constant 0 : index
    %409 = vector.load %arg2[%c0_232, %c1_233, %c128_234, %c0_235] : memref<1x2x232x32xf32, #tpu.memory_space<vmem>>, vector<1x1x64x32xf32>
    %410 = vector.shape_cast %409 : vector<1x1x64x32xf32> to vector<64x32xf32>
    %c0_236 = arith.constant 0 : index
    %c1_237 = arith.constant 1 : index
    %c192_238 = arith.constant 192 : index
    %c0_239 = arith.constant 0 : index
    %411 = vector.load %arg2[%c0_236, %c1_237, %c192_238, %c0_239] : memref<1x2x232x32xf32, #tpu.memory_space<vmem>>, vector<1x1x24x32xf32>
    %412 = vector.shape_cast %411 : vector<1x1x24x32xf32> to vector<24x32xf32>
    %c0_240 = arith.constant 0 : index
    %c1_241 = arith.constant 1 : index
    %c216_242 = arith.constant 216 : index
    %c0_243 = arith.constant 0 : index
    %413 = vector.load %arg2[%c0_240, %c1_241, %c216_242, %c0_243] : memref<1x2x232x32xf32, #tpu.memory_space<vmem>>, vector<1x1x16x32xf32>
    %414 = vector.shape_cast %413 : vector<1x1x16x32xf32> to vector<16x32xf32>
    %415 = vector.extract_strided_slice %414 {offsets = [0, 0], sizes = [1, 32], strides = [1, 1]} : vector<16x32xf32> to vector<1x32xf32>
    %416 = vector.extract_strided_slice %414 {offsets = [1, 0], sizes = [1, 32], strides = [1, 1]} : vector<16x32xf32> to vector<1x32xf32>
    %417 = vector.extract_strided_slice %414 {offsets = [2, 0], sizes = [1, 32], strides = [1, 1]} : vector<16x32xf32> to vector<1x32xf32>
    %418 = vector.extract_strided_slice %414 {offsets = [3, 0], sizes = [1, 32], strides = [1, 1]} : vector<16x32xf32> to vector<1x32xf32>
    %419 = vector.extract_strided_slice %414 {offsets = [4, 0], sizes = [1, 32], strides = [1, 1]} : vector<16x32xf32> to vector<1x32xf32>
    %420 = vector.extract_strided_slice %414 {offsets = [5, 0], sizes = [1, 32], strides = [1, 1]} : vector<16x32xf32> to vector<1x32xf32>
    %421 = vector.extract_strided_slice %414 {offsets = [6, 0], sizes = [1, 32], strides = [1, 1]} : vector<16x32xf32> to vector<1x32xf32>
    %422 = vector.extract_strided_slice %414 {offsets = [7, 0], sizes = [1, 32], strides = [1, 1]} : vector<16x32xf32> to vector<1x32xf32>
    %423 = vector.extract_strided_slice %414 {offsets = [8, 0], sizes = [1, 32], strides = [1, 1]} : vector<16x32xf32> to vector<1x32xf32>
    %424 = vector.extract_strided_slice %414 {offsets = [9, 0], sizes = [1, 32], strides = [1, 1]} : vector<16x32xf32> to vector<1x32xf32>
    %425 = vector.extract_strided_slice %414 {offsets = [10, 0], sizes = [1, 32], strides = [1, 1]} : vector<16x32xf32> to vector<1x32xf32>
    %c0_244 = arith.constant 0 : index
    %c1_245 = arith.constant 1 : index
    %c0_246 = arith.constant 0 : index
    %c0_247 = arith.constant 0 : index
    %426 = vector.load %arg3[%c0_244, %c1_245, %c0_246, %c0_247] : memref<1x2x40x64xf32, #tpu.memory_space<vmem>>, vector<1x1x32x64xf32>
    %427 = vector.shape_cast %426 : vector<1x1x32x64xf32> to vector<32x64xf32>
    %c0_248 = arith.constant 0 : index
    %c1_249 = arith.constant 1 : index
    %c32_250 = arith.constant 32 : index
    %c0_251 = arith.constant 0 : index
    %428 = vector.load %arg3[%c0_248, %c1_249, %c32_250, %c0_251] : memref<1x2x40x64xf32, #tpu.memory_space<vmem>>, vector<1x1x1x64xf32>
    %429 = vector.shape_cast %428 : vector<1x1x1x64xf32> to vector<1x64xf32>
    %cst_252 = arith.constant dense<0.000000e+00> : vector<8x32xf32>
    %430 = tpu.matmul %391, %402, %cst_252 {dimension_numbers = #tpu.dot_dimension_numbers<[1], [0], [0], [1], [0, 0, 1, 1], [], []>} : vector<8x32xf32>, vector<32x32xf32>, vector<8x32xf32> -> vector<8x32xf32>
    %431 = vector.broadcast %415 : vector<1x32xf32> to vector<8x32xf32>
    %432 = arith.addf %430, %431 : vector<8x32xf32>
    %cst_253 = arith.constant dense<0.000000e+00> : vector<24x32xf32>
    %433 = tpu.matmul %400, %404, %cst_253 {dimension_numbers = #tpu.dot_dimension_numbers<[1], [0], [0], [1], [0, 0, 1, 1], [], []>} : vector<24x32xf32>, vector<32x32xf32>, vector<24x32xf32> -> vector<24x32xf32>
    %434 = vector.broadcast %416 : vector<1x32xf32> to vector<24x32xf32>
    %435 = arith.addf %433, %434 : vector<24x32xf32>
    %cst_254 = arith.constant dense<0.000000e+00> : vector<24x32xf32>
    %436 = tpu.matmul %400, %406, %cst_254 {dimension_numbers = #tpu.dot_dimension_numbers<[1], [0], [0], [1], [0, 0, 1, 1], [], []>} : vector<24x32xf32>, vector<32x32xf32>, vector<24x32xf32> -> vector<24x32xf32>
    %437 = vector.broadcast %417 : vector<1x32xf32> to vector<24x32xf32>
    %438 = arith.addf %436, %437 : vector<24x32xf32>
    %439 = vector.broadcast %424 : vector<1x32xf32> to vector<8x32xf32>
    %440 = arith.addf %432, %439 : vector<8x32xf32>
    %cst_255 = arith.constant dense<0.000000e+00> : vector<8x24xf32>
    %441 = tpu.matmul %440, %435, %cst_255 {dimension_numbers = #tpu.dot_dimension_numbers<[1], [1], [0], [0], [0, 0, 1, 0], [], []>} : vector<8x32xf32>, vector<24x32xf32>, vector<8x24xf32> -> vector<8x24xf32>
    %442 = vector.broadcast %425 : vector<1x32xf32> to vector<8x32xf32>
    %443 = arith.addf %432, %442 : vector<8x32xf32>
    %cst_256 = arith.constant dense<0.000000e+00> : vector<8x24xf32>
    %444 = tpu.matmul %443, %412, %cst_256 {dimension_numbers = #tpu.dot_dimension_numbers<[1], [1], [0], [0], [0, 0, 1, 0], [], []>} : vector<8x32xf32>, vector<24x32xf32>, vector<8x24xf32> -> vector<8x24xf32>
    %445 = arith.addf %441, %444 : vector<8x24xf32>
    %cst_257 = arith.constant 0.176776692 : f32
    %446 = vector.broadcast %cst_257 : f32 to vector<8x24xf32>
    %447 = arith.mulf %445, %446 : vector<8x24xf32>
    %448 = arith.addf %447, %270 : vector<8x24xf32>
    %cst_258 = arith.constant dense<0xFF800000> : vector<8xf32>
    %449 = vector.multi_reduction <maximumf>, %448, %cst_258 [1] : vector<8x24xf32> to vector<8xf32>
    %450 = vector.shape_cast %449 : vector<8xf32> to vector<8x1xf32>
    %451 = vector.broadcast %450 : vector<8x1xf32> to vector<8x24xf32>
    %452 = arith.subf %448, %451 : vector<8x24xf32>
    %453 = math.exp %452 : vector<8x24xf32>
    %cst_259 = arith.constant dense<0.000000e+00> : vector<8xf32>
    %454 = vector.multi_reduction <add>, %453, %cst_259 [1] : vector<8x24xf32> to vector<8xf32>
    %455 = vector.shape_cast %454 : vector<8xf32> to vector<8x1xf32>
    %456 = tpu.reciprocal %455 {approx = true} : vector<8x1xf32> -> vector<8x1xf32>
    %457 = vector.broadcast %456 : vector<8x1xf32> to vector<8x24xf32>
    %458 = arith.mulf %453, %457 : vector<8x24xf32>
    %cst_260 = arith.constant dense<0.000000e+00> : vector<8x32xf32>
    %459 = tpu.matmul %458, %438, %cst_260 {dimension_numbers = #tpu.dot_dimension_numbers<[1], [0], [0], [1], [0, 0, 1, 1], [], []>} : vector<8x24xf32>, vector<24x32xf32>, vector<8x32xf32> -> vector<8x32xf32>
    %cst_261 = arith.constant dense<0.000000e+00> : vector<8x32xf32>
    %460 = tpu.matmul %459, %408, %cst_261 {dimension_numbers = #tpu.dot_dimension_numbers<[1], [0], [0], [1], [0, 0, 1, 1], [], []>} : vector<8x32xf32>, vector<32x32xf32>, vector<8x32xf32> -> vector<8x32xf32>
    %461 = vector.broadcast %418 : vector<1x32xf32> to vector<8x32xf32>
    %462 = arith.addf %460, %461 : vector<8x32xf32>
    %463 = arith.addf %391, %462 : vector<8x32xf32>
    %cst_262 = arith.constant dense<0.000000e+00> : vector<8xf32>
    %464 = vector.multi_reduction <add>, %463, %cst_262 [1] : vector<8x32xf32> to vector<8xf32>
    %465 = vector.shape_cast %464 : vector<8xf32> to vector<8x1xf32>
    %cst_263 = arith.constant 3.200000e+01 : f32
    %466 = vector.broadcast %cst_263 : f32 to vector<8x1xf32>
    %467 = arith.divf %465, %466 : vector<8x1xf32>
    %468 = vector.broadcast %467 : vector<8x1xf32> to vector<8x32xf32>
    %469 = arith.subf %463, %468 : vector<8x32xf32>
    %470 = arith.mulf %469, %469 : vector<8x32xf32>
    %cst_264 = arith.constant dense<0.000000e+00> : vector<8xf32>
    %471 = vector.multi_reduction <add>, %470, %cst_264 [1] : vector<8x32xf32> to vector<8xf32>
    %472 = vector.shape_cast %471 : vector<8xf32> to vector<8x1xf32>
    %cst_265 = arith.constant 3.200000e+01 : f32
    %473 = vector.broadcast %cst_265 : f32 to vector<8x1xf32>
    %474 = arith.divf %472, %473 : vector<8x1xf32>
    %475 = vector.broadcast %467 : vector<8x1xf32> to vector<8x32xf32>
    %476 = arith.subf %463, %475 : vector<8x32xf32>
    %cst_266 = arith.constant 9.99999974E-6 : f32
    %477 = vector.broadcast %cst_266 : f32 to vector<8x1xf32>
    %478 = arith.addf %474, %477 : vector<8x1xf32>
    %479 = math.rsqrt %478 : vector<8x1xf32>
    %480 = vector.broadcast %479 : vector<8x1xf32> to vector<8x32xf32>
    %481 = arith.mulf %476, %480 : vector<8x32xf32>
    %482 = vector.broadcast %419 : vector<1x32xf32> to vector<8x32xf32>
    %483 = arith.mulf %481, %482 : vector<8x32xf32>
    %484 = vector.broadcast %420 : vector<1x32xf32> to vector<8x32xf32>
    %485 = arith.addf %483, %484 : vector<8x32xf32>
    %cst_267 = arith.constant dense<0.000000e+00> : vector<8x64xf32>
    %486 = tpu.matmul %485, %427, %cst_267 {dimension_numbers = #tpu.dot_dimension_numbers<[1], [0], [0], [1], [0, 0, 1, 1], [], []>} : vector<8x32xf32>, vector<32x64xf32>, vector<8x64xf32> -> vector<8x64xf32>
    %487 = vector.broadcast %429 : vector<1x64xf32> to vector<8x64xf32>
    %488 = arith.addf %486, %487 : vector<8x64xf32>
    %cst_268 = arith.constant 0.000000e+00 : f32
    %489 = vector.broadcast %cst_268 : f32 to vector<8x64xf32>
    %490 = arith.maximumf %488, %489 : vector<8x64xf32>
    %cst_269 = arith.constant dense<0.000000e+00> : vector<8x32xf32>
    %491 = tpu.matmul %490, %410, %cst_269 {dimension_numbers = #tpu.dot_dimension_numbers<[1], [0], [0], [1], [0, 0, 1, 1], [], []>} : vector<8x64xf32>, vector<64x32xf32>, vector<8x32xf32> -> vector<8x32xf32>
    %492 = vector.broadcast %421 : vector<1x32xf32> to vector<8x32xf32>
    %493 = arith.addf %491, %492 : vector<8x32xf32>
    %494 = arith.addf %485, %493 : vector<8x32xf32>
    %cst_270 = arith.constant dense<0.000000e+00> : vector<8xf32>
    %495 = vector.multi_reduction <add>, %494, %cst_270 [1] : vector<8x32xf32> to vector<8xf32>
    %496 = vector.shape_cast %495 : vector<8xf32> to vector<8x1xf32>
    %cst_271 = arith.constant 3.200000e+01 : f32
    %497 = vector.broadcast %cst_271 : f32 to vector<8x1xf32>
    %498 = arith.divf %496, %497 : vector<8x1xf32>
    %499 = vector.broadcast %498 : vector<8x1xf32> to vector<8x32xf32>
    %500 = arith.subf %494, %499 : vector<8x32xf32>
    %501 = arith.mulf %500, %500 : vector<8x32xf32>
    %cst_272 = arith.constant dense<0.000000e+00> : vector<8xf32>
    %502 = vector.multi_reduction <add>, %501, %cst_272 [1] : vector<8x32xf32> to vector<8xf32>
    %503 = vector.shape_cast %502 : vector<8xf32> to vector<8x1xf32>
    %cst_273 = arith.constant 3.200000e+01 : f32
    %504 = vector.broadcast %cst_273 : f32 to vector<8x1xf32>
    %505 = arith.divf %503, %504 : vector<8x1xf32>
    %506 = vector.broadcast %498 : vector<8x1xf32> to vector<8x32xf32>
    %507 = arith.subf %494, %506 : vector<8x32xf32>
    %cst_274 = arith.constant 9.99999974E-6 : f32
    %508 = vector.broadcast %cst_274 : f32 to vector<8x1xf32>
    %509 = arith.addf %505, %508 : vector<8x1xf32>
    %510 = math.rsqrt %509 : vector<8x1xf32>
    %511 = vector.broadcast %510 : vector<8x1xf32> to vector<8x32xf32>
    %512 = arith.mulf %507, %511 : vector<8x32xf32>
    %513 = vector.broadcast %422 : vector<1x32xf32> to vector<8x32xf32>
    %514 = arith.mulf %512, %513 : vector<8x32xf32>
    %515 = vector.broadcast %423 : vector<1x32xf32> to vector<8x32xf32>
    %516 = arith.addf %514, %515 : vector<8x32xf32>
    %517 = vector.extract_strided_slice %400 {offsets = [8, 0], sizes = [16, 32], strides = [1, 1]} : vector<24x32xf32> to vector<16x32xf32>
    %c1_275 = arith.constant 1 : index
    %c0_276 = arith.constant 0 : index
    %c0_277 = arith.constant 0 : index
    %518 = vector.load %arg5[%c1_275, %c0_276, %c0_277] : memref<2x24x32xf32, #tpu.memory_space<vmem>>, vector<1x16x32xf32>
    %519 = vector.shape_cast %518 : vector<1x16x32xf32> to vector<16x32xf32>
    %520 = vector.shape_cast %517 : vector<16x32xf32> to vector<1x16x32xf32>
    tpu.vector_store %arg5[%c1_275, %c0_276, %c0_277], %520 {strides = array<i32>} : memref<2x24x32xf32, #tpu.memory_space<vmem>>, vector<1x16x32xf32>,
    %c0_278 = arith.constant 0 : index
    %c8_279 = arith.constant 8 : index
    %c0_280 = arith.constant 0 : index
    %521 = vector.load %arg4[%c0_278, %c8_279, %c0_280] : memref<1x24x32xf32, #tpu.memory_space<vmem>>, vector<1x8x32xf32>
    %522 = vector.shape_cast %521 : vector<1x8x32xf32> to vector<8x32xf32>
    %523 = vector.shape_cast %516 : vector<8x32xf32> to vector<1x8x32xf32>
    tpu.vector_store %arg4[%c0_278, %c8_279, %c0_280], %523 {strides = array<i32>} : memref<1x24x32xf32, #tpu.memory_space<vmem>>, vector<1x8x32xf32>,
    %c0_281 = arith.constant 0 : index
    %c16_282 = arith.constant 16 : index
    %c0_283 = arith.constant 0 : index
    %524 = vector.load %arg1[%c0_281, %c16_282, %c0_283] : memref<1x24x32xf32, #tpu.memory_space<vmem>>, vector<1x8x32xf32>
    %525 = vector.shape_cast %524 : vector<1x8x32xf32> to vector<8x32xf32>
    %c0_284 = arith.constant 0 : index
    %c16_285 = arith.constant 16 : index
    %c0_286 = arith.constant 0 : index
    %526 = vector.load %arg5[%c0_284, %c16_285, %c0_286] : memref<2x24x32xf32, #tpu.memory_space<vmem>>, vector<1x8x32xf32>
    %527 = vector.shape_cast %526 : vector<1x8x32xf32> to vector<8x32xf32>
    %528 = vector.shape_cast %525 : vector<8x32xf32> to vector<1x8x32xf32>
    tpu.vector_store %arg5[%c0_284, %c16_285, %c0_286], %528 {strides = array<i32>} : memref<2x24x32xf32, #tpu.memory_space<vmem>>, vector<1x8x32xf32>,
    %c0_287 = arith.constant 0 : index
    %c0_288 = arith.constant 0 : index
    %c0_289 = arith.constant 0 : index
    %529 = vector.load %arg5[%c0_287, %c0_288, %c0_289] : memref<2x24x32xf32, #tpu.memory_space<vmem>>, vector<1x24x32xf32>
    %530 = vector.shape_cast %529 : vector<1x24x32xf32> to vector<24x32xf32>
    %c0_290 = arith.constant 0 : index
    %c0_291 = arith.constant 0 : index
    %c0_292 = arith.constant 0 : index
    %c0_293 = arith.constant 0 : index
    %531 = vector.load %arg2[%c0_290, %c0_291, %c0_292, %c0_293] : memref<1x2x232x32xf32, #tpu.memory_space<vmem>>, vector<1x1x32x32xf32>
    %532 = vector.shape_cast %531 : vector<1x1x32x32xf32> to vector<32x32xf32>
    %c0_294 = arith.constant 0 : index
    %c0_295 = arith.constant 0 : index
    %c32_296 = arith.constant 32 : index
    %c0_297 = arith.constant 0 : index
    %533 = vector.load %arg2[%c0_294, %c0_295, %c32_296, %c0_297] : memref<1x2x232x32xf32, #tpu.memory_space<vmem>>, vector<1x1x32x32xf32>
    %534 = vector.shape_cast %533 : vector<1x1x32x32xf32> to vector<32x32xf32>
    %c0_298 = arith.constant 0 : index
    %c0_299 = arith.constant 0 : index
    %c64_300 = arith.constant 64 : index
    %c0_301 = arith.constant 0 : index
    %535 = vector.load %arg2[%c0_298, %c0_299, %c64_300, %c0_301] : memref<1x2x232x32xf32, #tpu.memory_space<vmem>>, vector<1x1x32x32xf32>
    %536 = vector.shape_cast %535 : vector<1x1x32x32xf32> to vector<32x32xf32>
    %c0_302 = arith.constant 0 : index
    %c0_303 = arith.constant 0 : index
    %c96_304 = arith.constant 96 : index
    %c0_305 = arith.constant 0 : index
    %537 = vector.load %arg2[%c0_302, %c0_303, %c96_304, %c0_305] : memref<1x2x232x32xf32, #tpu.memory_space<vmem>>, vector<1x1x32x32xf32>
    %538 = vector.shape_cast %537 : vector<1x1x32x32xf32> to vector<32x32xf32>
    %c0_306 = arith.constant 0 : index
    %c0_307 = arith.constant 0 : index
    %c128_308 = arith.constant 128 : index
    %c0_309 = arith.constant 0 : index
    %539 = vector.load %arg2[%c0_306, %c0_307, %c128_308, %c0_309] : memref<1x2x232x32xf32, #tpu.memory_space<vmem>>, vector<1x1x64x32xf32>
    %540 = vector.shape_cast %539 : vector<1x1x64x32xf32> to vector<64x32xf32>
    %c0_310 = arith.constant 0 : index
    %c0_311 = arith.constant 0 : index
    %c192_312 = arith.constant 192 : index
    %c0_313 = arith.constant 0 : index
    %541 = vector.load %arg2[%c0_310, %c0_311, %c192_312, %c0_313] : memref<1x2x232x32xf32, #tpu.memory_space<vmem>>, vector<1x1x24x32xf32>
    %542 = vector.shape_cast %541 : vector<1x1x24x32xf32> to vector<24x32xf32>
    %c0_314 = arith.constant 0 : index
    %c0_315 = arith.constant 0 : index
    %c216_316 = arith.constant 216 : index
    %c0_317 = arith.constant 0 : index
    %543 = vector.load %arg2[%c0_314, %c0_315, %c216_316, %c0_317] : memref<1x2x232x32xf32, #tpu.memory_space<vmem>>, vector<1x1x16x32xf32>
    %544 = vector.shape_cast %543 : vector<1x1x16x32xf32> to vector<16x32xf32>
    %545 = vector.extract_strided_slice %544 {offsets = [0, 0], sizes = [1, 32], strides = [1, 1]} : vector<16x32xf32> to vector<1x32xf32>
    %546 = vector.extract_strided_slice %544 {offsets = [1, 0], sizes = [1, 32], strides = [1, 1]} : vector<16x32xf32> to vector<1x32xf32>
    %547 = vector.extract_strided_slice %544 {offsets = [2, 0], sizes = [1, 32], strides = [1, 1]} : vector<16x32xf32> to vector<1x32xf32>
    %548 = vector.extract_strided_slice %544 {offsets = [3, 0], sizes = [1, 32], strides = [1, 1]} : vector<16x32xf32> to vector<1x32xf32>
    %549 = vector.extract_strided_slice %544 {offsets = [4, 0], sizes = [1, 32], strides = [1, 1]} : vector<16x32xf32> to vector<1x32xf32>
    %550 = vector.extract_strided_slice %544 {offsets = [5, 0], sizes = [1, 32], strides = [1, 1]} : vector<16x32xf32> to vector<1x32xf32>
    %551 = vector.extract_strided_slice %544 {offsets = [6, 0], sizes = [1, 32], strides = [1, 1]} : vector<16x32xf32> to vector<1x32xf32>
    %552 = vector.extract_strided_slice %544 {offsets = [7, 0], sizes = [1, 32], strides = [1, 1]} : vector<16x32xf32> to vector<1x32xf32>
    %553 = vector.extract_strided_slice %544 {offsets = [8, 0], sizes = [1, 32], strides = [1, 1]} : vector<16x32xf32> to vector<1x32xf32>
    %554 = vector.extract_strided_slice %544 {offsets = [9, 0], sizes = [1, 32], strides = [1, 1]} : vector<16x32xf32> to vector<1x32xf32>
    %555 = vector.extract_strided_slice %544 {offsets = [10, 0], sizes = [1, 32], strides = [1, 1]} : vector<16x32xf32> to vector<1x32xf32>
    %c0_318 = arith.constant 0 : index
    %c0_319 = arith.constant 0 : index
    %c0_320 = arith.constant 0 : index
    %c0_321 = arith.constant 0 : index
    %556 = vector.load %arg3[%c0_318, %c0_319, %c0_320, %c0_321] : memref<1x2x40x64xf32, #tpu.memory_space<vmem>>, vector<1x1x32x64xf32>
    %557 = vector.shape_cast %556 : vector<1x1x32x64xf32> to vector<32x64xf32>
    %c0_322 = arith.constant 0 : index
    %c0_323 = arith.constant 0 : index
    %c32_324 = arith.constant 32 : index
    %c0_325 = arith.constant 0 : index
    %558 = vector.load %arg3[%c0_322, %c0_323, %c32_324, %c0_325] : memref<1x2x40x64xf32, #tpu.memory_space<vmem>>, vector<1x1x1x64xf32>
    %559 = vector.shape_cast %558 : vector<1x1x1x64xf32> to vector<1x64xf32>
    %cst_326 = arith.constant dense<0.000000e+00> : vector<8x32xf32>
    %560 = tpu.matmul %525, %532, %cst_326 {dimension_numbers = #tpu.dot_dimension_numbers<[1], [0], [0], [1], [0, 0, 1, 1], [], []>} : vector<8x32xf32>, vector<32x32xf32>, vector<8x32xf32> -> vector<8x32xf32>
    %561 = vector.broadcast %545 : vector<1x32xf32> to vector<8x32xf32>
    %562 = arith.addf %560, %561 : vector<8x32xf32>
    %cst_327 = arith.constant dense<0.000000e+00> : vector<24x32xf32>
    %563 = tpu.matmul %530, %534, %cst_327 {dimension_numbers = #tpu.dot_dimension_numbers<[1], [0], [0], [1], [0, 0, 1, 1], [], []>} : vector<24x32xf32>, vector<32x32xf32>, vector<24x32xf32> -> vector<24x32xf32>
    %564 = vector.broadcast %546 : vector<1x32xf32> to vector<24x32xf32>
    %565 = arith.addf %563, %564 : vector<24x32xf32>
    %cst_328 = arith.constant dense<0.000000e+00> : vector<24x32xf32>
    %566 = tpu.matmul %530, %536, %cst_328 {dimension_numbers = #tpu.dot_dimension_numbers<[1], [0], [0], [1], [0, 0, 1, 1], [], []>} : vector<24x32xf32>, vector<32x32xf32>, vector<24x32xf32> -> vector<24x32xf32>
    %567 = vector.broadcast %547 : vector<1x32xf32> to vector<24x32xf32>
    %568 = arith.addf %566, %567 : vector<24x32xf32>
    %569 = vector.broadcast %554 : vector<1x32xf32> to vector<8x32xf32>
    %570 = arith.addf %562, %569 : vector<8x32xf32>
    %cst_329 = arith.constant dense<0.000000e+00> : vector<8x24xf32>
    %571 = tpu.matmul %570, %565, %cst_329 {dimension_numbers = #tpu.dot_dimension_numbers<[1], [1], [0], [0], [0, 0, 1, 0], [], []>} : vector<8x32xf32>, vector<24x32xf32>, vector<8x24xf32> -> vector<8x24xf32>
    %572 = vector.broadcast %555 : vector<1x32xf32> to vector<8x32xf32>
    %573 = arith.addf %562, %572 : vector<8x32xf32>
    %cst_330 = arith.constant dense<0.000000e+00> : vector<8x24xf32>
    %574 = tpu.matmul %573, %542, %cst_330 {dimension_numbers = #tpu.dot_dimension_numbers<[1], [1], [0], [0], [0, 0, 1, 0], [], []>} : vector<8x32xf32>, vector<24x32xf32>, vector<8x24xf32> -> vector<8x24xf32>
    %575 = arith.addf %571, %574 : vector<8x24xf32>
    %cst_331 = arith.constant 0.176776692 : f32
    %576 = vector.broadcast %cst_331 : f32 to vector<8x24xf32>
    %577 = arith.mulf %575, %576 : vector<8x24xf32>
    %cst_332 = arith.constant dense<0xFF800000> : vector<8xf32>
    %578 = vector.multi_reduction <maximumf>, %577, %cst_332 [1] : vector<8x24xf32> to vector<8xf32>
    %579 = vector.shape_cast %578 : vector<8xf32> to vector<8x1xf32>
    %580 = vector.broadcast %579 : vector<8x1xf32> to vector<8x24xf32>
    %581 = arith.subf %577, %580 : vector<8x24xf32>
    %582 = math.exp %581 : vector<8x24xf32>
    %cst_333 = arith.constant dense<0.000000e+00> : vector<8xf32>
    %583 = vector.multi_reduction <add>, %582, %cst_333 [1] : vector<8x24xf32> to vector<8xf32>
    %584 = vector.shape_cast %583 : vector<8xf32> to vector<8x1xf32>
    %585 = tpu.reciprocal %584 {approx = true} : vector<8x1xf32> -> vector<8x1xf32>
    %586 = vector.broadcast %585 : vector<8x1xf32> to vector<8x24xf32>
    %587 = arith.mulf %582, %586 : vector<8x24xf32>
    %cst_334 = arith.constant dense<0.000000e+00> : vector<8x32xf32>
    %588 = tpu.matmul %587, %568, %cst_334 {dimension_numbers = #tpu.dot_dimension_numbers<[1], [0], [0], [1], [0, 0, 1, 1], [], []>} : vector<8x24xf32>, vector<24x32xf32>, vector<8x32xf32> -> vector<8x32xf32>
    %cst_335 = arith.constant dense<0.000000e+00> : vector<8x32xf32>
    %589 = tpu.matmul %588, %538, %cst_335 {dimension_numbers = #tpu.dot_dimension_numbers<[1], [0], [0], [1], [0, 0, 1, 1], [], []>} : vector<8x32xf32>, vector<32x32xf32>, vector<8x32xf32> -> vector<8x32xf32>
    %590 = vector.broadcast %548 : vector<1x32xf32> to vector<8x32xf32>
    %591 = arith.addf %589, %590 : vector<8x32xf32>
    %592 = arith.addf %525, %591 : vector<8x32xf32>
    %cst_336 = arith.constant dense<0.000000e+00> : vector<8xf32>
    %593 = vector.multi_reduction <add>, %592, %cst_336 [1] : vector<8x32xf32> to vector<8xf32>
    %594 = vector.shape_cast %593 : vector<8xf32> to vector<8x1xf32>
    %cst_337 = arith.constant 3.200000e+01 : f32
    %595 = vector.broadcast %cst_337 : f32 to vector<8x1xf32>
    %596 = arith.divf %594, %595 : vector<8x1xf32>
    %597 = vector.broadcast %596 : vector<8x1xf32> to vector<8x32xf32>
    %598 = arith.subf %592, %597 : vector<8x32xf32>
    %599 = arith.mulf %598, %598 : vector<8x32xf32>
    %cst_338 = arith.constant dense<0.000000e+00> : vector<8xf32>
    %600 = vector.multi_reduction <add>, %599, %cst_338 [1] : vector<8x32xf32> to vector<8xf32>
    %601 = vector.shape_cast %600 : vector<8xf32> to vector<8x1xf32>
    %cst_339 = arith.constant 3.200000e+01 : f32
    %602 = vector.broadcast %cst_339 : f32 to vector<8x1xf32>
    %603 = arith.divf %601, %602 : vector<8x1xf32>
    %604 = vector.broadcast %596 : vector<8x1xf32> to vector<8x32xf32>
    %605 = arith.subf %592, %604 : vector<8x32xf32>
    %cst_340 = arith.constant 9.99999974E-6 : f32
    %606 = vector.broadcast %cst_340 : f32 to vector<8x1xf32>
    %607 = arith.addf %603, %606 : vector<8x1xf32>
    %608 = math.rsqrt %607 : vector<8x1xf32>
    %609 = vector.broadcast %608 : vector<8x1xf32> to vector<8x32xf32>
    %610 = arith.mulf %605, %609 : vector<8x32xf32>
    %611 = vector.broadcast %549 : vector<1x32xf32> to vector<8x32xf32>
    %612 = arith.mulf %610, %611 : vector<8x32xf32>
    %613 = vector.broadcast %550 : vector<1x32xf32> to vector<8x32xf32>
    %614 = arith.addf %612, %613 : vector<8x32xf32>
    %cst_341 = arith.constant dense<0.000000e+00> : vector<8x64xf32>
    %615 = tpu.matmul %614, %557, %cst_341 {dimension_numbers = #tpu.dot_dimension_numbers<[1], [0], [0], [1], [0, 0, 1, 1], [], []>} : vector<8x32xf32>, vector<32x64xf32>, vector<8x64xf32> -> vector<8x64xf32>
    %616 = vector.broadcast %559 : vector<1x64xf32> to vector<8x64xf32>
    %617 = arith.addf %615, %616 : vector<8x64xf32>
    %cst_342 = arith.constant 0.000000e+00 : f32
    %618 = vector.broadcast %cst_342 : f32 to vector<8x64xf32>
    %619 = arith.maximumf %617, %618 : vector<8x64xf32>
    %cst_343 = arith.constant dense<0.000000e+00> : vector<8x32xf32>
    %620 = tpu.matmul %619, %540, %cst_343 {dimension_numbers = #tpu.dot_dimension_numbers<[1], [0], [0], [1], [0, 0, 1, 1], [], []>} : vector<8x64xf32>, vector<64x32xf32>, vector<8x32xf32> -> vector<8x32xf32>
    %621 = vector.broadcast %551 : vector<1x32xf32> to vector<8x32xf32>
    %622 = arith.addf %620, %621 : vector<8x32xf32>
    %623 = arith.addf %614, %622 : vector<8x32xf32>
    %cst_344 = arith.constant dense<0.000000e+00> : vector<8xf32>
    %624 = vector.multi_reduction <add>, %623, %cst_344 [1] : vector<8x32xf32> to vector<8xf32>
    %625 = vector.shape_cast %624 : vector<8xf32> to vector<8x1xf32>
    %cst_345 = arith.constant 3.200000e+01 : f32
    %626 = vector.broadcast %cst_345 : f32 to vector<8x1xf32>
    %627 = arith.divf %625, %626 : vector<8x1xf32>
    %628 = vector.broadcast %627 : vector<8x1xf32> to vector<8x32xf32>
    %629 = arith.subf %623, %628 : vector<8x32xf32>
    %630 = arith.mulf %629, %629 : vector<8x32xf32>
    %cst_346 = arith.constant dense<0.000000e+00> : vector<8xf32>
    %631 = vector.multi_reduction <add>, %630, %cst_346 [1] : vector<8x32xf32> to vector<8xf32>
    %632 = vector.shape_cast %631 : vector<8xf32> to vector<8x1xf32>
    %cst_347 = arith.constant 3.200000e+01 : f32
    %633 = vector.broadcast %cst_347 : f32 to vector<8x1xf32>
    %634 = arith.divf %632, %633 : vector<8x1xf32>
    %635 = vector.broadcast %627 : vector<8x1xf32> to vector<8x32xf32>
    %636 = arith.subf %623, %635 : vector<8x32xf32>
    %cst_348 = arith.constant 9.99999974E-6 : f32
    %637 = vector.broadcast %cst_348 : f32 to vector<8x1xf32>
    %638 = arith.addf %634, %637 : vector<8x1xf32>
    %639 = math.rsqrt %638 : vector<8x1xf32>
    %640 = vector.broadcast %639 : vector<8x1xf32> to vector<8x32xf32>
    %641 = arith.mulf %636, %640 : vector<8x32xf32>
    %642 = vector.broadcast %552 : vector<1x32xf32> to vector<8x32xf32>
    %643 = arith.mulf %641, %642 : vector<8x32xf32>
    %644 = vector.broadcast %553 : vector<1x32xf32> to vector<8x32xf32>
    %645 = arith.addf %643, %644 : vector<8x32xf32>
    %646 = vector.extract_strided_slice %530 {offsets = [8, 0], sizes = [16, 32], strides = [1, 1]} : vector<24x32xf32> to vector<16x32xf32>
    %c0_349 = arith.constant 0 : index
    %c0_350 = arith.constant 0 : index
    %c0_351 = arith.constant 0 : index
    %647 = vector.load %arg5[%c0_349, %c0_350, %c0_351] : memref<2x24x32xf32, #tpu.memory_space<vmem>>, vector<1x16x32xf32>
    %648 = vector.shape_cast %647 : vector<1x16x32xf32> to vector<16x32xf32>
    %649 = vector.shape_cast %646 : vector<16x32xf32> to vector<1x16x32xf32>
    tpu.vector_store %arg5[%c0_349, %c0_350, %c0_351], %649 {strides = array<i32>} : memref<2x24x32xf32, #tpu.memory_space<vmem>>, vector<1x16x32xf32>,
    %c1_352 = arith.constant 1 : index
    %c16_353 = arith.constant 16 : index
    %c0_354 = arith.constant 0 : index
    %650 = vector.load %arg5[%c1_352, %c16_353, %c0_354] : memref<2x24x32xf32, #tpu.memory_space<vmem>>, vector<1x8x32xf32>
    %651 = vector.shape_cast %650 : vector<1x8x32xf32> to vector<8x32xf32>
    %652 = vector.shape_cast %645 : vector<8x32xf32> to vector<1x8x32xf32>
    tpu.vector_store %arg5[%c1_352, %c16_353, %c0_354], %652 {strides = array<i32>} : memref<2x24x32xf32, #tpu.memory_space<vmem>>, vector<1x8x32xf32>,
    %c1_355 = arith.constant 1 : index
    %c0_356 = arith.constant 0 : index
    %c0_357 = arith.constant 0 : index
    %653 = vector.load %arg5[%c1_355, %c0_356, %c0_357] : memref<2x24x32xf32, #tpu.memory_space<vmem>>, vector<1x24x32xf32>
    %654 = vector.shape_cast %653 : vector<1x24x32xf32> to vector<24x32xf32>
    %c0_358 = arith.constant 0 : index
    %c1_359 = arith.constant 1 : index
    %c0_360 = arith.constant 0 : index
    %c0_361 = arith.constant 0 : index
    %655 = vector.load %arg2[%c0_358, %c1_359, %c0_360, %c0_361] : memref<1x2x232x32xf32, #tpu.memory_space<vmem>>, vector<1x1x32x32xf32>
    %656 = vector.shape_cast %655 : vector<1x1x32x32xf32> to vector<32x32xf32>
    %c0_362 = arith.constant 0 : index
    %c1_363 = arith.constant 1 : index
    %c32_364 = arith.constant 32 : index
    %c0_365 = arith.constant 0 : index
    %657 = vector.load %arg2[%c0_362, %c1_363, %c32_364, %c0_365] : memref<1x2x232x32xf32, #tpu.memory_space<vmem>>, vector<1x1x32x32xf32>
    %658 = vector.shape_cast %657 : vector<1x1x32x32xf32> to vector<32x32xf32>
    %c0_366 = arith.constant 0 : index
    %c1_367 = arith.constant 1 : index
    %c64_368 = arith.constant 64 : index
    %c0_369 = arith.constant 0 : index
    %659 = vector.load %arg2[%c0_366, %c1_367, %c64_368, %c0_369] : memref<1x2x232x32xf32, #tpu.memory_space<vmem>>, vector<1x1x32x32xf32>
    %660 = vector.shape_cast %659 : vector<1x1x32x32xf32> to vector<32x32xf32>
    %c0_370 = arith.constant 0 : index
    %c1_371 = arith.constant 1 : index
    %c96_372 = arith.constant 96 : index
    %c0_373 = arith.constant 0 : index
    %661 = vector.load %arg2[%c0_370, %c1_371, %c96_372, %c0_373] : memref<1x2x232x32xf32, #tpu.memory_space<vmem>>, vector<1x1x32x32xf32>
    %662 = vector.shape_cast %661 : vector<1x1x32x32xf32> to vector<32x32xf32>
    %c0_374 = arith.constant 0 : index
    %c1_375 = arith.constant 1 : index
    %c128_376 = arith.constant 128 : index
    %c0_377 = arith.constant 0 : index
    %663 = vector.load %arg2[%c0_374, %c1_375, %c128_376, %c0_377] : memref<1x2x232x32xf32, #tpu.memory_space<vmem>>, vector<1x1x64x32xf32>
    %664 = vector.shape_cast %663 : vector<1x1x64x32xf32> to vector<64x32xf32>
    %c0_378 = arith.constant 0 : index
    %c1_379 = arith.constant 1 : index
    %c192_380 = arith.constant 192 : index
    %c0_381 = arith.constant 0 : index
    %665 = vector.load %arg2[%c0_378, %c1_379, %c192_380, %c0_381] : memref<1x2x232x32xf32, #tpu.memory_space<vmem>>, vector<1x1x24x32xf32>
    %666 = vector.shape_cast %665 : vector<1x1x24x32xf32> to vector<24x32xf32>
    %c0_382 = arith.constant 0 : index
    %c1_383 = arith.constant 1 : index
    %c216_384 = arith.constant 216 : index
    %c0_385 = arith.constant 0 : index
    %667 = vector.load %arg2[%c0_382, %c1_383, %c216_384, %c0_385] : memref<1x2x232x32xf32, #tpu.memory_space<vmem>>, vector<1x1x16x32xf32>
    %668 = vector.shape_cast %667 : vector<1x1x16x32xf32> to vector<16x32xf32>
    %669 = vector.extract_strided_slice %668 {offsets = [0, 0], sizes = [1, 32], strides = [1, 1]} : vector<16x32xf32> to vector<1x32xf32>
    %670 = vector.extract_strided_slice %668 {offsets = [1, 0], sizes = [1, 32], strides = [1, 1]} : vector<16x32xf32> to vector<1x32xf32>
    %671 = vector.extract_strided_slice %668 {offsets = [2, 0], sizes = [1, 32], strides = [1, 1]} : vector<16x32xf32> to vector<1x32xf32>
    %672 = vector.extract_strided_slice %668 {offsets = [3, 0], sizes = [1, 32], strides = [1, 1]} : vector<16x32xf32> to vector<1x32xf32>
    %673 = vector.extract_strided_slice %668 {offsets = [4, 0], sizes = [1, 32], strides = [1, 1]} : vector<16x32xf32> to vector<1x32xf32>
    %674 = vector.extract_strided_slice %668 {offsets = [5, 0], sizes = [1, 32], strides = [1, 1]} : vector<16x32xf32> to vector<1x32xf32>
    %675 = vector.extract_strided_slice %668 {offsets = [6, 0], sizes = [1, 32], strides = [1, 1]} : vector<16x32xf32> to vector<1x32xf32>
    %676 = vector.extract_strided_slice %668 {offsets = [7, 0], sizes = [1, 32], strides = [1, 1]} : vector<16x32xf32> to vector<1x32xf32>
    %677 = vector.extract_strided_slice %668 {offsets = [8, 0], sizes = [1, 32], strides = [1, 1]} : vector<16x32xf32> to vector<1x32xf32>
    %678 = vector.extract_strided_slice %668 {offsets = [9, 0], sizes = [1, 32], strides = [1, 1]} : vector<16x32xf32> to vector<1x32xf32>
    %679 = vector.extract_strided_slice %668 {offsets = [10, 0], sizes = [1, 32], strides = [1, 1]} : vector<16x32xf32> to vector<1x32xf32>
    %c0_386 = arith.constant 0 : index
    %c1_387 = arith.constant 1 : index
    %c0_388 = arith.constant 0 : index
    %c0_389 = arith.constant 0 : index
    %680 = vector.load %arg3[%c0_386, %c1_387, %c0_388, %c0_389] : memref<1x2x40x64xf32, #tpu.memory_space<vmem>>, vector<1x1x32x64xf32>
    %681 = vector.shape_cast %680 : vector<1x1x32x64xf32> to vector<32x64xf32>
    %c0_390 = arith.constant 0 : index
    %c1_391 = arith.constant 1 : index
    %c32_392 = arith.constant 32 : index
    %c0_393 = arith.constant 0 : index
    %682 = vector.load %arg3[%c0_390, %c1_391, %c32_392, %c0_393] : memref<1x2x40x64xf32, #tpu.memory_space<vmem>>, vector<1x1x1x64xf32>
    %683 = vector.shape_cast %682 : vector<1x1x1x64xf32> to vector<1x64xf32>
    %cst_394 = arith.constant dense<0.000000e+00> : vector<8x32xf32>
    %684 = tpu.matmul %645, %656, %cst_394 {dimension_numbers = #tpu.dot_dimension_numbers<[1], [0], [0], [1], [0, 0, 1, 1], [], []>} : vector<8x32xf32>, vector<32x32xf32>, vector<8x32xf32> -> vector<8x32xf32>
    %685 = vector.broadcast %669 : vector<1x32xf32> to vector<8x32xf32>
    %686 = arith.addf %684, %685 : vector<8x32xf32>
    %cst_395 = arith.constant dense<0.000000e+00> : vector<24x32xf32>
    %687 = tpu.matmul %654, %658, %cst_395 {dimension_numbers = #tpu.dot_dimension_numbers<[1], [0], [0], [1], [0, 0, 1, 1], [], []>} : vector<24x32xf32>, vector<32x32xf32>, vector<24x32xf32> -> vector<24x32xf32>
    %688 = vector.broadcast %670 : vector<1x32xf32> to vector<24x32xf32>
    %689 = arith.addf %687, %688 : vector<24x32xf32>
    %cst_396 = arith.constant dense<0.000000e+00> : vector<24x32xf32>
    %690 = tpu.matmul %654, %660, %cst_396 {dimension_numbers = #tpu.dot_dimension_numbers<[1], [0], [0], [1], [0, 0, 1, 1], [], []>} : vector<24x32xf32>, vector<32x32xf32>, vector<24x32xf32> -> vector<24x32xf32>
    %691 = vector.broadcast %671 : vector<1x32xf32> to vector<24x32xf32>
    %692 = arith.addf %690, %691 : vector<24x32xf32>
    %693 = vector.broadcast %678 : vector<1x32xf32> to vector<8x32xf32>
    %694 = arith.addf %686, %693 : vector<8x32xf32>
    %cst_397 = arith.constant dense<0.000000e+00> : vector<8x24xf32>
    %695 = tpu.matmul %694, %689, %cst_397 {dimension_numbers = #tpu.dot_dimension_numbers<[1], [1], [0], [0], [0, 0, 1, 0], [], []>} : vector<8x32xf32>, vector<24x32xf32>, vector<8x24xf32> -> vector<8x24xf32>
    %696 = vector.broadcast %679 : vector<1x32xf32> to vector<8x32xf32>
    %697 = arith.addf %686, %696 : vector<8x32xf32>
    %cst_398 = arith.constant dense<0.000000e+00> : vector<8x24xf32>
    %698 = tpu.matmul %697, %666, %cst_398 {dimension_numbers = #tpu.dot_dimension_numbers<[1], [1], [0], [0], [0, 0, 1, 0], [], []>} : vector<8x32xf32>, vector<24x32xf32>, vector<8x24xf32> -> vector<8x24xf32>
    %699 = arith.addf %695, %698 : vector<8x24xf32>
    %cst_399 = arith.constant 0.176776692 : f32
    %700 = vector.broadcast %cst_399 : f32 to vector<8x24xf32>
    %701 = arith.mulf %699, %700 : vector<8x24xf32>
    %cst_400 = arith.constant dense<0xFF800000> : vector<8xf32>
    %702 = vector.multi_reduction <maximumf>, %701, %cst_400 [1] : vector<8x24xf32> to vector<8xf32>
    %703 = vector.shape_cast %702 : vector<8xf32> to vector<8x1xf32>
    %704 = vector.broadcast %703 : vector<8x1xf32> to vector<8x24xf32>
    %705 = arith.subf %701, %704 : vector<8x24xf32>
    %706 = math.exp %705 : vector<8x24xf32>
    %cst_401 = arith.constant dense<0.000000e+00> : vector<8xf32>
    %707 = vector.multi_reduction <add>, %706, %cst_401 [1] : vector<8x24xf32> to vector<8xf32>
    %708 = vector.shape_cast %707 : vector<8xf32> to vector<8x1xf32>
    %709 = tpu.reciprocal %708 {approx = true} : vector<8x1xf32> -> vector<8x1xf32>
    %710 = vector.broadcast %709 : vector<8x1xf32> to vector<8x24xf32>
    %711 = arith.mulf %706, %710 : vector<8x24xf32>
    %cst_402 = arith.constant dense<0.000000e+00> : vector<8x32xf32>
    %712 = tpu.matmul %711, %692, %cst_402 {dimension_numbers = #tpu.dot_dimension_numbers<[1], [0], [0], [1], [0, 0, 1, 1], [], []>} : vector<8x24xf32>, vector<24x32xf32>, vector<8x32xf32> -> vector<8x32xf32>
    %cst_403 = arith.constant dense<0.000000e+00> : vector<8x32xf32>
    %713 = tpu.matmul %712, %662, %cst_403 {dimension_numbers = #tpu.dot_dimension_numbers<[1], [0], [0], [1], [0, 0, 1, 1], [], []>} : vector<8x32xf32>, vector<32x32xf32>, vector<8x32xf32> -> vector<8x32xf32>
    %714 = vector.broadcast %672 : vector<1x32xf32> to vector<8x32xf32>
    %715 = arith.addf %713, %714 : vector<8x32xf32>
    %716 = arith.addf %645, %715 : vector<8x32xf32>
    %cst_404 = arith.constant dense<0.000000e+00> : vector<8xf32>
    %717 = vector.multi_reduction <add>, %716, %cst_404 [1] : vector<8x32xf32> to vector<8xf32>
    %718 = vector.shape_cast %717 : vector<8xf32> to vector<8x1xf32>
    %cst_405 = arith.constant 3.200000e+01 : f32
    %719 = vector.broadcast %cst_405 : f32 to vector<8x1xf32>
    %720 = arith.divf %718, %719 : vector<8x1xf32>
    %721 = vector.broadcast %720 : vector<8x1xf32> to vector<8x32xf32>
    %722 = arith.subf %716, %721 : vector<8x32xf32>
    %723 = arith.mulf %722, %722 : vector<8x32xf32>
    %cst_406 = arith.constant dense<0.000000e+00> : vector<8xf32>
    %724 = vector.multi_reduction <add>, %723, %cst_406 [1] : vector<8x32xf32> to vector<8xf32>
    %725 = vector.shape_cast %724 : vector<8xf32> to vector<8x1xf32>
    %cst_407 = arith.constant 3.200000e+01 : f32
    %726 = vector.broadcast %cst_407 : f32 to vector<8x1xf32>
    %727 = arith.divf %725, %726 : vector<8x1xf32>
    %728 = vector.broadcast %720 : vector<8x1xf32> to vector<8x32xf32>
    %729 = arith.subf %716, %728 : vector<8x32xf32>
    %cst_408 = arith.constant 9.99999974E-6 : f32
    %730 = vector.broadcast %cst_408 : f32 to vector<8x1xf32>
    %731 = arith.addf %727, %730 : vector<8x1xf32>
    %732 = math.rsqrt %731 : vector<8x1xf32>
    %733 = vector.broadcast %732 : vector<8x1xf32> to vector<8x32xf32>
    %734 = arith.mulf %729, %733 : vector<8x32xf32>
    %735 = vector.broadcast %673 : vector<1x32xf32> to vector<8x32xf32>
    %736 = arith.mulf %734, %735 : vector<8x32xf32>
    %737 = vector.broadcast %674 : vector<1x32xf32> to vector<8x32xf32>
    %738 = arith.addf %736, %737 : vector<8x32xf32>
    %cst_409 = arith.constant dense<0.000000e+00> : vector<8x64xf32>
    %739 = tpu.matmul %738, %681, %cst_409 {dimension_numbers = #tpu.dot_dimension_numbers<[1], [0], [0], [1], [0, 0, 1, 1], [], []>} : vector<8x32xf32>, vector<32x64xf32>, vector<8x64xf32> -> vector<8x64xf32>
    %740 = vector.broadcast %683 : vector<1x64xf32> to vector<8x64xf32>
    %741 = arith.addf %739, %740 : vector<8x64xf32>
    %cst_410 = arith.constant 0.000000e+00 : f32
    %742 = vector.broadcast %cst_410 : f32 to vector<8x64xf32>
    %743 = arith.maximumf %741, %742 : vector<8x64xf32>
    %cst_411 = arith.constant dense<0.000000e+00> : vector<8x32xf32>
    %744 = tpu.matmul %743, %664, %cst_411 {dimension_numbers = #tpu.dot_dimension_numbers<[1], [0], [0], [1], [0, 0, 1, 1], [], []>} : vector<8x64xf32>, vector<64x32xf32>, vector<8x32xf32> -> vector<8x32xf32>
    %745 = vector.broadcast %675 : vector<1x32xf32> to vector<8x32xf32>
    %746 = arith.addf %744, %745 : vector<8x32xf32>
    %747 = arith.addf %738, %746 : vector<8x32xf32>
    %cst_412 = arith.constant dense<0.000000e+00> : vector<8xf32>
    %748 = vector.multi_reduction <add>, %747, %cst_412 [1] : vector<8x32xf32> to vector<8xf32>
    %749 = vector.shape_cast %748 : vector<8xf32> to vector<8x1xf32>
    %cst_413 = arith.constant 3.200000e+01 : f32
    %750 = vector.broadcast %cst_413 : f32 to vector<8x1xf32>
    %751 = arith.divf %749, %750 : vector<8x1xf32>
    %752 = vector.broadcast %751 : vector<8x1xf32> to vector<8x32xf32>
    %753 = arith.subf %747, %752 : vector<8x32xf32>
    %754 = arith.mulf %753, %753 : vector<8x32xf32>
    %cst_414 = arith.constant dense<0.000000e+00> : vector<8xf32>
    %755 = vector.multi_reduction <add>, %754, %cst_414 [1] : vector<8x32xf32> to vector<8xf32>
    %756 = vector.shape_cast %755 : vector<8xf32> to vector<8x1xf32>
    %cst_415 = arith.constant 3.200000e+01 : f32
    %757 = vector.broadcast %cst_415 : f32 to vector<8x1xf32>
    %758 = arith.divf %756, %757 : vector<8x1xf32>
    %759 = vector.broadcast %751 : vector<8x1xf32> to vector<8x32xf32>
    %760 = arith.subf %747, %759 : vector<8x32xf32>
    %cst_416 = arith.constant 9.99999974E-6 : f32
    %761 = vector.broadcast %cst_416 : f32 to vector<8x1xf32>
    %762 = arith.addf %758, %761 : vector<8x1xf32>
    %763 = math.rsqrt %762 : vector<8x1xf32>
    %764 = vector.broadcast %763 : vector<8x1xf32> to vector<8x32xf32>
    %765 = arith.mulf %760, %764 : vector<8x32xf32>
    %766 = vector.broadcast %676 : vector<1x32xf32> to vector<8x32xf32>
    %767 = arith.mulf %765, %766 : vector<8x32xf32>
    %768 = vector.broadcast %677 : vector<1x32xf32> to vector<8x32xf32>
    %769 = arith.addf %767, %768 : vector<8x32xf32>
    %770 = vector.extract_strided_slice %654 {offsets = [8, 0], sizes = [16, 32], strides = [1, 1]} : vector<24x32xf32> to vector<16x32xf32>
    %c1_417 = arith.constant 1 : index
    %c0_418 = arith.constant 0 : index
    %c0_419 = arith.constant 0 : index
    %771 = vector.load %arg5[%c1_417, %c0_418, %c0_419] : memref<2x24x32xf32, #tpu.memory_space<vmem>>, vector<1x16x32xf32>
    %772 = vector.shape_cast %771 : vector<1x16x32xf32> to vector<16x32xf32>
    %773 = vector.shape_cast %770 : vector<16x32xf32> to vector<1x16x32xf32>
    tpu.vector_store %arg5[%c1_417, %c0_418, %c0_419], %773 {strides = array<i32>} : memref<2x24x32xf32, #tpu.memory_space<vmem>>, vector<1x16x32xf32>,
    %c0_420 = arith.constant 0 : index
    %c16_421 = arith.constant 16 : index
    %c0_422 = arith.constant 0 : index
    %774 = vector.load %arg4[%c0_420, %c16_421, %c0_422] : memref<1x24x32xf32, #tpu.memory_space<vmem>>, vector<1x8x32xf32>
    %775 = vector.shape_cast %774 : vector<1x8x32xf32> to vector<8x32xf32>
    %776 = vector.shape_cast %769 : vector<8x32xf32> to vector<1x8x32xf32>
    tpu.vector_store %arg4[%c0_420, %c16_421, %c0_422], %776 {strides = array<i32>} : memref<1x24x32xf32, #tpu.memory_space<vmem>>, vector<1x8x32xf32>,
    return
  }
  func.func @transform_0(%arg0: i32) -> (i32, i32, i32) {
    %c0_i32 = arith.constant 0 : i32
    %c0_i32_0 = arith.constant 0 : i32
    %c0_i32_1 = arith.constant 0 : i32
    return %arg0, %c0_i32, %c0_i32_0 : i32, i32, i32
  }
  func.func @transform_1(%arg0: i32) -> (i32, i32, i32, i32) {
    %c0_i32 = arith.constant 0 : i32
    %c0_i32_0 = arith.constant 0 : i32
    %c0_i32_1 = arith.constant 0 : i32
    %c0_i32_2 = arith.constant 0 : i32
    return %arg0, %c0_i32, %c0_i32_0, %c0_i32_1 : i32, i32, i32, i32
  }
  func.func @transform_2(%arg0: i32) -> (i32, i32, i32, i32) {
    %c0_i32 = arith.constant 0 : i32
    %c0_i32_0 = arith.constant 0 : i32
    %c0_i32_1 = arith.constant 0 : i32
    %c0_i32_2 = arith.constant 0 : i32
    return %arg0, %c0_i32, %c0_i32_0, %c0_i32_1 : i32, i32, i32, i32
  }
  func.func @transform_3(%arg0: i32) -> (i32, i32, i32) {
    %c0_i32 = arith.constant 0 : i32
    %c0_i32_0 = arith.constant 0 : i32
    %c0_i32_1 = arith.constant 0 : i32
    return %arg0, %c0_i32, %c0_i32_0 : i32, i32, i32
  }
}

</mosaic_0001>

<bundles_post_ra>
// kernel: xl_encoder_forward.1
= control target key start
LH: loop header
LB: loop body
LE: loop exit
PB: predicated region body
PF: predicated region fallthrough
CT: control target
= control target key end

     0   :  { %s6621_s12 = smov 0   ;;  %s7955_s0 = inlined_call_operand.vmem [shape: f32[2,24,32], index: 0, kind: input, shape index: {}]   ;;  %s7956_s1 = inlined_call_operand.vmem [shape: f32[2,2,232,32], index: 1, kind: input, shape index: {}]   ;;  %s7957_s2 = inlined_call_operand.vmem [shape: f32[2,2,40,64], index: 2, kind: input, shape index: {}]   ;;  %s7958_s3 = inlined_call_operand.vmem [shape: f32[2,24,32], index: 3, kind: output, shape index: {}]  }
   0x1 LB: > { %s5317_s13 = sadd.s32 4294967295, %s6597_s12   ;;  %p5321_p0 = scmp.ge.s32.totalorder %s6597_s12, 1  ;;  %s6597_s12 = sphi %s6621_s12, %s13_s12  }
   0x2   : > { %p157_p1 = scmp.lt.s32.totalorder %s6597_s12, 3 }
   0x4   : > { %p158_p2 = pnand %p5321_p0, %p157_p1 }
   0x6   : > { %161 = sbr.rel (%p158_p2) target bundleno = 11432 (0x2ca8), region = 32 }
   0xb   : > { %p191_p3 = scmp.lt.s32.totalorder %s5317_s13, 1  ;;  %vm211_vm0 = vcmask 261120   ;;  %v7959_v0 = vmov 0.0   ;;  %vm6600_vm1 = vmmov 0   ;;  %v219_v20 = vlaneseq }
   0xc   : > { %5850 = vmatprep.subr.mxu1 %v7959_v0  ;;  %5858 = vmatprep.mubr.msk.f32.mxu1 %vm6600_vm1, %v7959_v0  ;;  %214 = vst.msk [vmem:[#allocation2 + $0x10] sm:$0xff] %vm211_vm0, %v7959_v0  ;;  %212 = vst.msk [vmem:[#allocation2] sm:$0xff] %vm211_vm0, %v7959_v0  ;;  %vm691_vm3 = vcmask 195584   ;;  %vm960_vm4 = vcmask 523264  }
   0xd   : > { %213 = vst.msk [vmem:[#allocation2 + $0x8] sm:$0xff] %vm211_vm0, %v7959_v0  ;;  %215 = vst.msk [vmem:[#allocation2 + $0x18] sm:$0xff] %vm211_vm0, %v7959_v0  ;;  %s8090_s13 = smov (!%p191_p3, %s5317_s13), 1  ;;  %5878 = vmatprep.subr.mxu0 %v7959_v0  ;;  %5886 = vmatprep.mubr.msk.f32.mxu0 %vm6600_vm1, %v7959_v0  ;;  %v6770_v21 = vshrl.u32 %v219_v20, 7  ;;  %v6831_v57 = vand.u32 127, %v219_v20 }
   0xe   : > { %216 = vst.msk [vmem:[#allocation2 + $0x20] sm:$0xff] %vm211_vm0, %v7959_v0  ;;  %217 = vst.msk [vmem:[#allocation2 + $0x28] sm:$0xff] %vm211_vm0, %v7959_v0  ;;  %s6529_s14 = smul.u32 464, %s8090_s13 }
   0xf   : > { %s6528_s15 = smul.u32 24, %s8090_s13  ;;  %v6773_v22 = vsub.s32 0, %v6770_v21  ;;  %v6779_v24 = vsub.s32 2, %v6770_v21  ;;  %v6798_v35 = vsub.s32 1, %v6770_v21  ;;  %vm221_vm2 = vcmp.lt.s32.totalorder %v6831_v57, 16 }
  0x10   : > { %s6654_s18 = scalar_lea.vmem %s7956_s1, %s6529_s14  ;;  %v6835_v61 = vsel %vm221_vm2, -1e+09, %v7959_v0  ;;  %s6530_s22 = smul.u32 80, %s8090_s13  ;;  %vm1899_vm5 = vcmp.lt.s32.totalorder %v6831_v57, 8 }
  0x11   : > { %v6657_v1 = vld [vmem:[%s6654_s18 + $0x18] sm:$0xff]  ;;  %v6660_v2 = vld [vmem:[%s6654_s18 + $0x10] sm:$0xff]  ;;  %s6667_s21 = scalar_lea.vmem %s7955_s0, %s6528_s15  ;;  %v6675_v4 = vld [vmem:[%s6654_s18 + $0x8] sm:$0xff]  ;;  %8008 = vst [vmem:[#allocation3_spill] sm:$0xff] %v6773_v22  ;;  %s7927_s28 = scalar_lea.vmem %s7958_s3, %s6528_s15 }
  0x12   : > { %5851 = vmatpush3.msra.mxu1 %v6657_v1  ;;  %v6671_v3 = vld [vmem:[%s6667_s21] sm:$0xff]  ;;  %v6686_v8 = vld [vmem:[%s6654_s18 + $0x58] sm:$0xff]  ;;  %v6700_v10 = vld [vmem:[%s6654_s18 + $0x30] sm:$0xff]  ;;  %8009 = vst [vmem:[#allocation4_spill] sm:$0xff] %v6779_v24  ;;  %s6881_s25 = scalar_lea.vmem %s7957_s2, %s6530_s22 }
  0x13   : > { %5852 = vmatprep.subr.mxu1 %v7959_v0  ;;  %223 = vst.msk [vmem:[#allocation2 + $0x10] sm:$0xff] %vm211_vm0, %v6671_v3  ;;  %v224_v5 = vld [vmem:[#allocation2] sm:$0xff]  ;;  %5879 = vmatpush3.msra.mxu0 %v6686_v8  ;;  %v6692_v9 = vld [vmem:[%s6654_s18 + $0x38] sm:$0xff]  ;;  %v6707_v12 = vld [vmem:[%s6654_s18 + $0x28] sm:$0xff] }
  0x14   : > { %5853 = vmatpush3.msra.mxu1 %v6660_v2  ;;  %v225_v6 = vld [vmem:[#allocation2 + $0x8] sm:$0xff]  ;;  %v6682_v7 = vld [vmem:[%s6654_s18] sm:$0xff]  ;;  %5880 = vmatprep.subr.mxu0 %v7959_v0  ;;  %v6718_v14 = vld [vmem:[%s6654_s18 + $0xd0] sm:$0xff]  ;;  %8010 = vst [vmem:[#allocation5_spill] sm:$0xff] %v6798_v35 }
  0x15   : > { %5854 = vmatprep.subr.mxu1 %v7959_v0  ;;  %1058 = vst.msk [vmem:[#allocation2] sm:$0xff] %vm211_vm0, %v225_v6  ;;  %v6713_v13 = vld [vmem:[%s6654_s18 + $0x20] sm:$0xff]  ;;  %v6729_v15 = vld [vmem:[%s6654_s18 + $0xc8] sm:$0xff]  ;;  %v6741_v16 = vld [vmem:[%s6654_s18 + $0x50] sm:$0xff] }
  0x16   : > { %5855 = vmatpush3.msra.mxu1 %v6675_v4  ;;  %5881 = vmatpush3.msra.mxu0 %v6741_v16  ;;  %v6745_v17 = vld [vmem:[%s6654_s18 + $0xc0] sm:$0xff]  ;;  %v6751_v18 = vld [vmem:[%s6654_s18 + $0x48] sm:$0xff]  ;;  %v6776_v23 = vld [vmem:[%s6654_s18 + $0xd8] sm:$0xff] }
  0x17   : > { %5856 = vmatprep.subr.mxu1 %v7959_v0  ;;  %5882 = vmatprep.subr.mxu0 %v7959_v0  ;;  %v6755_v19 = vld [vmem:[%s6654_s18 + $0x40] sm:$0xff]  ;;  %v6786_v26 = vrot.slane %v6776_v23, %v6773_v22  ;;  %v6802_v37 = vrot.slane %v6776_v23, %v6798_v35  ;;  %v6823_v48 = vrot.slane %v6776_v23, %v6779_v24 }
  0x18   : > { %5857 = vmatpush3.msra.mxu1 %v6682_v7  ;;  %5883 = vmatpush3.msra.mxu0 %v6751_v18  ;;  %v6782_v25 = vld [vmem:[%s6654_s18 + $0xe0] sm:$0xff] }
  0x19   : > { %5859 = vmatmul.mubr.msk.f32.vlgmr.msra.gmra.mxu1 %vm211_vm0, %v6671_v3  ;;  %5861 = vmatprep.subr.mxu1 %v7959_v0  ;;  %v6790_v27 = vrot.slane %v6782_v25, %v6779_v24  ;;  %v6811_v42 = vrot.slane %v6782_v25, %v6798_v35 }
  0x1a   : > { %5862 = vmatpush3.msra.mxu1 %v6692_v9  ;;  %5869 = vmatprep.mubr.msk.f32.mxu1 %vm6600_vm1, %v7959_v0  ;;  %v226_v11 = vld [vmem:[#allocation2 + $0x10] sm:$0xff] }
  0x1b   : > { %5863 = vmatprep.subr.mxu1 %v7959_v0  ;;  %1059 = vst.msk [vmem:[#allocation2 + $0x8] sm:$0xff] %vm211_vm0, %v226_v11  ;;  %5884 = vmatprep.subr.mxu0 %v7959_v0 }
  0x1c   : > { %5864 = vmatpush3.msra.mxu1 %v6700_v10  ;;  %5885 = vmatpush3.msra.mxu0 %v6755_v19 }
  0x1d   : > { %5865 = vmatprep.subr.mxu1 %v7959_v0  ;;  %5887 = vmatmul.mubr.msk.f32.vlgmr.msra.gmra.mxu0 %vm211_vm0, %v224_v5 }
  0x1e   : > { %5866 = vmatpush3.msra.mxu1 %v6707_v12  ;;  %5904 = vmatprep.subr.mxu0 %v7959_v0 }
  0x1f   : > { %5867 = vmatprep.subr.mxu1 %v7959_v0  ;;  %5889 = vmatprep.mubr.msk.f32.mxu0 %vm6600_vm1, %v7959_v0 }
  0x20   : > { %5868 = vmatpush3.msra.mxu1 %v6713_v13 }
  0x21   : > { %5870 = vmatmul.mubr.msk.f32.vlgmr.msra.gmra.mxu1 %vm211_vm0, %v224_v5  ;;  %5895 = vmatprep.subr.mxu1 %v7959_v0 }
  0x22   : > { %5872 = vmatprep.mubr.msk.f32.mxu1 %vm6600_vm1, %v7959_v0  ;;  %5896 = vmatpush3.xpose.msk.msra.mxu1 %vm211_vm0, %v6718_v14 }
  0x23   : > { %5897 = vmatprep.subr.mxu1 %v7959_v0  ;;  %5890 = vmatmul.mubr.msk.f32.gmra.mxu0 %vm211_vm0, %v225_v6 }
  0x24   : > { %5892 = vmatprep.mubr.msk.f32.mxu0 %vm6600_vm1, %v7959_v0 }
  0x25   : > { %5873 = vmatmul.mubr.msk.f32.gmra.mxu1 %vm211_vm0, %v225_v6 }
  0x26   : > { %5875 = vmatprep.mubr.msk.f32.mxu1 %vm6600_vm1, %v7959_v0  ;;  %5898 = vmatpush3.xpose.msk.msra.mxu1 %vm211_vm0, %v6729_v15 }
  0x27   : > { %5899 = vmatprep.subr.mxu1 %v7959_v0  ;;  %5893 = vmatmul.mubr.msk.f32.gmra.mxu0 %vm211_vm0, %v226_v11 }
  0x28   : > { %5910 = vmatprep.mubr.msk.f32.mxu0 %vm6600_vm1, %v7959_v0 }
  0x29   : > { %5876 = vmatmul.mubr.msk.f32.gmra.mxu1 %vm211_vm0, %v226_v11 }
  0x2a   : > { %5901 = vmatprep.mubr.msk.f32.mxu1 %vm6600_vm1, %v7959_v0  ;;  %5900 = vmatpush3.xpose.msk.msra.mxu1 %vm211_vm0, %v6745_v17 }
  0x2b   : > { %5913 = vmatprep.subr.mxu1 %v7959_v0 }
  0xd9   : > { %v334_v28 = vpop.f32.mrf.mxu1 }
  0xda   : > { %v335_v29 = vadd.f32 %v334_v28, %v6786_v26 }
  0xdb   : > { %v5860_v30 = vpop.f32.mrf.mxu1 }
  0xdc   : > { %v524_v31 = vadd.f32 %v6790_v27, %v335_v29  ;;  %v519_v44 = vadd.f32 %v6811_v42, %v335_v29 }
  0xdd   : > { %v501_v45 = vpop.f32.mrf.mxu0 }
  0xde   : > { %5902 = vmatmul.mubr.msk.f32.vlgmr.msra.gmra.mxu1 %vm211_vm0, %v524_v31  ;;  %v502_v54 = vadd.f32 %v501_v45, %v6823_v48 }
  0xdf   : > { %5919 = vmatprep.mubr.msk.f32.mxu1 %vm6600_vm1, %v7959_v0  ;;  %v5888_v46 = vpop.f32.mrf.mxu0 }
  0xe1   : > { %v417_v32 = vpop.f32.mrf.mxu1 }
  0xe2   : > { %v418_v43 = vadd.f32 %v417_v32, %v6802_v37 }
  0xe3   : > { %v5871_v33 = vpop.f32.mrf.mxu1  ;;  %v506_v47 = vpop.f32.mrf.mxu0 }
  0xe4   : > { %v507_v51 = vadd.f32 %v506_v47, %v6823_v48  ;;  %v6841_v33 = vld [vmem:[%s6654_s18 + $0x78] sm:$0xff] }
  0xe5   : > { %v422_v34 = vpop.f32.mrf.mxu1  ;;  %v5891_v49 = vpop.f32.mrf.mxu0 }
  0xe6   : > { %v423_v41 = vadd.f32 %v422_v34, %v6802_v37  ;;  %v6845_v34 = vld [vmem:[%s6654_s18 + $0x70] sm:$0xff] }
  0xe7   : > { %v5874_v36 = vpop.f32.mrf.mxu1  ;;  %v511_v50 = vpop.f32.mrf.mxu0 }
  0xe8   : > { %v512_v52 = vadd.f32 %v511_v50, %v6823_v48  ;;  %v6852_v36 = vld [vmem:[%s6654_s18 + $0x68] sm:$0xff] }
  0xe9   : > { %v427_v38 = vpop.f32.mrf.mxu1  ;;  %v5894_v53 = vpop.f32.mrf.mxu0 }
  0xea   : > { %v428_v39 = vadd.f32 %v427_v38, %v6802_v37  ;;  %5914 = vmatpush3.msra.mxu1 %v512_v52  ;;  %v6859_v38 = vld [vmem:[%s6654_s18 + $0x60] sm:$0xff] }
  0xeb   : > { %v5877_v40 = vpop.f32.mrf.mxu1  ;;  %5915 = vmatprep.subr.mxu1 %v7959_v0 }
  0xec   : > { %5905 = vmatpush3.xpose.msk.msra.mxu0 %vm211_vm0, %v428_v39  ;;  %5916 = vmatpush3.msra.mxu1 %v507_v51 }
  0xed   : > { %5906 = vmatprep.subr.mxu0 %v7959_v0  ;;  %5917 = vmatprep.subr.mxu1 %v7959_v0 }
  0xee   : > { %5918 = vmatpush3.msra.mxu1 %v502_v54 }
  0xef   : > { %5922 = vmatprep.subr.mxu1 %v7959_v0 }
  0xf0   : > { %5907 = vmatpush3.xpose.msk.msra.mxu0 %vm211_vm0, %v423_v41  ;;  %v6867_v41 = vsub.s32 3, %v6770_v21 }
  0xf1   : > { %5908 = vmatprep.subr.mxu0 %v7959_v0 }
  0xf2   : > { %8011 = vst [vmem:[#allocation6_spill] sm:$0xff] %v6867_v41 }
  0xf4   : > { %5909 = vmatpush3.xpose.msk.msra.mxu0 %vm211_vm0, %v418_v43  ;;  %v6871_v43 = vrot.slane %v6776_v23, %v6867_v41 }
  0xf5   : > { %5933 = vmatprep.subr.mxu0 %v7959_v0 }
  0xf7   : > { %5911 = vmatmul.mubr.msk.f32.vlgmr.msra.gmra.mxu0 %vm211_vm0, %v519_v44 }
  0xf8   : > { %5941 = vmatprep.mubr.msk.f32.mxu0 %vm6600_vm1, %v7959_v0 }
 0x19e   : > { %v603_v55 = vpop.f32.mrf.mxu1 }
 0x1a0   : > { %v5903_v56 = vpop.f32.mrf.mxu1 }
 0x1a1   : > { %v6892_v56 = vld [vmem:[%s6881_s25 + $0x8] sm:$0xff] }
 0x1b7   : > { %v685_v58 = vpop.f32.mrf.mxu0 }
 0x1b8   : > { %v686_v59 = vadd.f32 %v685_v58, %v603_v55  ;;  %v6889_v55 = vld [vmem:[%s6881_s25 + $0x10] sm:$0xff]  ;;  %v6897_v58 = vld [vmem:[%s6881_s25] sm:$0xff] }
 0x1b9   : > { %v5912_v60 = vpop.f32.mrf.mxu0 }
 0x1ba   : > { %v689_v62 = vmul.f32 0.17677669, %v686_v59  ;;  %v6903_v59 = vld [vmem:[%s6654_s18 + $0xb8] sm:$0xff]  ;;  %v6906_v60 = vld [vmem:[%s6654_s18 + $0xb0] sm:$0xff] }
 0x1bc   : > { %v690_v63 = vadd.f32 %v689_v62, %v6835_v61  ;;  %v6912_v62 = vld [vmem:[%s6654_s18 + $0xa8] sm:$0xff] }
 0x1be   : > { %v692_v5 = vsel %vm691_vm3, %v690_v63, -inf }
 0x1bf   : > { %693 = vmax.xlane.f32.xlu0 %v692_v5  ;;  %v6922_v5 = vld [vmem:[%s6654_s18 + $0x98] sm:$0xff] }
 0x248   : > { %v694_v6 = vpop.xlane.xlu0 %693 }
 0x249   : > { %v695_v11 = vsub.f32 %v690_v63, %v694_v6  ;;  %v6917_v63 = vld [vmem:[%s6654_s18 + $0xa0] sm:$0xff] }
 0x24b   : > { %v696_v20 = vmul.f32 1.442695, %v695_v11 }
 0x24d   : > { %6541 = vpow2.f32 %v696_v20 }
 0x25a   : > { %v6542_v28 = vpop.eup %6541 }
 0x25b   : > { %v698_v29 = vsel %vm691_vm3, %v6542_v28, 0.0 }
 0x25c   : > { %699 = vadd.xlane.f32.xlu0 %v698_v29  ;;  %v6932_v29 = vsub.s32 5, %v6770_v21 }
 0x2e5   : > { %v700_v30 = vpop.xlane.xlu0 %699 }
 0x2e6   : > { %6543 = vrcp.f32 %v700_v30 }
 0x2f3   : > { %v6544_v31 = vpop.eup %6543 }
 0x2f4   : > { %v702_v32 = vmul.f32 %v6544_v31, %v6542_v28  ;;  %v6929_v28 = vsub.s32 4, %v6770_v21 }
 0x2f6   : > { %5920 = vmatmul.mubr.msk.f32.vlgmr.msra.gmra.mxu1 %vm691_vm3, %v702_v32  ;;  %v6936_v30 = vrot.slane %v6776_v23, %v6929_v28 }
 0x2f7   : > { %5923 = vmatpush3.msra.mxu1 %v6841_v33  ;;  %5930 = vmatprep.mubr.msk.f32.mxu1 %vm6600_vm1, %v7959_v0 }
 0x2f8   : > { %5924 = vmatprep.subr.mxu1 %v7959_v0 }
 0x2f9   : > { %5925 = vmatpush3.msra.mxu1 %v6845_v34 }
 0x2fa   : > { %5926 = vmatprep.subr.mxu1 %v7959_v0 }
 0x2fb   : > { %5927 = vmatpush3.msra.mxu1 %v6852_v36 }
 0x2fc   : > { %5928 = vmatprep.subr.mxu1 %v7959_v0 }
 0x2fd   : > { %5929 = vmatpush3.msra.mxu1 %v6859_v38 }
 0x2fe   : > { %5944 = vmatprep.subr.mxu1 %v7959_v0 }
 0x3b6   : > { %v772_v39 = vpop.f32.mrf.mxu1 }
 0x3b7   : > { %5931 = vmatmul.mubr.msk.f32.vlgmr.msra.gmra.mxu1 %vm211_vm0, %v772_v39  ;;  %v6940_v39 = vrot.slane %v6776_v23, %v6932_v29 }
 0x3b8   : > { %v5921_v40 = vpop.f32.mrf.mxu1  ;;  %5960 = vmatprep.mubr.msk.f32.mxu1 %vm6600_vm1, %v7959_v0  ;;  %5945 = vmatpush3.msra.mxu1 %v6903_v59 }
 0x3b9   : > { %5946 = vmatprep.subr.mxu1 %v7959_v0 }
 0x3ba   : > { %5947 = vmatpush3.msra.mxu1 %v6906_v60 }
 0x3bb   : > { %5948 = vmatprep.subr.mxu1 %v7959_v0 }
 0x3bc   : > { %5949 = vmatpush3.msra.mxu1 %v6912_v62 }
 0x3bd   : > { %5950 = vmatprep.subr.mxu1 %v7959_v0 }
 0x3be   : > { %5951 = vmatpush3.msra.mxu1 %v6917_v63 }
 0x3bf   : > { %5952 = vmatprep.subr.mxu1 %v7959_v0 }
 0x3c0   : > { %5953 = vmatpush3.msra.mxu1 %v6922_v5 }
 0x3c1   : > { %5954 = vmatprep.subr.mxu1 %v7959_v0 }
 0x477   : > { %v849_v44 = vpop.f32.mrf.mxu1 }
 0x478   : > { %v850_v45 = vadd.f32 %v849_v44, %v6871_v43 }
 0x479   : > { %v5932_v46 = vpop.f32.mrf.mxu1 }
 0x47a   : > { %v853_v47 = vadd.f32 %v850_v45, %v6671_v3  ;;  %v6884_v3 = vld [vmem:[%s6881_s25 + $0x18] sm:$0xff]  ;;  %v6948_v45 = vld [vmem:[%s6654_s18 + $0x90] sm:$0xff]  ;;  %v6953_v46 = vld [vmem:[%s6654_s18 + $0x88] sm:$0xff] }
 0x47b   : > { %5934 = vmatpush3.msra.mxu0 %v6884_v3  ;;  %5955 = vmatpush3.msra.mxu1 %v6948_v45 }
 0x47c   : > { %v854_v49 = vsel %vm211_vm0, %v853_v47, 0.0  ;;  %5935 = vmatprep.subr.mxu0 %v7959_v0  ;;  %5956 = vmatprep.subr.mxu1 %v7959_v0 }
 0x47d   : > { %855 = vadd.xlane.f32.xlu1 %v854_v49  ;;  %5936 = vmatpush3.msra.mxu0 %v6889_v55  ;;  %v6963_v49 = vld [vmem:[%s6881_s25 + $0x20] ss:$0 sm:$0xff] }
 0x47e   : > { %5937 = vmatprep.subr.mxu0 %v7959_v0  ;;  %5957 = vmatpush3.msra.mxu1 %v6953_v46  ;;  %8012 = vst [vmem:[#allocation7_spill] sm:$0xff] %v6963_v49 }
 0x47f   : > { %5938 = vmatpush3.msra.mxu0 %v6892_v56  ;;  %5958 = vmatprep.subr.mxu1 %v7959_v0 }
 0x480   : > { %5939 = vmatprep.subr.mxu0 %v7959_v0 }
 0x481   : > { %5940 = vmatpush3.msra.mxu0 %v6897_v58 }
 0x482   : > { %5963 = vmatprep.subr.mxu0 %v7959_v0 }
 0x506   : > { %v856_v50 = vpop.xlane.xlu1 %855 }
 0x507   : > { %v858_v51 = vmul.f32 0.03125, %v856_v50 }
 0x509   : > { %v859_v52 = vsub.f32 %v853_v47, %v858_v51  ;;  %v6958_v47 = vld [vmem:[%s6654_s18 + $0x80] sm:$0xff] }
 0x50a   : > { %5959 = vmatpush3.msra.mxu1 %v6958_v47 }
 0x50b   : > { %v860_v53 = vmul.f32 %v859_v52, %v859_v52  ;;  %5991 = vmatprep.subr.mxu1 %v7959_v0 }
 0x50d   : > { %v861_v54 = vsel %vm211_vm0, %v860_v53, 0.0 }
 0x50e   : > { %862 = vadd.xlane.f32.xlu1 %v861_v54  ;;  %v6970_v54 = vsub.s32 6, %v6770_v21 }
 0x510   : > { %8013 = vst [vmem:[#allocation8_spill] sm:$0xff] %v6970_v54 }
 0x597   : > { %v863_v6 = vpop.xlane.xlu1 %862 }
 0x598   : > { %v864_v11 = vmul.f32 0.03125, %v863_v6  ;;  %v6974_v6 = vrot.slane %v6776_v23, %v6970_v54  ;;  %v6980_v54 = vld [vmem:[%s6654_s18 + $0x100] sm:$0xff] }
 0x599   : > { %8015 = vst [vmem:[#allocation10_spill] sm:$0xff] %v6980_v54 }
 0x59a   : > { %v865_v20 = vadd.f32 1e-05, %v864_v11  ;;  %8014 = vst [vmem:[#allocation9_spill] sm:$0xff] %v6974_v6 }
 0x59c   : > { %6545 = vrsqrt.f32 %v865_v20 }
 0x5a9   : > { %v6546_v31 = vpop.eup %6545 }
 0x5aa   : > { %v867_v32 = vmul.f32 %v6546_v31, %v859_v52 }
 0x5ac   : > { %v872_v40 = vmul.f32 %v6936_v30, %v867_v32 }
 0x5ae   : > { %v877_v44 = vadd.f32 %v6940_v39, %v872_v40 }
 0x5b0   : > { %5942 = vmatmul.mubr.msk.f32.vlgmr.msra.gmra.mxu0 %vm211_vm0, %v877_v44 }
 0x5b1   : > { %5971 = vmatprep.mubr.msk.f32.mxu0 %vm6600_vm1, %v7959_v0  ;;  %5964 = vmatpush3.msra.mxu0 %v6980_v54 }
 0x670   : > { %v951_v50 = vpop.f32.mrf.mxu0 }
 0x671   : > { %v952_v51 = vadd.f32 %v6963_v49, %v951_v50 }
 0x672   : > { %v5943_v52 = vpop.f32.mrf.mxu0 }
 0x673   : > { %v955_v53 = vmax.f32 %v952_v51, 0.0 }
 0x675   : > { %5961 = vmatmul.mubr.msk.f32.vlgmr.msra.gmra.mxu1 %vm960_vm4, %v955_v53 }
 0x676   : > { %5999 = vmatprep.mubr.msk.f32.mxu1 %vm6600_vm1, %v7959_v0 }
 0x735   : > { %v1030_v11 = vpop.f32.mrf.mxu1 }
 0x736   : > { %v1031_v20 = vadd.f32 %v1030_v11, %v6974_v6  ;;  %v8017_v11 = vmov 0.0  }
 0x737   : > { %v5962_v31 = vpop.f32.mrf.mxu1  ;;  %5965 = vmatprep.subr.mxu0 %v8017_v11 }
 0x738   : > { %v1034_v32 = vadd.f32 %v1031_v20, %v877_v44  ;;  %v6984_v44 = vld [vmem:[%s6654_s18 + $0x140] sm:$0xff]  ;;  %v6989_v20 = vld [vmem:[%s6654_s18 + $0xf8] sm:$0xff] }
 0x739   : > { %8016 = vst [vmem:[#allocation11_spill] sm:$0xff] %v6984_v44  ;;  %5992 = vmatpush3.msra.mxu1 %v6984_v44  ;;  %8018 = vst [vmem:[#allocation12_spill] sm:$0xff] %v6989_v20  ;;  %5966 = vmatpush3.msra.mxu0 %v6989_v20  ;;  %v6994_v31 = vld [vmem:[%s6654_s18 + $0x138] sm:$0xff] }
 0x73a   : > { %v1035_v40 = vsel %vm211_vm0, %v1034_v32, 0.0  ;;  %5993 = vmatprep.subr.mxu1 %v8017_v11  ;;  %8019 = vst [vmem:[#allocation13_spill] sm:$0xff] %v6994_v31  ;;  %5967 = vmatprep.subr.mxu0 %v8017_v11 }
 0x73b   : > { %1036 = vadd.xlane.f32.xlu0 %v1035_v40  ;;  %5994 = vmatpush3.msra.mxu1 %v6994_v31  ;;  %v7005_v40 = vld [vmem:[%s6654_s18 + $0xe8] sm:$0xff]  ;;  %v7027_v31 = vsub.s32 7, %v6770_v21  ;;  %v7049_v21 = vld [vmem:[%s6654_s18 + $0x118] sm:$0xff] }
 0x73c   : > { %8022 = vst [vmem:[#allocation16_spill] sm:$0xff] %v7005_v40  ;;  %5995 = vmatprep.subr.mxu1 %v8017_v11  ;;  %8028 = vst [vmem:[#allocation22_spill] sm:$0xff] %v7049_v21 }
 0x73d   : > { %8024 = vst [vmem:[#allocation18_spill] sm:$0xff] %v7027_v31  ;;  %v7031_v44 = vrot.slane %v6776_v23, %v7027_v31  ;;  %v7056_v23 = vld [vmem:[%s6654_s18 + $0x110] sm:$0xff] }
 0x73e   : > { %8029 = vst [vmem:[#allocation23_spill] sm:$0xff] %v7056_v23 }
 0x73f   : > { %8025 = vst [vmem:[#allocation19_spill] sm:$0xff] %v7031_v44 }
 0x7c4   : > { %v1037_v50 = vpop.xlane.xlu0 %1036 }
 0x7c5   : > { %v1038_v51 = vmul.f32 0.03125, %v1037_v50  ;;  %v7010_v50 = vld [vmem:[%s6654_s18 + $0x128] sm:$0xff] }
 0x7c6   : > { %8023 = vst [vmem:[#allocation17_spill] sm:$0xff] %v7010_v50 }
 0x7c7   : > { %v1039_v52 = vsub.f32 %v1034_v32, %v1038_v51  ;;  %v7000_v32 = vld [vmem:[%s6654_s18 + $0x130] sm:$0xff]  ;;  %v1062_v51 = vld [vmem:[#allocation2 + $0x18] sm:$0xff] }
 0x7c8   : > { %8021 = vst [vmem:[#allocation15_spill] sm:$0xff] %v7000_v32  ;;  %5996 = vmatpush3.msra.mxu1 %v7000_v32 }
 0x7c9   : > { %v1040_v53 = vmul.f32 %v1039_v52, %v1039_v52  ;;  %5997 = vmatprep.subr.mxu1 %v8017_v11 }
 0x7ca   : > { %5998 = vmatpush3.msra.mxu1 %v7010_v50 }
 0x7cb   : > { %v1041_v0 = vsel %vm211_vm0, %v1040_v53, 0.0  ;;  %6017 = vmatprep.subr.mxu1 %v8017_v11  ;;  %6000 = vmatmul.mubr.msk.f32.vlgmr.msra.gmra.mxu1 %vm211_vm0, %v1062_v51  ;;  %v1063_v53 = vld [vmem:[#allocation2 + $0x20] sm:$0xff] }
 0x7cc   : > { %1042 = vadd.xlane.f32.xlu1 %v1041_v0  ;;  %v6997_v0 = vld [vmem:[%s6654_s18 + $0xf0] sm:$0xff]  ;;  %6002 = vmatprep.mubr.msk.f32.mxu1 %vm6600_vm1, %v8017_v11  ;;  %1895 = vst.msk [vmem:[#allocation2 + $0x18] sm:$0xff] %vm211_vm0, %v1063_v53 }
 0x7cd   : > { %8020 = vst [vmem:[#allocation14_spill] sm:$0xff] %v6997_v0  ;;  %5968 = vmatpush3.msra.mxu0 %v6997_v0 }
 0x7ce   : > { %5969 = vmatprep.subr.mxu0 %v8017_v11 }
 0x7cf   : > { %5970 = vmatpush3.msra.mxu0 %v7005_v40  ;;  %6003 = vmatmul.mubr.msk.f32.gmra.mxu1 %vm211_vm0, %v1063_v53  ;;  %v7035_v40 = vrot.slane %v6782_v25, %v6773_v22  ;;  %v7061_v25 = vld [vmem:[%s6654_s18 + $0x108] sm:$0xff] }
 0x7d0   : > { %5974 = vmatprep.subr.mxu0 %v8017_v11  ;;  %6005 = vmatprep.mubr.msk.f32.mxu1 %vm6600_vm1, %v8017_v11  ;;  %8030 = vst [vmem:[#allocation24_spill] sm:$0xff] %v7061_v25 }
 0x7d1   : > { %8026 = vst [vmem:[#allocation20_spill] sm:$0xff] %v7035_v40 }
 0x855   : > { %v1043_v6 = vpop.xlane.xlu1 %1042 }
 0x856   : > { %v1044_v50 = vmul.f32 0.03125, %v1043_v6 }
 0x858   : > { %v1045_v32 = vadd.f32 1e-05, %v1044_v50 }
 0x85a   : > { %6547 = vrsqrt.f32 %v1045_v32  ;;  %v7042_v32 = vld [vmem:[%s6654_s18 + $0x120] sm:$0xff] }
 0x85b   : > { %8027 = vst [vmem:[#allocation21_spill] sm:$0xff] %v7042_v32 }
 0x867   : > { %v6548_v49 = vpop.eup %6547 }
 0x868   : > { %v1047_v0 = vmul.f32 %v6548_v49, %v1039_v52  ;;  %v7067_v52 = vld [vmem:[%s6654_s18 + $0x1b8] sm:$0xff] }
 0x869   : > { %8031 = vst [vmem:[#allocation25_spill] sm:$0xff] %v7067_v52 }
 0x86a   : > { %v1052_v20 = vmul.f32 %v7031_v44, %v1047_v0  ;;  %v7086_v0 = vld [vmem:[#allocation2 + $0x18] sm:$0xff] }
 0x86b   : > { %8033 = vst [vmem:[#allocation27_spill] sm:$0xff] %v7086_v0 }
 0x86c   : > { %v7039_v6 = vadd.f32 %v7035_v40, %v1052_v20  ;;  %v7081_v20 = vld [vmem:[%s6654_s18 + $0x1b0] sm:$0xff] }
 0x86d   : > { %8032 = vst [vmem:[#allocation26_spill] sm:$0xff] %v7081_v20 }
 0x86e   : > { %1061 = vst.msk [vmem:[#allocation2 + $0x28] sm:$0xff] %vm211_vm0, %v7039_v6  ;;  %5972 = vmatmul.mubr.msk.f32.vlgmr.msra.gmra.mxu0 %vm211_vm0, %v7039_v6 }
 0x86f   : > { %5975 = vmatpush3.msra.mxu0 %v7042_v32  ;;  %5982 = vmatprep.mubr.msk.f32.mxu0 %vm6600_vm1, %v8017_v11 }
 0x870   : > { %5976 = vmatprep.subr.mxu0 %v8017_v11 }
 0x871   : > { %5977 = vmatpush3.msra.mxu0 %v7049_v21 }
 0x872   : > { %5978 = vmatprep.subr.mxu0 %v8017_v11 }
 0x873   : > { %5979 = vmatpush3.msra.mxu0 %v7056_v23 }
 0x874   : > { %5980 = vmatprep.subr.mxu0 %v8017_v11 }
 0x875   : > { %5981 = vmatpush3.msra.mxu0 %v7061_v25  ;;  %v1064_v49 = vld [vmem:[#allocation2 + $0x28] sm:$0xff]  ;;  %v7105_v25 = vld [vmem:[%s6654_s18 + $0x1c0] sm:$0xff] }
 0x876   : > { %5983 = vmatmul.mubr.msk.f32.vlgmr.msra.gmra.mxu0 %vm211_vm0, %v1062_v51  ;;  %6006 = vmatmul.mubr.msk.f32.gmra.mxu1 %vm211_vm0, %v1064_v49  ;;  %1896 = vst.msk [vmem:[#allocation2 + $0x20] sm:$0xff] %vm211_vm0, %v1064_v49  ;;  %v7110_v23 = vrot.slane %v7105_v25, %v6773_v22  ;;  %v7119_v44 = vrot.slane %v7105_v25, %v6779_v24 }
 0x877   : > { %5985 = vmatprep.mubr.msk.f32.mxu0 %vm6600_vm1, %v8017_v11  ;;  %6008 = vmatprep.subr.mxu0 %v8017_v11 }
 0x878   : > { %6009 = vmatpush3.xpose.msk.msra.mxu0 %vm211_vm0, %v7067_v52  ;;  %6023 = vmatprep.mubr.msk.f32.mxu1 %vm6600_vm1, %v8017_v11 }
 0x879   : > { %6010 = vmatprep.subr.mxu0 %v8017_v11 }
 0x87a   : > { %5986 = vmatmul.mubr.msk.f32.gmra.mxu0 %vm211_vm0, %v1063_v53  ;;  %v7099_v53 = vld [vmem:[%s6654_s18 + $0x1a8] sm:$0xff] }
 0x87b   : > { %5988 = vmatprep.mubr.msk.f32.mxu0 %vm6600_vm1, %v8017_v11  ;;  %8035 = vst [vmem:[#allocation29_spill] sm:$0xff] %v7099_v53 }
 0x87c   : > { %6011 = vmatpush3.xpose.msk.msra.mxu0 %vm211_vm0, %v7081_v20 }
 0x87d   : > { %6012 = vmatprep.subr.mxu0 %v8017_v11  ;;  %v7091_v50 = vld [vmem:[#allocation2 + $0x20] sm:$0xff] }
 0x87e   : > { %8034 = vst [vmem:[#allocation28_spill] sm:$0xff] %v7091_v50  ;;  %5989 = vmatmul.mubr.msk.f32.gmra.mxu0 %vm211_vm0, %v1064_v49  ;;  %3567 = vst.msk [vmem:[#allocation2 + $0x18] sm:$0xff] %vm211_vm0, %v7091_v50  ;;  %v5374_v49 = vld [vmem:[%s6654_s18 + $0x1c8] sm:$0xff] }
 0x87f   : > { %6014 = vmatprep.mubr.msk.f32.mxu0 %vm6600_vm1, %v8017_v11  ;;  %v7113_v21 = vrot.slane %v5374_v49, %v6779_v24 }
 0x880   : > { %6013 = vmatpush3.xpose.msk.msra.mxu0 %vm211_vm0, %v7099_v53 }
 0x881   : > { %6026 = vmatprep.subr.mxu0 %v8017_v11  ;;  %8036 = vst [vmem:[#allocation30_spill] sm:$0xff] %v7113_v21 }
 0x88b   : > { %v1341_v51 = vpop.f32.mrf.mxu1 }
 0x88d   : > { %v6001_v31 = vpop.f32.mrf.mxu1 }
 0x88f   : > { %v1346_v20 = vpop.f32.mrf.mxu1 }
 0x890   : > { %v1347_v50 = vadd.f32 %v1346_v20, %v7119_v44 }
 0x891   : > { %v6004_v52 = vpop.f32.mrf.mxu1 }
 0x92e   : > { %v1174_v32 = vpop.f32.mrf.mxu0 }
 0x92f   : > { %v1175_v31 = vadd.f32 %v1174_v32, %v7110_v23 }
 0x930   : > { %v5973_v40 = vpop.f32.mrf.mxu0 }
 0x931   : > { %v1364_v53 = vadd.f32 %v7113_v21, %v1175_v31  ;;  %v1342_v40 = vadd.f32 %v1341_v51, %v7119_v44 }
 0x933   : > { %6015 = vmatmul.mubr.msk.f32.vlgmr.msra.gmra.mxu0 %vm211_vm0, %v1364_v53  ;;  %v7131_v53 = vrot.slane %v7105_v25, %v6798_v35 }
 0x934   : > { %6032 = vmatprep.mubr.msk.f32.mxu0 %vm6600_vm1, %v8017_v11 }
 0x936   : > { %v1257_v52 = vpop.f32.mrf.mxu0  ;;  %v1351_v22 = vpop.f32.mrf.mxu1 }
 0x937   : > { %v1352_v0 = vadd.f32 %v1351_v22, %v7119_v44 }
 0x938   : > { %v5984_v54 = vpop.f32.mrf.mxu0  ;;  %v6007_v32 = vpop.f32.mrf.mxu1 }
 0x939   : > { %6027 = vmatpush3.msra.mxu0 %v1352_v0 }
 0x93a   : > { %v1262_v21 = vpop.f32.mrf.mxu0  ;;  %6028 = vmatprep.subr.mxu0 %v8017_v11 }
 0x93b   : > { %6029 = vmatpush3.msra.mxu0 %v1347_v50  ;;  %v1263_v0 = vadd.f32 %v1262_v21, %v7131_v53  ;;  %v1258_v50 = vadd.f32 %v1257_v52, %v7131_v53 }
 0x93c   : > { %v5987_v24 = vpop.f32.mrf.mxu0  ;;  %6030 = vmatprep.subr.mxu0 %v8017_v11 }
 0x93d   : > { %6031 = vmatpush3.msra.mxu0 %v1342_v40  ;;  %v7140_v24 = vrot.slane %v5374_v49, %v6798_v35 }
 0x93e   : > { %v1267_v20 = vpop.f32.mrf.mxu0  ;;  %6035 = vmatprep.subr.mxu0 %v8017_v11 }
 0x93f   : > { %v1268_v22 = vadd.f32 %v1267_v20, %v7131_v53  ;;  %v1359_v51 = vadd.f32 %v7140_v24, %v1175_v31 }
 0x940   : > { %v5990_v54 = vpop.f32.mrf.mxu0 }
 0x941   : > { %6018 = vmatpush3.xpose.msk.msra.mxu1 %vm211_vm0, %v1268_v22 }
 0x942   : > { %6019 = vmatprep.subr.mxu1 %v8017_v11 }
 0x945   : > { %6020 = vmatpush3.xpose.msk.msra.mxu1 %vm211_vm0, %v1263_v0 }
 0x946   : > { %6021 = vmatprep.subr.mxu1 %v8017_v11 }
 0x949   : > { %6022 = vmatpush3.xpose.msk.msra.mxu1 %vm211_vm0, %v1258_v50 }
 0x94a   : > { %6046 = vmatprep.subr.mxu1 %v8017_v11 }
 0x94c   : > { %6024 = vmatmul.mubr.msk.f32.vlgmr.msra.gmra.mxu1 %vm211_vm0, %v1359_v51 }
 0x94d   : > { %6054 = vmatprep.mubr.msk.f32.mxu1 %vm6600_vm1, %v8017_v11 }
 0x9f3   : > { %v1443_v21 = vpop.f32.mrf.mxu0 }
 0x9f5   : > { %v6016_v32 = vpop.f32.mrf.mxu0 }
 0xa0c   : > { %v1525_v40 = vpop.f32.mrf.mxu1 }
 0xa0d   : > { %v1526_v49 = vadd.f32 %v1525_v40, %v1443_v21 }
 0xa0e   : > { %v6025_v20 = vpop.f32.mrf.mxu1 }
 0xa0f   : > { %v1529_v22 = vmul.f32 0.17677669, %v1526_v49  ;;  %v7154_v49 = vld [vmem:[%s6654_s18 + $0x160] sm:$0xff]  ;;  %v7165_v20 = vld [vmem:[%s6654_s18 + $0x150] sm:$0xff] }
 0xa10   : > { %8037 = vst [vmem:[#allocation31_spill] sm:$0xff] %v7154_v49  ;;  %8039 = vst [vmem:[#allocation33_spill] sm:$0xff] %v7165_v20 }
 0xa11   : > { %v1530_v52 = vadd.f32 %v1529_v22, %v6835_v61  ;;  %v7158_v61 = vld [vmem:[%s6654_s18 + $0x158] sm:$0xff] }
 0xa12   : > { %8038 = vst [vmem:[#allocation32_spill] sm:$0xff] %v7158_v61 }
 0xa13   : > { %v1531_v54 = vsel %vm691_vm3, %v1530_v52, -inf }
 0xa14   : > { %1532 = vmax.xlane.f32.xlu0 %v1531_v54  ;;  %v7181_v54 = vrot.slane %v7105_v25, %v6867_v41 }
 0xa16   : > { %8041 = vst [vmem:[#allocation35_spill] sm:$0xff] %v7181_v54 }
 0xa9d   : > { %v1533_v31 = vpop.xlane.xlu0 %1532 }
 0xa9e   : > { %v1534_v0 = vsub.f32 %v1530_v52, %v1533_v31 }
 0xaa0   : > { %v1535_v50 = vmul.f32 1.442695, %v1534_v0 }
 0xaa2   : > { %6549 = vpow2.f32 %v1535_v50 }
 0xaaf   : > { %v6550_v51 = vpop.eup %6549 }
 0xab0   : > { %v1537_v35 = vsel %vm691_vm3, %v6550_v51, 0.0 }
 0xab1   : > { %1538 = vadd.xlane.f32.xlu1 %v1537_v35  ;;  %v7172_v35 = vld [vmem:[%s6654_s18 + $0x148] sm:$0xff] }
 0xab2   : > { %8040 = vst [vmem:[#allocation34_spill] sm:$0xff] %v7172_v35 }
 0xb3a   : > { %v1539_v21 = vpop.xlane.xlu1 %1538 }
 0xb3b   : > { %6551 = vrcp.f32 %v1539_v21 }
 0xb48   : > { %v6552_v32 = vpop.eup %6551 }
 0xb49   : > { %v1541_v40 = vmul.f32 %v6552_v32, %v6550_v51 }
 0xb4b   : > { %6033 = vmatmul.mubr.msk.f32.vlgmr.msra.gmra.mxu0 %vm691_vm3, %v1541_v40 }
 0xb4c   : > { %6036 = vmatpush3.msra.mxu0 %v7154_v49  ;;  %6043 = vmatprep.mubr.msk.f32.mxu0 %vm6600_vm1, %v8017_v11  ;;  %v7249_v49 = vrot.slane %v7105_v25, %v6929_v28 }
 0xb4d   : > { %6037 = vmatprep.subr.mxu0 %v8017_v11 }
 0xb4e   : > { %6038 = vmatpush3.msra.mxu0 %v7158_v61 }
 0xb4f   : > { %6039 = vmatprep.subr.mxu0 %v8017_v11 }
 0xb50   : > { %6040 = vmatpush3.msra.mxu0 %v7165_v20  ;;  %v7241_v20 = vld [vmem:[%s6654_s18 + $0x180] sm:$0xff] }
 0xb51   : > { %6041 = vmatprep.subr.mxu0 %v8017_v11  ;;  %8048 = vst [vmem:[#allocation42_spill] sm:$0xff] %v7241_v20 }
 0xb52   : > { %6042 = vmatpush3.msra.mxu0 %v7172_v35  ;;  %v7188_v35 = vld [vmem:[%s6881_s25 + $0x40] sm:$0xff] }
 0xb53   : > { %6057 = vmatprep.subr.mxu0 %v8017_v11  ;;  %6047 = vmatpush3.msra.mxu1 %v7188_v35 }
 0xb54   : > { %6048 = vmatprep.subr.mxu1 %v8017_v11 }
 0xc0b   : > { %v1611_v22 = vpop.f32.mrf.mxu0 }
 0xc0c   : > { %6044 = vmatmul.mubr.msk.f32.vlgmr.msra.gmra.mxu0 %vm211_vm0, %v1611_v22 }
 0xc0d   : > { %v6034_v52 = vpop.f32.mrf.mxu0  ;;  %6073 = vmatprep.mubr.msk.f32.mxu0 %vm6600_vm1, %v8017_v11 }
 0xccc   : > { %v1688_v31 = vpop.f32.mrf.mxu0 }
 0xccd   : > { %v1689_v0 = vadd.f32 %v1688_v31, %v7181_v54  ;;  %v7193_v31 = vld [vmem:[%s6881_s25 + $0x38] sm:$0xff]  ;;  %v7236_v54 = vld [vmem:[%s6654_s18 + $0x188] sm:$0xff] }
 0xcce   : > { %v6045_v50 = vpop.f32.mrf.mxu0  ;;  %6049 = vmatpush3.msra.mxu1 %v7193_v31  ;;  %8047 = vst [vmem:[#allocation41_spill] sm:$0xff] %v7236_v54 }
 0xccf   : > { %v1692_v51 = vadd.f32 %v1689_v0, %v7039_v6  ;;  %v7197_v6 = vld [vmem:[%s6881_s25 + $0x30] sm:$0xff]  ;;  %6050 = vmatprep.subr.mxu1 %v8017_v11  ;;  %v7201_v0 = vld [vmem:[%s6881_s25 + $0x28] sm:$0xff]  ;;  %v7212_v50 = vld [vmem:[#allocation2] sm:$0xff] }
 0xcd0   : > { %8042 = vst [vmem:[#allocation36_spill] sm:$0xff] %v7197_v6  ;;  %8043 = vst [vmem:[#allocation37_spill] sm:$0xff] %v7201_v0  ;;  %6051 = vmatpush3.msra.mxu1 %v7197_v6  ;;  %v7253_v6 = vrot.slane %v7105_v25, %v6932_v29 }
 0xcd1   : > { %v1693_v21 = vsel %vm211_vm0, %v1692_v51, 0.0  ;;  %6052 = vmatprep.subr.mxu1 %v8017_v11 }
 0xcd2   : > { %1694 = vadd.xlane.f32.xlu0 %v1693_v21  ;;  %6053 = vmatpush3.msra.mxu1 %v7201_v0 }
 0xcd3   : > { %6076 = vmatprep.subr.mxu1 %v8017_v11 }
 0xd5b   : > { %v1695_v32 = vpop.xlane.xlu0 %1694 }
 0xd5c   : > { %v1696_v40 = vmul.f32 0.03125, %v1695_v32  ;;  %v7223_v32 = vld [vmem:[%s6654_s18 + $0x1a0] sm:$0xff] }
 0xd5d   : > { %8044 = vst [vmem:[#allocation38_spill] sm:$0xff] %v7223_v32  ;;  %6058 = vmatpush3.msra.mxu0 %v7223_v32 }
 0xd5e   : > { %v1697_v22 = vsub.f32 %v1692_v51, %v1696_v40  ;;  %v7214_v51 = vld [vmem:[#allocation2 + $0x8] sm:$0xff]  ;;  %v7226_v40 = vld [vmem:[%s6654_s18 + $0x198] sm:$0xff]  ;;  %6059 = vmatprep.subr.mxu0 %v8017_v11 }
 0xd5f   : > { %2733 = vst.msk [vmem:[#allocation2] sm:$0xff] %vm211_vm0, %v7214_v51  ;;  %8045 = vst [vmem:[#allocation39_spill] sm:$0xff] %v7226_v40  ;;  %6060 = vmatpush3.msra.mxu0 %v7226_v40 }
 0xd60   : > { %v1698_v52 = vmul.f32 %v1697_v22, %v1697_v22  ;;  %6061 = vmatprep.subr.mxu0 %v8017_v11 }
 0xd62   : > { %v1699_v41 = vsel %vm211_vm0, %v1698_v52, 0.0  ;;  %v7231_v52 = vld [vmem:[%s6654_s18 + $0x190] sm:$0xff] }
 0xd63   : > { %1700 = vadd.xlane.f32.xlu1 %v1699_v41  ;;  %v7208_v41 = vld [vmem:[%s6667_s21 + $0x8] sm:$0xff]  ;;  %8046 = vst [vmem:[#allocation40_spill] sm:$0xff] %v7231_v52  ;;  %6062 = vmatpush3.msra.mxu0 %v7231_v52 }
 0xd64   : > { %1901 = vst.msk [vmem:[#allocation2 + $0x10] sm:$0xff] %vm211_vm0, %v7208_v41  ;;  %6063 = vmatprep.subr.mxu0 %v8017_v11 }
 0xd65   : > { %6064 = vmatpush3.msra.mxu0 %v7236_v54 }
 0xd66   : > { %6065 = vmatprep.subr.mxu0 %v8017_v11 }
 0xd67   : > { %6066 = vmatpush3.msra.mxu0 %v7241_v20 }
 0xd68   : > { %6067 = vmatprep.subr.mxu0 %v8017_v11 }
 0xd6b   : > { %v7218_v21 = vld [vmem:[#allocation2 + $0x10] sm:$0xff] }
 0xd6c   : > { %2734 = vst.msk [vmem:[#allocation2 + $0x8] sm:$0xff] %vm211_vm0, %v7218_v21 }
 0xdec   : > { %v1701_v32 = vpop.xlane.xlu1 %1700 }
 0xded   : > { %v1702_v40 = vmul.f32 0.03125, %v1701_v32 }
 0xdef   : > { %v1703_v61 = vadd.f32 1e-05, %v1702_v40 }
 0xdf1   : > { %6553 = vrsqrt.f32 %v1703_v61 }
 0xdfe   : > { %v6554_v52 = vpop.eup %6553 }
 0xdff   : > { %v1705_v0 = vmul.f32 %v6554_v52, %v1697_v22 }
 0xe01   : > { %v1710_v54 = vmul.f32 %v7249_v49, %v1705_v0 }
 0xe03   : > { %v7257_v20 = vadd.f32 %v7253_v6, %v1710_v54 }
 0xe05   : > { %6055 = vmatmul.mubr.msk.f32.vlgmr.msra.gmra.mxu1 %vm211_vm0, %v7257_v20 }
 0xe06   : > { %6077 = vmatpush3.msra.mxu1 %v6657_v1  ;;  %6084 = vmatprep.mubr.msk.f32.mxu1 %vm6600_vm1, %v8017_v11  ;;  %v7305_v1 = vld [vmem:[%s6654_s18 + $0x178] sm:$0xff] }
 0xe07   : > { %6078 = vmatprep.subr.mxu1 %v8017_v11  ;;  %6068 = vmatpush3.msra.mxu0 %v7305_v1 }
 0xe08   : > { %6079 = vmatpush3.msra.mxu1 %v6660_v2  ;;  %6069 = vmatprep.subr.mxu0 %v8017_v11  ;;  %v7310_v2 = vld [vmem:[%s6654_s18 + $0x170] sm:$0xff] }
 0xe09   : > { %6080 = vmatprep.subr.mxu1 %v8017_v11  ;;  %6070 = vmatpush3.msra.mxu0 %v7310_v2 }
 0xe0a   : > { %6081 = vmatpush3.msra.mxu1 %v6675_v4  ;;  %v7314_v4 = vld [vmem:[%s6654_s18 + $0x168] sm:$0xff]  ;;  %6071 = vmatprep.subr.mxu0 %v8017_v11 }
 0xe0b   : > { %6082 = vmatprep.subr.mxu1 %v8017_v11  ;;  %6072 = vmatpush3.msra.mxu0 %v7314_v4 }
 0xe0c   : > { %6083 = vmatpush3.msra.mxu1 %v6682_v7  ;;  %6104 = vmatprep.subr.mxu0 %v8017_v11  ;;  %v7320_v7 = vld [vmem:[%s6881_s25 + $0x48] ss:$0 sm:$0xff] }
 0xe0d   : > { %6085 = vmatmul.mubr.msk.f32.vlgmr.msra.gmra.mxu1 %vm211_vm0, %v7208_v41  ;;  %6087 = vmatprep.subr.mxu1 %v8017_v11 }
 0xe0e   : > { %6088 = vmatpush3.msra.mxu1 %v6692_v9  ;;  %6095 = vmatprep.mubr.msk.f32.mxu1 %vm6600_vm1, %v8017_v11 }
 0xe0f   : > { %6089 = vmatprep.subr.mxu1 %v8017_v11 }
 0xe10   : > { %6090 = vmatpush3.msra.mxu1 %v6700_v10 }
 0xe11   : > { %6091 = vmatprep.subr.mxu1 %v8017_v11 }
 0xe12   : > { %6092 = vmatpush3.msra.mxu1 %v6707_v12 }
 0xe13   : > { %6093 = vmatprep.subr.mxu1 %v8017_v11 }
 0xe14   : > { %6094 = vmatpush3.msra.mxu1 %v6713_v13 }
 0xe15   : > { %6096 = vmatmul.mubr.msk.f32.vlgmr.msra.gmra.mxu1 %vm211_vm0, %v7212_v50  ;;  %6121 = vmatprep.subr.mxu1 %v8017_v11 }
 0xe16   : > { %6098 = vmatprep.mubr.msk.f32.mxu1 %vm6600_vm1, %v8017_v11  ;;  %6122 = vmatpush3.xpose.msk.msra.mxu1 %vm211_vm0, %v6718_v14 }
 0xe17   : > { %6123 = vmatprep.subr.mxu1 %v8017_v11 }
 0xe19   : > { %6099 = vmatmul.mubr.msk.f32.gmra.mxu1 %vm211_vm0, %v7214_v51 }
 0xe1a   : > { %6101 = vmatprep.mubr.msk.f32.mxu1 %vm6600_vm1, %v8017_v11  ;;  %6124 = vmatpush3.xpose.msk.msra.mxu1 %vm211_vm0, %v6729_v15 }
 0xe1b   : > { %6125 = vmatprep.subr.mxu1 %v8017_v11 }
 0xe1d   : > { %6102 = vmatmul.mubr.msk.f32.gmra.mxu1 %vm211_vm0, %v7218_v21 }
 0xe1e   : > { %6126 = vmatpush3.xpose.msk.msra.mxu1 %vm211_vm0, %v6745_v17  ;;  %6127 = vmatprep.mubr.msk.f32.mxu1 %vm6600_vm1, %v8017_v11 }
 0xe1f   : > { %6139 = vmatprep.subr.mxu1 %v8017_v11 }
 0xec5   : > { %v1789_v9 = vpop.f32.mrf.mxu1 }
 0xec6   : > { %v1790_v10 = vadd.f32 %v7320_v7, %v1789_v9 }
 0xec7   : > { %v6056_v12 = vpop.f32.mrf.mxu1 }
 0xec8   : > { %v1793_v13 = vmax.f32 %v1790_v10, 0.0 }
 0xeca   : > { %6074 = vmatmul.mubr.msk.f32.vlgmr.msra.gmra.mxu0 %vm960_vm4, %v1793_v13 }
 0xecb   : > { %6105 = vmatpush3.msra.mxu0 %v6686_v8  ;;  %6112 = vmatprep.mubr.msk.f32.mxu0 %vm6600_vm1, %v8017_v11 }
 0xecc   : > { %6106 = vmatprep.subr.mxu0 %v8017_v11 }
 0xecd   : > { %v2012_v14 = vpop.f32.mrf.mxu1  ;;  %6107 = vmatpush3.msra.mxu0 %v6741_v16 }
 0xece   : > { %v2013_v15 = vadd.f32 %v2012_v14, %v6786_v26  ;;  %6108 = vmatprep.subr.mxu0 %v8017_v11  ;;  %v7382_v14 = vsel %vm1899_vm5, -1e+09, %v8017_v11 }
 0xecf   : > { %v6086_v17 = vpop.f32.mrf.mxu1  ;;  %6109 = vmatpush3.msra.mxu0 %v6751_v18 }
 0xed0   : > { %v2202_v25 = vadd.f32 %v2013_v15, %v6790_v27  ;;  %6110 = vmatprep.subr.mxu0 %v8017_v11  ;;  %v2197_v0 = vadd.f32 %v2013_v15, %v6811_v42 }
 0xed1   : > { %6111 = vmatpush3.msra.mxu0 %v6755_v19 }
 0xed2   : > { %6128 = vmatmul.mubr.msk.f32.vlgmr.msra.gmra.mxu1 %vm211_vm0, %v2202_v25  ;;  %6113 = vmatmul.mubr.msk.f32.vlgmr.msra.gmra.mxu0 %vm211_vm0, %v7212_v50 }
 0xed3   : > { %6115 = vmatprep.mubr.msk.f32.mxu0 %vm6600_vm1, %v8017_v11  ;;  %6130 = vmatprep.subr.mxu0 %v8017_v11 }
 0xed4   : > { %6145 = vmatprep.mubr.msk.f32.mxu1 %vm6600_vm1, %v8017_v11 }
 0xed5   : > { %v2095_v8 = vpop.f32.mrf.mxu1 }
 0xed6   : > { %6116 = vmatmul.mubr.msk.f32.gmra.mxu0 %vm211_vm0, %v7214_v51  ;;  %v2096_v22 = vadd.f32 %v2095_v8, %v6802_v37 }
 0xed7   : > { %v6097_v16 = vpop.f32.mrf.mxu1  ;;  %6118 = vmatprep.mubr.msk.f32.mxu0 %vm6600_vm1, %v8017_v11 }
 0xed9   : > { %v2100_v18 = vpop.f32.mrf.mxu1 }
 0xeda   : > { %6119 = vmatmul.mubr.msk.f32.gmra.mxu0 %vm211_vm0, %v7218_v21  ;;  %v2101_v54 = vadd.f32 %v2100_v18, %v6802_v37 }
 0xedb   : > { %v6100_v19 = vpop.f32.mrf.mxu1  ;;  %6136 = vmatprep.mubr.msk.f32.mxu0 %vm6600_vm1, %v8017_v11 }
 0xedd   : > { %v2105_v26 = vpop.f32.mrf.mxu1 }
 0xede   : > { %v2106_v27 = vadd.f32 %v2105_v26, %v6802_v37 }
 0xedf   : > { %v6103_v61 = vpop.f32.mrf.mxu1 }
 0xee0   : > { %6131 = vmatpush3.xpose.msk.msra.mxu0 %vm211_vm0, %v2106_v27 }
 0xee1   : > { %6132 = vmatprep.subr.mxu0 %v8017_v11 }
 0xee4   : > { %6133 = vmatpush3.xpose.msk.msra.mxu0 %vm211_vm0, %v2101_v54 }
 0xee5   : > { %6134 = vmatprep.subr.mxu0 %v8017_v11 }
 0xee8   : > { %6135 = vmatpush3.xpose.msk.msra.mxu0 %vm211_vm0, %v2096_v22 }
 0xee9   : > { %6159 = vmatprep.subr.mxu0 %v8017_v11 }
 0xeeb   : > { %6137 = vmatmul.mubr.msk.f32.vlgmr.msra.gmra.mxu0 %vm211_vm0, %v2197_v0 }
 0xeec   : > { %6160 = vmatpush3.msra.mxu0 %v6884_v3  ;;  %6167 = vmatprep.mubr.msk.f32.mxu0 %vm6600_vm1, %v8017_v11 }
 0xeed   : > { %6161 = vmatprep.subr.mxu0 %v8017_v11 }
 0xeee   : > { %6162 = vmatpush3.msra.mxu0 %v6889_v55 }
 0xeef   : > { %6163 = vmatprep.subr.mxu0 %v8017_v11 }
 0xef0   : > { %6164 = vmatpush3.msra.mxu0 %v6892_v56 }
 0xef1   : > { %6165 = vmatprep.subr.mxu0 %v8017_v11 }
 0xef2   : > { %6166 = vmatpush3.msra.mxu0 %v6897_v58 }
 0xef3   : > { %6189 = vmatprep.subr.mxu0 %v8017_v11 }
 0xf8a   : > { %v7372_v37 = vpop.f32.mrf.mxu0 }
 0xf8c   : > { %v6075_v42 = vpop.f32.mrf.mxu0 }
 0xf92   : > { %v2281_v3 = vpop.f32.mrf.mxu1  ;;  %v2179_v50 = vpop.f32.mrf.mxu0 }
 0xf93   : > { %v2180_v10 = vadd.f32 %v2179_v50, %v6823_v48  ;;  %v8050_v50 = vld [vmem:[#allocation12_spill] sm:$0xff] }
 0xf94   : > { %v6129_v51 = vpop.f32.mrf.mxu1  ;;  %v6114_v21 = vpop.f32.mrf.mxu0 }
 0xf95   : > { %v8051_v51 = vld [vmem:[#allocation14_spill] sm:$0xff]  ;;  %v8053_v21 = vld [vmem:[#allocation7_spill] sm:$0xff] }
 0xf96   : > { %v2184_v32 = vpop.f32.mrf.mxu0 }
 0xf97   : > { %v2185_v52 = vadd.f32 %v2184_v32, %v6823_v48 }
 0xf98   : > { %v6117_v40 = vpop.f32.mrf.mxu0 }
 0xf9a   : > { %v2189_v55 = vpop.f32.mrf.mxu0 }
 0xf9b   : > { %v2190_v56 = vadd.f32 %v2189_v55, %v6823_v48 }
 0xf9c   : > { %v6120_v9 = vpop.f32.mrf.mxu0 }
 0xf9d   : > { %6140 = vmatpush3.msra.mxu1 %v2190_v56  ;;  %v8055_v56 = vld [vmem:[#allocation13_spill] sm:$0xff]  ;;  %v8056_v9 = vld [vmem:[#allocation15_spill] sm:$0xff] }
 0xf9e   : > { %6141 = vmatprep.subr.mxu1 %v8017_v11 }
 0xf9f   : > { %6142 = vmatpush3.msra.mxu1 %v2185_v52  ;;  %v8054_v52 = vld [vmem:[#allocation11_spill] sm:$0xff] }
 0xfa0   : > { %6143 = vmatprep.subr.mxu1 %v8017_v11 }
 0xfa1   : > { %6144 = vmatpush3.msra.mxu1 %v2180_v10  ;;  %v8057_v10 = vld [vmem:[#allocation17_spill] sm:$0xff] }
 0xfa2   : > { %6148 = vmatprep.subr.mxu1 %v8017_v11 }
 0xfab   : > { %v2363_v58 = vpop.f32.mrf.mxu0 }
 0xfac   : > { %v2364_v12 = vadd.f32 %v2363_v58, %v2281_v3  ;;  %v8049_v3 = vld [vmem:[#allocation10_spill] sm:$0xff]  ;;  %v8058_v58 = vld [vmem:[#allocation27_spill] sm:$0xff] }
 0xfad   : > { %v6138_v13 = vpop.f32.mrf.mxu0 }
 0xfae   : > { %v2367_v15 = vmul.f32 0.17677669, %v2364_v12  ;;  %v8059_v12 = vld [vmem:[#allocation28_spill] sm:$0xff] }
 0xfb0   : > { %v2368_v48 = vadd.f32 %v2367_v15, %v7382_v14  ;;  %v8060_v15 = vld [vmem:[#allocation9_spill] sm:$0xff] }
 0xfb2   : > { %v2369_v17 = vsel %vm691_vm3, %v2368_v48, -inf }
 0xfb3   : > { %2370 = vmax.xlane.f32.xlu0 %v2369_v17 }
0x103c   : > { %v2371_v25 = vpop.xlane.xlu0 %2370 }
0x103d   : > { %v2372_v8 = vsub.f32 %v2368_v48, %v2371_v25 }
0x103f   : > { %v2373_v16 = vmul.f32 1.442695, %v2372_v8 }
0x1041   : > { %6555 = vpow2.f32 %v2373_v16 }
0x104e   : > { %v6556_v18 = vpop.eup %6555 }
0x104f   : > { %v2375_v19 = vsel %vm691_vm3, %v6556_v18, 0.0 }
0x1050   : > { %2376 = vadd.xlane.f32.xlu1 %v2375_v19 }
0x10d9   : > { %v2377_v57 = vpop.xlane.xlu1 %2376 }
0x10da   : > { %6557 = vrcp.f32 %v2377_v57 }
0x10e7   : > { %v6558_v26 = vpop.eup %6557 }
0x10e8   : > { %v2379_v27 = vmul.f32 %v6558_v26, %v6556_v18 }
0x10ea   : > { %6146 = vmatmul.mubr.msk.f32.vlgmr.msra.gmra.mxu1 %vm691_vm3, %v2379_v27 }
0x10eb   : > { %6149 = vmatpush3.msra.mxu1 %v6841_v33  ;;  %6156 = vmatprep.mubr.msk.f32.mxu1 %vm6600_vm1, %v8017_v11 }
0x10ec   : > { %6150 = vmatprep.subr.mxu1 %v8017_v11 }
0x10ed   : > { %6151 = vmatpush3.msra.mxu1 %v6845_v34 }
0x10ee   : > { %6152 = vmatprep.subr.mxu1 %v8017_v11 }
0x10ef   : > { %6153 = vmatpush3.msra.mxu1 %v6852_v36 }
0x10f0   : > { %6154 = vmatprep.subr.mxu1 %v8017_v11 }
0x10f1   : > { %6155 = vmatpush3.msra.mxu1 %v6859_v38 }
0x10f2   : > { %6170 = vmatprep.subr.mxu1 %v8017_v11 }
0x11aa   : > { %v2449_v61 = vpop.f32.mrf.mxu1 }
0x11ab   : > { %6157 = vmatmul.mubr.msk.f32.vlgmr.msra.gmra.mxu1 %vm211_vm0, %v2449_v61 }
0x11ac   : > { %v6147_v33 = vpop.f32.mrf.mxu1  ;;  %6171 = vmatpush3.msra.mxu1 %v6903_v59  ;;  %6186 = vmatprep.mubr.msk.f32.mxu1 %vm6600_vm1, %v8017_v11 }
0x11ad   : > { %6172 = vmatprep.subr.mxu1 %v8017_v11 }
0x11ae   : > { %6173 = vmatpush3.msra.mxu1 %v6906_v60 }
0x11af   : > { %6174 = vmatprep.subr.mxu1 %v8017_v11 }
0x11b0   : > { %6175 = vmatpush3.msra.mxu1 %v6912_v62 }
0x11b1   : > { %6176 = vmatprep.subr.mxu1 %v8017_v11 }
0x11b2   : > { %6177 = vmatpush3.msra.mxu1 %v6917_v63 }
0x11b3   : > { %6178 = vmatprep.subr.mxu1 %v8017_v11 }
0x11b4   : > { %6179 = vmatpush3.msra.mxu1 %v6922_v5 }
0x11b5   : > { %6180 = vmatprep.subr.mxu1 %v8017_v11 }
0x11b6   : > { %6181 = vmatpush3.msra.mxu1 %v6948_v45 }
0x11b7   : > { %6182 = vmatprep.subr.mxu1 %v8017_v11 }
0x11b8   : > { %6183 = vmatpush3.msra.mxu1 %v6953_v46 }
0x11b9   : > { %6184 = vmatprep.subr.mxu1 %v8017_v11 }
0x11ba   : > { %6185 = vmatpush3.msra.mxu1 %v6958_v47 }
0x11bb   : > { %6217 = vmatprep.subr.mxu1 %v8017_v11 }
0x126b   : > { %v2526_v34 = vpop.f32.mrf.mxu1 }
0x126c   : > { %v2527_v36 = vadd.f32 %v2526_v34, %v6871_v43 }
0x126d   : > { %v6158_v38 = vpop.f32.mrf.mxu1 }
0x126e   : > { %v2530_v59 = vadd.f32 %v2527_v36, %v7208_v41 }
0x1270   : > { %v2531_v60 = vsel %vm211_vm0, %v2530_v59, 0.0 }
0x1271   : > { %2532 = vadd.xlane.f32.xlu0 %v2531_v60 }
0x12fa   : > { %v2533_v62 = vpop.xlane.xlu0 %2532 }
0x12fb   : > { %v2534_v63 = vmul.f32 0.03125, %v2533_v62 }
0x12fd   : > { %v2535_v5 = vsub.f32 %v2530_v59, %v2534_v63  ;;  %v8061_v63 = vld [vmem:[#allocation19_spill] sm:$0xff] }
0x12ff   : > { %v2536_v45 = vmul.f32 %v2535_v5, %v2535_v5 }
0x1301   : > { %v2537_v46 = vsel %vm211_vm0, %v2536_v45, 0.0  ;;  %v8062_v45 = vld [vmem:[#allocation20_spill] sm:$0xff] }
0x1302   : > { %2538 = vadd.xlane.f32.xlu1 %v2537_v46 }
0x138b   : > { %v2539_v54 = vpop.xlane.xlu1 %2538 }
0x138c   : > { %v2540_v47 = vmul.f32 0.03125, %v2539_v54  ;;  %v8063_v54 = vld [vmem:[#allocation21_spill] sm:$0xff] }
0x138e   : > { %v2541_v22 = vadd.f32 1e-05, %v2540_v47  ;;  %v8064_v47 = vld [vmem:[#allocation22_spill] sm:$0xff] }
0x1390   : > { %6559 = vrsqrt.f32 %v2541_v22  ;;  %v8065_v22 = vld [vmem:[#allocation23_spill] sm:$0xff] }
0x139d   : > { %v6560_v0 = vpop.eup %6559 }
0x139e   : > { %v2543_v42 = vmul.f32 %v6560_v0, %v2535_v5  ;;  %v8066_v0 = vld [vmem:[#allocation24_spill] sm:$0xff] }
0x13a0   : > { %v2548_v43 = vmul.f32 %v2543_v42, %v6936_v30  ;;  %v8052_v30 = vld [vmem:[#allocation16_spill] sm:$0xff] }
0x13a2   : > { %v2553_v41 = vadd.f32 %v2548_v43, %v6940_v39  ;;  %v8067_v43 = vld [vmem:[#allocation25_spill] sm:$0xff] }
0x13a4   : > { %6168 = vmatmul.mubr.msk.f32.vlgmr.msra.gmra.mxu0 %vm211_vm0, %v2553_v41 }
0x13a5   : > { %6190 = vmatpush3.msra.mxu0 %v8049_v3  ;;  %6197 = vmatprep.mubr.msk.f32.mxu0 %vm6600_vm1, %v8017_v11  ;;  %v7493_v3 = vld [vmem:[#allocation2 + $0x18] sm:$0xff] }
0x13a6   : > { %6191 = vmatprep.subr.mxu0 %v8017_v11 }
0x13a7   : > { %6192 = vmatpush3.msra.mxu0 %v8050_v50 }
0x13a8   : > { %6193 = vmatprep.subr.mxu0 %v8017_v11 }
0x13a9   : > { %6194 = vmatpush3.msra.mxu0 %v8051_v51  ;;  %v8069_v51 = vld [vmem:[#allocation29_spill] sm:$0xff] }
0x13aa   : > { %6195 = vmatprep.subr.mxu0 %v8017_v11 }
0x13ab   : > { %6196 = vmatpush3.msra.mxu0 %v8052_v30 }
0x13ac   : > { %6200 = vmatprep.subr.mxu0 %v8017_v11 }
0x1464   : > { %v2627_v39 = vpop.f32.mrf.mxu0 }
0x1465   : > { %v2628_v32 = vadd.f32 %v8053_v21, %v2627_v39 }
0x1466   : > { %v6169_v40 = vpop.f32.mrf.mxu0 }
0x1467   : > { %v2631_v55 = vmax.f32 %v2628_v32, 0.0  ;;  %v8070_v32 = vld [vmem:[#allocation30_spill] sm:$0xff] }
0x1469   : > { %6187 = vmatmul.mubr.msk.f32.vlgmr.msra.gmra.mxu1 %vm960_vm4, %v2631_v55 }
0x146a   : > { %6218 = vmatpush3.msra.mxu1 %v8054_v52  ;;  %6225 = vmatprep.mubr.msk.f32.mxu1 %vm6600_vm1, %v8017_v11 }
0x146b   : > { %6219 = vmatprep.subr.mxu1 %v8017_v11 }
0x146c   : > { %6220 = vmatpush3.msra.mxu1 %v8055_v56 }
0x146d   : > { %6221 = vmatprep.subr.mxu1 %v8017_v11 }
0x146e   : > { %6222 = vmatpush3.msra.mxu1 %v8056_v9 }
0x146f   : > { %6223 = vmatprep.subr.mxu1 %v8017_v11 }
0x1470   : > { %6224 = vmatpush3.msra.mxu1 %v8057_v10 }
0x1471   : > { %6226 = vmatmul.mubr.msk.f32.vlgmr.msra.gmra.mxu1 %vm211_vm0, %v8058_v58  ;;  %6243 = vmatprep.subr.mxu1 %v8017_v11 }
0x1472   : > { %6228 = vmatprep.mubr.msk.f32.mxu1 %vm6600_vm1, %v8017_v11 }
0x1475   : > { %6229 = vmatmul.mubr.msk.f32.gmra.mxu1 %vm211_vm0, %v8059_v12 }
0x1476   : > { %6231 = vmatprep.mubr.msk.f32.mxu1 %vm6600_vm1, %v8017_v11 }
0x1529   : > { %v2705_v13 = vpop.f32.mrf.mxu1 }
0x152a   : > { %v2706_v48 = vadd.f32 %v2705_v13, %v8060_v15 }
0x152b   : > { %v6188_v17 = vpop.f32.mrf.mxu1 }
0x152c   : > { %v2709_v25 = vadd.f32 %v2706_v48, %v2553_v41  ;;  %v8068_v41 = vld [vmem:[#allocation26_spill] sm:$0xff] }
0x152e   : > { %v2710_v8 = vsel %vm211_vm0, %v2709_v25, 0.0 }
0x152f   : > { %2711 = vadd.xlane.f32.xlu0 %v2710_v8 }
0x1531   : > { %v3013_v16 = vpop.f32.mrf.mxu1 }
0x1533   : > { %v6227_v18 = vpop.f32.mrf.mxu1 }
0x1535   : > { %v3018_v19 = vpop.f32.mrf.mxu1 }
0x1537   : > { %v6230_v57 = vpop.f32.mrf.mxu1 }
0x15b8   : > { %v2712_v26 = vpop.xlane.xlu0 %2711 }
0x15b9   : > { %v2713_v27 = vmul.f32 0.03125, %v2712_v26 }
0x15bb   : > { %v2714_v61 = vsub.f32 %v2709_v25, %v2713_v27 }
0x15bd   : > { %v2715_v33 = vmul.f32 %v2714_v61, %v2714_v61 }
0x15bf   : > { %v2716_v34 = vsel %vm211_vm0, %v2715_v33, 0.0 }
0x15c0   : > { %2717 = vadd.xlane.f32.xlu1 %v2716_v34 }
0x1649   : > { %v2718_v36 = vpop.xlane.xlu1 %2717 }
0x164a   : > { %v2719_v38 = vmul.f32 0.03125, %v2718_v36 }
0x164c   : > { %v2720_v59 = vadd.f32 1e-05, %v2719_v38 }
0x164e   : > { %6561 = vrsqrt.f32 %v2720_v59 }
0x165b   : > { %v6562_v60 = vpop.eup %6561 }
0x165c   : > { %v2722_v62 = vmul.f32 %v6562_v60, %v2714_v61 }
0x165e   : > { %v2727_v5 = vmul.f32 %v2722_v62, %v8061_v63  ;;  %v8073_v63 = vld [vmem:[#allocation31_spill] sm:$0xff] }
0x1660   : > { %v7459_v46 = vadd.f32 %v2727_v5, %v8062_v45  ;;  %v8075_v5 = vld [vmem:[#allocation33_spill] sm:$0xff]  ;;  %v8076_v45 = vld [vmem:[#allocation34_spill] sm:$0xff] }
0x1662   : > { %2735 = vst.msk [vmem:[#allocation2 + $0x28] sm:$0xff] %vm211_vm0, %v7459_v46  ;;  %6198 = vmatmul.mubr.msk.f32.vlgmr.msra.gmra.mxu0 %vm211_vm0, %v7459_v46 }
0x1663   : > { %6201 = vmatpush3.msra.mxu0 %v8063_v54  ;;  %6208 = vmatprep.mubr.msk.f32.mxu0 %vm6600_vm1, %v8017_v11 }
0x1664   : > { %6202 = vmatprep.subr.mxu0 %v8017_v11 }
0x1665   : > { %6203 = vmatpush3.msra.mxu0 %v8064_v47 }
0x1666   : > { %6204 = vmatprep.subr.mxu0 %v8017_v11 }
0x1667   : > { %6205 = vmatpush3.msra.mxu0 %v8065_v22  ;;  %v8077_v22 = vld [vmem:[#allocation38_spill] sm:$0xff] }
0x1668   : > { %6206 = vmatprep.subr.mxu0 %v8017_v11 }
0x1669   : > { %6207 = vmatpush3.msra.mxu0 %v8066_v0  ;;  %v2738_v42 = vld [vmem:[#allocation2 + $0x28] sm:$0xff]  ;;  %v8078_v0 = vld [vmem:[#allocation39_spill] sm:$0xff] }
0x166a   : > { %6209 = vmatmul.mubr.msk.f32.vlgmr.msra.gmra.mxu0 %vm211_vm0, %v8058_v58  ;;  %6232 = vmatmul.mubr.msk.f32.gmra.mxu1 %vm211_vm0, %v2738_v42  ;;  %3568 = vst.msk [vmem:[#allocation2 + $0x20] sm:$0xff] %vm211_vm0, %v2738_v42  ;;  %v3014_v58 = vadd.f32 %v3013_v16, %v7119_v44 }
0x166b   : > { %6211 = vmatprep.mubr.msk.f32.mxu0 %vm6600_vm1, %v8017_v11  ;;  %6234 = vmatprep.subr.mxu0 %v8017_v11 }
0x166c   : > { %6235 = vmatpush3.xpose.msk.msra.mxu0 %vm211_vm0, %v8067_v43  ;;  %6249 = vmatprep.mubr.msk.f32.mxu1 %vm6600_vm1, %v8017_v11  ;;  %v8080_v43 = vld [vmem:[#allocation41_spill] sm:$0xff] }
0x166d   : > { %6236 = vmatprep.subr.mxu0 %v8017_v11 }
0x166e   : > { %6212 = vmatmul.mubr.msk.f32.gmra.mxu0 %vm211_vm0, %v8059_v12  ;;  %v3019_v12 = vadd.f32 %v3018_v19, %v7119_v44 }
0x166f   : > { %6214 = vmatprep.mubr.msk.f32.mxu0 %vm6600_vm1, %v8017_v11 }
0x1670   : > { %6237 = vmatpush3.xpose.msk.msra.mxu0 %vm211_vm0, %v8068_v41  ;;  %v8081_v41 = vld [vmem:[#allocation42_spill] sm:$0xff] }
0x1671   : > { %6238 = vmatprep.subr.mxu0 %v8017_v11  ;;  %v7495_v50 = vld [vmem:[#allocation2 + $0x20] sm:$0xff] }
0x1672   : > { %6215 = vmatmul.mubr.msk.f32.gmra.mxu0 %vm211_vm0, %v2738_v42  ;;  %5235 = vst.msk [vmem:[#allocation2 + $0x18] sm:$0xff] %vm211_vm0, %v7495_v50  ;;  %v8079_v42 = vld [vmem:[#allocation40_spill] sm:$0xff] }
0x1673   : > { %6240 = vmatprep.mubr.msk.f32.mxu0 %vm6600_vm1, %v8017_v11 }
0x1674   : > { %6239 = vmatpush3.xpose.msk.msra.mxu0 %vm211_vm0, %v8069_v51 }
0x1675   : > { %6252 = vmatprep.subr.mxu0 %v8017_v11 }
0x1722   : > { %v2846_v30 = vpop.f32.mrf.mxu0 }
0x1723   : > { %v2847_v39 = vadd.f32 %v2846_v30, %v7110_v23  ;;  %v8082_v30 = vld [vmem:[#allocation35_spill] sm:$0xff] }
0x1724   : > { %v6199_v21 = vpop.f32.mrf.mxu0 }
0x1725   : > { %v3036_v40 = vadd.f32 %v2847_v39, %v8070_v32  ;;  %v3031_v8 = vadd.f32 %v2847_v39, %v7140_v24  ;;  %v8072_v24 = vld [vmem:[#allocation37_spill] sm:$0xff] }
0x1727   : > { %6241 = vmatmul.mubr.msk.f32.vlgmr.msra.gmra.mxu0 %vm211_vm0, %v3036_v40 }
0x1728   : > { %6258 = vmatprep.mubr.msk.f32.mxu0 %vm6600_vm1, %v8017_v11 }
0x172a   : > { %v2929_v55 = vpop.f32.mrf.mxu0  ;;  %v3023_v52 = vpop.f32.mrf.mxu1 }
0x172b   : > { %v3024_v56 = vadd.f32 %v3023_v52, %v7119_v44  ;;  %v2930_v25 = vadd.f32 %v2929_v55, %v7131_v53 }
0x172c   : > { %v6210_v9 = vpop.f32.mrf.mxu0  ;;  %v6233_v10 = vpop.f32.mrf.mxu1 }
0x172d   : > { %6253 = vmatpush3.msra.mxu0 %v3024_v56  ;;  %v7579_v9 = vld [vmem:[#allocation2] sm:$0xff] }
0x172e   : > { %v2934_v23 = vpop.f32.mrf.mxu0  ;;  %6254 = vmatprep.subr.mxu0 %v8017_v11 }
0x172f   : > { %6255 = vmatpush3.msra.mxu0 %v3019_v12  ;;  %v2935_v44 = vadd.f32 %v2934_v23, %v7131_v53 }
0x1730   : > { %v6213_v13 = vpop.f32.mrf.mxu0  ;;  %6256 = vmatprep.subr.mxu0 %v8017_v11 }
0x1731   : > { %6257 = vmatpush3.msra.mxu0 %v3014_v58 }
0x1732   : > { %v2939_v15 = vpop.f32.mrf.mxu0  ;;  %6261 = vmatprep.subr.mxu0 %v8017_v11 }
0x1733   : > { %v2940_v48 = vadd.f32 %v2939_v15, %v7131_v53  ;;  %v8071_v53 = vld [vmem:[#allocation36_spill] sm:$0xff] }
0x1734   : > { %v6216_v17 = vpop.f32.mrf.mxu0 }
0x1735   : > { %6244 = vmatpush3.xpose.msk.msra.mxu1 %vm211_vm0, %v2940_v48 }
0x1736   : > { %6245 = vmatprep.subr.mxu1 %v8017_v11 }
0x1739   : > { %6246 = vmatpush3.xpose.msk.msra.mxu1 %vm211_vm0, %v2935_v44  ;;  %v3578_v44 = vld [vmem:[%s6654_s18 + $0x18] sm:$0xff] }
0x173a   : > { %6247 = vmatprep.subr.mxu1 %v8017_v11 }
0x173d   : > { %6248 = vmatpush3.xpose.msk.msra.mxu1 %vm211_vm0, %v2930_v25  ;;  %v3577_v25 = vld [vmem:[%s6654_s18 + $0x10] sm:$0xff] }
0x173e   : > { %6272 = vmatprep.subr.mxu1 %v8017_v11 }
0x1740   : > { %6250 = vmatmul.mubr.msk.f32.vlgmr.msra.gmra.mxu1 %vm211_vm0, %v3031_v8  ;;  %v3576_v8 = vld [vmem:[%s6654_s18 + $0x8] sm:$0xff] }
0x1741   : > { %6273 = vmatpush3.msra.mxu1 %v7188_v35  ;;  %6280 = vmatprep.mubr.msk.f32.mxu1 %vm6600_vm1, %v8017_v11 }
0x1742   : > { %6274 = vmatprep.subr.mxu1 %v8017_v11 }
0x1743   : > { %6275 = vmatpush3.msra.mxu1 %v7193_v31 }
0x1744   : > { %6276 = vmatprep.subr.mxu1 %v8017_v11 }
0x1745   : > { %6277 = vmatpush3.msra.mxu1 %v8071_v53  ;;  %v3581_v53 = vld [vmem:[%s6654_s18 + $0x30] sm:$0xff] }
0x1746   : > { %6278 = vmatprep.subr.mxu1 %v8017_v11 }
0x1747   : > { %6279 = vmatpush3.msra.mxu1 %v8072_v24  ;;  %v3580_v24 = vld [vmem:[%s6654_s18 + $0x28] sm:$0xff] }
0x1748   : > { %6302 = vmatprep.subr.mxu1 %v8017_v11 }
0x17e7   : > { %v3115_v16 = vpop.f32.mrf.mxu0 }
0x17e9   : > { %v6242_v18 = vpop.f32.mrf.mxu0 }
0x17ea   : > { %v3601_v18 = vld [vmem:[%s6654_s18 + $0xd0] sm:$0xff] }
0x1800   : > { %v3197_v35 = vpop.f32.mrf.mxu1 }
0x1801   : > { %v3198_v19 = vadd.f32 %v3197_v35, %v3115_v16  ;;  %v3579_v16 = vld [vmem:[%s6654_s18 + $0x20] sm:$0xff]  ;;  %v3600_v35 = vld [vmem:[%s6654_s18 + $0xc8] sm:$0xff] }
0x1802   : > { %v6251_v57 = vpop.f32.mrf.mxu1 }
0x1803   : > { %v3201_v26 = vmul.f32 0.17677669, %v3198_v19  ;;  %v3599_v19 = vld [vmem:[%s6654_s18 + $0xc0] sm:$0xff] }
0x1805   : > { %v3202_v27 = vadd.f32 %v3201_v26, %v7382_v14  ;;  %v8074_v14 = vld [vmem:[#allocation32_spill] sm:$0xff] }
0x1807   : > { %v3203_v31 = vsel %vm691_vm3, %v3202_v27, -inf }
0x1808   : > { %3204 = vmax.xlane.f32.xlu0 %v3203_v31  ;;  %v7640_v31 = vld [vmem:[%s6654_s18 + $0xd8] sm:$0xff] }
0x1891   : > { %v3205_v61 = vpop.xlane.xlu0 %3204 }
0x1892   : > { %v3206_v33 = vsub.f32 %v3202_v27, %v3205_v61 }
0x1894   : > { %v3207_v34 = vmul.f32 1.442695, %v3206_v33  ;;  %v3586_v33 = vld [vmem:[%s6654_s18 + $0x58] sm:$0xff] }
0x1896   : > { %6563 = vpow2.f32 %v3207_v34  ;;  %v7644_v34 = vld [vmem:[%s6654_s18 + $0xe0] sm:$0xff] }
0x18a3   : > { %v6564_v36 = vpop.eup %6563 }
0x18a4   : > { %v3209_v38 = vsel %vm691_vm3, %v6564_v36, 0.0 }
0x18a5   : > { %3210 = vadd.xlane.f32.xlu1 %v3209_v38 }
0x192e   : > { %v3211_v59 = vpop.xlane.xlu1 %3210 }
0x192f   : > { %6565 = vrcp.f32 %v3211_v59  ;;  %v3585_v59 = vld [vmem:[%s6654_s18 + $0x50] sm:$0xff] }
0x193c   : > { %v6566_v60 = vpop.eup %6565 }
0x193d   : > { %v3213_v62 = vmul.f32 %v6566_v60, %v6564_v36  ;;  %v8083_v36 = vld [vmem:[#allocation3_spill] sm:$0xff]  ;;  %v8084_v60 = vld [vmem:[#allocation4_spill] sm:$0xff] }
0x193e   : > { %v3612_v38 = vrot.slane %v7640_v31, %v8083_v36 }
0x193f   : > { %6259 = vmatmul.mubr.msk.f32.vlgmr.msra.gmra.mxu0 %vm691_vm3, %v3213_v62  ;;  %v3584_v62 = vld [vmem:[%s6654_s18 + $0x48] sm:$0xff] }
0x1940   : > { %6262 = vmatpush3.msra.mxu0 %v8073_v63  ;;  %6269 = vmatprep.mubr.msk.f32.mxu0 %vm6600_vm1, %v8017_v11 }
0x1941   : > { %6263 = vmatprep.subr.mxu0 %v8017_v11 }
0x1942   : > { %6264 = vmatpush3.msra.mxu0 %v8074_v14 }
0x1943   : > { %6265 = vmatprep.subr.mxu0 %v8017_v11 }
0x1944   : > { %6266 = vmatpush3.msra.mxu0 %v8075_v5  ;;  %v3583_v5 = vld [vmem:[%s6654_s18 + $0x40] sm:$0xff] }
0x1945   : > { %6267 = vmatprep.subr.mxu0 %v8017_v11 }
0x1946   : > { %6268 = vmatpush3.msra.mxu0 %v8076_v45 }
0x1947   : > { %6283 = vmatprep.subr.mxu0 %v8017_v11 }
0x19ff   : > { %v3283_v54 = vpop.f32.mrf.mxu0 }
0x1a00   : > { %6270 = vmatmul.mubr.msk.f32.vlgmr.msra.gmra.mxu0 %vm211_vm0, %v3283_v54 }
0x1a01   : > { %v6260_v47 = vpop.f32.mrf.mxu0  ;;  %6284 = vmatpush3.msra.mxu0 %v8077_v22  ;;  %6299 = vmatprep.mubr.msk.f32.mxu0 %vm6600_vm1, %v8017_v11 }
0x1a02   : > { %6285 = vmatprep.subr.mxu0 %v8017_v11 }
0x1a03   : > { %6286 = vmatpush3.msra.mxu0 %v8078_v0 }
0x1a04   : > { %6287 = vmatprep.subr.mxu0 %v8017_v11 }
0x1a05   : > { %6288 = vmatpush3.msra.mxu0 %v8079_v42 }
0x1a06   : > { %6289 = vmatprep.subr.mxu0 %v8017_v11 }
0x1a07   : > { %6290 = vmatpush3.msra.mxu0 %v8080_v43  ;;  %v8085_v43 = vld [vmem:[#allocation5_spill] sm:$0xff] }
0x1a08   : > { %6291 = vmatprep.subr.mxu0 %v8017_v11 }
0x1a09   : > { %6292 = vmatpush3.msra.mxu0 %v8081_v41  ;;  %v3689_v41 = vrot.slane %v7640_v31, %v8085_v43 }
0x1a0a   : > { %6293 = vmatprep.subr.mxu0 %v8017_v11 }
0x1a0b   : > { %6294 = vmatpush3.msra.mxu0 %v7305_v1 }
0x1a0c   : > { %6295 = vmatprep.subr.mxu0 %v8017_v11 }
0x1a0d   : > { %6296 = vmatpush3.msra.mxu0 %v7310_v2 }
0x1a0e   : > { %6297 = vmatprep.subr.mxu0 %v8017_v11 }
0x1a0f   : > { %6298 = vmatpush3.msra.mxu0 %v7314_v4  ;;  %v7575_v4 = vld [vmem:[%s6667_s21 + $0x10] sm:$0xff] }
0x1a10   : > { %6330 = vmatprep.subr.mxu0 %v8017_v11  ;;  %3571 = vst.msk [vmem:[#allocation2 + $0x10] sm:$0xff] %vm211_vm0, %v7575_v4 }
0x1a17   : > { %v7585_v10 = vld [vmem:[#allocation2 + $0x10] sm:$0xff] }
0x1ac0   : > { %v3360_v51 = vpop.f32.mrf.mxu0 }
0x1ac1   : > { %v3361_v39 = vadd.f32 %v3360_v51, %v8082_v30 }
0x1ac2   : > { %v6271_v21 = vpop.f32.mrf.mxu0 }
0x1ac3   : > { %v3364_v32 = vadd.f32 %v3361_v39, %v7459_v46  ;;  %v7581_v46 = vld [vmem:[#allocation2 + $0x8] sm:$0xff] }
0x1ac4   : > { %4402 = vst.msk [vmem:[#allocation2] sm:$0xff] %vm211_vm0, %v7581_v46  ;;  %4403 = vst.msk [vmem:[#allocation2 + $0x8] sm:$0xff] %vm211_vm0, %v7585_v10 }
0x1ac5   : > { %v3365_v40 = vsel %vm211_vm0, %v3364_v32, 0.0 }
0x1ac6   : > { %3366 = vadd.xlane.f32.xlu0 %v3365_v40 }
0x1b4f   : > { %v3367_v1 = vpop.xlane.xlu0 %3366 }
0x1b50   : > { %v3368_v55 = vmul.f32 0.03125, %v3367_v1 }
0x1b52   : > { %v3369_v52 = vsub.f32 %v3364_v32, %v3368_v55  ;;  %v3866_v32 = vrot.slane %v7644_v34, %v8085_v43 }
0x1b54   : > { %v3370_v2 = vmul.f32 %v3369_v52, %v3369_v52 }
0x1b56   : > { %v3371_v56 = vsel %vm211_vm0, %v3370_v2, 0.0 }
0x1b57   : > { %3372 = vadd.xlane.f32.xlu1 %v3371_v56 }
0x1be0   : > { %v3373_v58 = vpop.xlane.xlu1 %3372 }
0x1be1   : > { %v3374_v12 = vmul.f32 0.03125, %v3373_v58  ;;  %v3782_v58 = vrot.slane %v7640_v31, %v8084_v60 }
0x1be3   : > { %v3375_v23 = vadd.f32 1e-05, %v3374_v12 }
0x1be5   : > { %6567 = vrsqrt.f32 %v3375_v23 }
0x1bf2   : > { %v6568_v13 = vpop.eup %6567 }
0x1bf3   : > { %v3377_v15 = vmul.f32 %v6568_v13, %v3369_v52 }
0x1bf5   : > { %v3382_v48 = vmul.f32 %v3377_v15, %v7249_v49  ;;  %v3575_v49 = vld [vmem:[%s6654_s18] sm:$0xff] }
0x1bf7   : > { %v7591_v17 = vadd.f32 %v3382_v48, %v7253_v6  ;;  %v3582_v6 = vld [vmem:[%s6654_s18 + $0x38] sm:$0xff] }
0x1bf9   : > { %6281 = vmatmul.mubr.msk.f32.vlgmr.msra.gmra.mxu1 %vm211_vm0, %v7591_v17 }
0x1bfa   : > { %6303 = vmatpush3.msra.mxu1 %v3578_v44  ;;  %6310 = vmatprep.mubr.msk.f32.mxu1 %vm6600_vm1, %v8017_v11 }
0x1bfb   : > { %6304 = vmatprep.subr.mxu1 %v8017_v11 }
0x1bfc   : > { %6305 = vmatpush3.msra.mxu1 %v3577_v25 }
0x1bfd   : > { %6306 = vmatprep.subr.mxu1 %v8017_v11 }
0x1bfe   : > { %6307 = vmatpush3.msra.mxu1 %v3576_v8 }
0x1bff   : > { %6308 = vmatprep.subr.mxu1 %v8017_v11 }
0x1c00   : > { %6309 = vmatpush3.msra.mxu1 %v3575_v49 }
0x1c01   : > { %6311 = vmatmul.mubr.msk.f32.vlgmr.msra.gmra.mxu1 %vm211_vm0, %v7575_v4  ;;  %6313 = vmatprep.subr.mxu1 %v8017_v11 }
0x1c02   : > { %6314 = vmatpush3.msra.mxu1 %v3582_v6  ;;  %6321 = vmatprep.mubr.msk.f32.mxu1 %vm6600_vm1, %v8017_v11 }
0x1c03   : > { %6315 = vmatprep.subr.mxu1 %v8017_v11 }
0x1c04   : > { %6316 = vmatpush3.msra.mxu1 %v3581_v53 }
0x1c05   : > { %6317 = vmatprep.subr.mxu1 %v8017_v11 }
0x1c06   : > { %6318 = vmatpush3.msra.mxu1 %v3580_v24 }
0x1c07   : > { %6319 = vmatprep.subr.mxu1 %v8017_v11 }
0x1c08   : > { %6320 = vmatpush3.msra.mxu1 %v3579_v16 }
0x1c09   : > { %6322 = vmatmul.mubr.msk.f32.vlgmr.msra.gmra.mxu1 %vm211_vm0, %v7579_v9  ;;  %6347 = vmatprep.subr.mxu1 %v8017_v11 }
0x1c0a   : > { %6324 = vmatprep.mubr.msk.f32.mxu1 %vm6600_vm1, %v8017_v11  ;;  %6348 = vmatpush3.xpose.msk.msra.mxu1 %vm211_vm0, %v3601_v18 }
0x1c0b   : > { %6349 = vmatprep.subr.mxu1 %v8017_v11 }
0x1c0d   : > { %6325 = vmatmul.mubr.msk.f32.gmra.mxu1 %vm211_vm0, %v7581_v46 }
0x1c0e   : > { %6327 = vmatprep.mubr.msk.f32.mxu1 %vm6600_vm1, %v8017_v11  ;;  %6350 = vmatpush3.xpose.msk.msra.mxu1 %vm211_vm0, %v3600_v35 }
0x1c0f   : > { %6351 = vmatprep.subr.mxu1 %v8017_v11 }
0x1c11   : > { %6328 = vmatmul.mubr.msk.f32.gmra.mxu1 %vm211_vm0, %v7585_v10 }
0x1c12   : > { %6353 = vmatprep.mubr.msk.f32.mxu1 %vm6600_vm1, %v8017_v11  ;;  %6352 = vmatpush3.xpose.msk.msra.mxu1 %vm211_vm0, %v3599_v19 }
0x1c13   : > { %6365 = vmatprep.subr.mxu1 %v8017_v11 }
0x1cb9   : > { %v3461_v57 = vpop.f32.mrf.mxu1 }
0x1cba   : > { %v3462_v26 = vadd.f32 %v7320_v7, %v3461_v57  ;;  %v3871_v7 = vrot.slane %v7644_v34, %v8084_v60 }
0x1cbb   : > { %v6282_v27 = vpop.f32.mrf.mxu1 }
0x1cbc   : > { %v3465_v61 = vmax.f32 %v3462_v26, 0.0 }
0x1cbe   : > { %6300 = vmatmul.mubr.msk.f32.vlgmr.msra.gmra.mxu0 %vm960_vm4, %v3465_v61  ;;  %v3590_v61 = vld [vmem:[%s6654_s18 + $0x78] sm:$0xff] }
0x1cbf   : > { %6331 = vmatpush3.msra.mxu0 %v3586_v33  ;;  %6338 = vmatprep.mubr.msk.f32.mxu0 %vm6600_vm1, %v8017_v11  ;;  %v3589_v33 = vld [vmem:[%s6654_s18 + $0x70] sm:$0xff] }
0x1cc0   : > { %6332 = vmatprep.subr.mxu0 %v8017_v11 }
0x1cc1   : > { %v3682_v63 = vpop.f32.mrf.mxu1  ;;  %6333 = vmatpush3.msra.mxu0 %v3585_v59  ;;  %v3587_v59 = vld [vmem:[%s6654_s18 + $0x60] sm:$0xff] }
0x1cc2   : > { %v3683_v14 = vadd.f32 %v3682_v63, %v3612_v38  ;;  %6334 = vmatprep.subr.mxu0 %v8017_v11  ;;  %v3588_v38 = vld [vmem:[%s6654_s18 + $0x68] sm:$0xff] }
0x1cc3   : > { %v6312_v45 = vpop.f32.mrf.mxu1  ;;  %6335 = vmatpush3.msra.mxu0 %v3584_v62  ;;  %v8086_v63 = vld [vmem:[#allocation6_spill] sm:$0xff] }
0x1cc4   : > { %v3872_v54 = vadd.f32 %v3871_v7, %v3683_v14  ;;  %6336 = vmatprep.subr.mxu0 %v8017_v11  ;;  %v3867_v1 = vadd.f32 %v3866_v32, %v3683_v14  ;;  %v4125_v14 = vrot.slane %v7640_v31, %v8086_v63  ;;  %v3604_v32 = vld [vmem:[%s6881_s25] sm:$0xff] }
0x1cc5   : > { %6337 = vmatpush3.msra.mxu0 %v3583_v5 }
0x1cc6   : > { %6354 = vmatmul.mubr.msk.f32.vlgmr.msra.gmra.mxu1 %vm211_vm0, %v3872_v54  ;;  %6339 = vmatmul.mubr.msk.f32.vlgmr.msra.gmra.mxu0 %vm211_vm0, %v7579_v9 }
0x1cc7   : > { %6341 = vmatprep.mubr.msk.f32.mxu0 %vm6600_vm1, %v8017_v11  ;;  %6356 = vmatprep.subr.mxu0 %v8017_v11 }
0x1cc8   : > { %6371 = vmatprep.mubr.msk.f32.mxu1 %vm6600_vm1, %v8017_v11 }
0x1cc9   : > { %v3765_v47 = vpop.f32.mrf.mxu1 }
0x1cca   : > { %6342 = vmatmul.mubr.msk.f32.gmra.mxu0 %vm211_vm0, %v7581_v46  ;;  %v3766_v40 = vadd.f32 %v3765_v47, %v3689_v41 }
0x1ccb   : > { %v6323_v22 = vpop.f32.mrf.mxu1  ;;  %6344 = vmatprep.mubr.msk.f32.mxu0 %vm6600_vm1, %v8017_v11 }
0x1ccd   : > { %v3770_v0 = vpop.f32.mrf.mxu1 }
0x1cce   : > { %6345 = vmatmul.mubr.msk.f32.gmra.mxu0 %vm211_vm0, %v7585_v10  ;;  %v3771_v21 = vadd.f32 %v3770_v0, %v3689_v41 }
0x1ccf   : > { %v6326_v42 = vpop.f32.mrf.mxu1  ;;  %6362 = vmatprep.mubr.msk.f32.mxu0 %vm6600_vm1, %v8017_v11 }
0x1cd1   : > { %v3775_v51 = vpop.f32.mrf.mxu1 }
0x1cd2   : > { %v3776_v30 = vadd.f32 %v3775_v51, %v3689_v41 }
0x1cd3   : > { %v6329_v39 = vpop.f32.mrf.mxu1 }
0x1cd4   : > { %6357 = vmatpush3.xpose.msk.msra.mxu0 %vm211_vm0, %v3776_v30  ;;  %v3607_v39 = vld [vmem:[%s6881_s25 + $0x18] sm:$0xff] }
0x1cd5   : > { %6358 = vmatprep.subr.mxu0 %v8017_v11 }
0x1cd8   : > { %6359 = vmatpush3.xpose.msk.msra.mxu0 %vm211_vm0, %v3771_v21  ;;  %v3606_v21 = vld [vmem:[%s6881_s25 + $0x10] sm:$0xff] }
0x1cd9   : > { %6360 = vmatprep.subr.mxu0 %v8017_v11 }
0x1cdc   : > { %6361 = vmatpush3.xpose.msk.msra.mxu0 %vm211_vm0, %v3766_v40  ;;  %v3598_v40 = vld [vmem:[%s6654_s18 + $0xb8] sm:$0xff] }
0x1cdd   : > { %6385 = vmatprep.subr.mxu0 %v8017_v11 }
0x1cdf   : > { %6363 = vmatmul.mubr.msk.f32.vlgmr.msra.gmra.mxu0 %vm211_vm0, %v3867_v1  ;;  %v3597_v1 = vld [vmem:[%s6654_s18 + $0xb0] sm:$0xff] }
0x1ce0   : > { %6393 = vmatprep.mubr.msk.f32.mxu0 %vm6600_vm1, %v8017_v11  ;;  %6386 = vmatpush3.msra.mxu0 %v3607_v39  ;;  %v5494_v39 = vld [vmem:[%s6654_s18 + $0xe8] sm:$0xff] }
0x1ce1   : > { %6387 = vmatprep.subr.mxu0 %v8017_v11 }
0x1ce2   : > { %6388 = vmatpush3.msra.mxu0 %v3606_v21 }
0x1ce3   : > { %6389 = vmatprep.subr.mxu0 %v8017_v11 }
0x1d7e   : > { %v7688_v55 = vpop.f32.mrf.mxu0 }
0x1d80   : > { %v6301_v52 = vpop.f32.mrf.mxu0 }
0x1d81   : > { %v3596_v52 = vld [vmem:[%s6654_s18 + $0xa8] sm:$0xff] }
0x1d86   : > { %v3951_v2 = vpop.f32.mrf.mxu1  ;;  %v3849_v56 = vpop.f32.mrf.mxu0 }
0x1d87   : > { %v3850_v44 = vadd.f32 %v3849_v56, %v3782_v58  ;;  %v3594_v56 = vld [vmem:[%s6654_s18 + $0x98] sm:$0xff] }
0x1d88   : > { %v6355_v9 = vpop.f32.mrf.mxu1  ;;  %v6340_v46 = vpop.f32.mrf.mxu0 }
0x1d89   : > { %v3593_v9 = vld [vmem:[%s6654_s18 + $0x90] sm:$0xff] }
0x1d8a   : > { %v3854_v10 = vpop.f32.mrf.mxu0 }
0x1d8b   : > { %v3855_v13 = vadd.f32 %v3854_v10, %v3782_v58 }
0x1d8c   : > { %v6343_v12 = vpop.f32.mrf.mxu0 }
0x1d8d   : > { %v4216_v12 = vrot.slane %v7640_v31, %v6929_v28 }
0x1d8e   : > { %v3859_v23 = vpop.f32.mrf.mxu0 }
0x1d8f   : > { %v3860_v15 = vadd.f32 %v3859_v23, %v3782_v58 }
0x1d90   : > { %v6346_v48 = vpop.f32.mrf.mxu0 }
0x1d91   : > { %6366 = vmatpush3.msra.mxu1 %v3860_v15  ;;  %v4221_v15 = vrot.slane %v7640_v31, %v6932_v29 }
0x1d92   : > { %6367 = vmatprep.subr.mxu1 %v8017_v11 }
0x1d93   : > { %6368 = vmatpush3.msra.mxu1 %v3855_v13 }
0x1d94   : > { %6369 = vmatprep.subr.mxu1 %v8017_v11 }
0x1d95   : > { %6370 = vmatpush3.msra.mxu1 %v3850_v44 }
0x1d96   : > { %6374 = vmatprep.subr.mxu1 %v8017_v11 }
0x1d9f   : > { %v4033_v25 = vpop.f32.mrf.mxu0 }
0x1da0   : > { %v4034_v8 = vadd.f32 %v4033_v25, %v3951_v2  ;;  %v3595_v2 = vld [vmem:[%s6654_s18 + $0xa0] sm:$0xff]  ;;  %v3592_v25 = vld [vmem:[%s6654_s18 + $0x88] sm:$0xff] }
0x1da1   : > { %v6364_v49 = vpop.f32.mrf.mxu0 }
0x1da2   : > { %v4037_v6 = vmul.f32 0.17677669, %v4034_v8  ;;  %v3591_v8 = vld [vmem:[%s6654_s18 + $0x80] sm:$0xff] }
0x1da3   : > { %v5491_v49 = vld [vmem:[%s6881_s25 + $0x20] ss:$0 sm:$0xff] }
0x1da4   : > { %v4038_v53 = vsel %vm691_vm3, %v4037_v6, -inf }
0x1da5   : > { %4039 = vmax.xlane.f32.xlu0 %v4038_v53 }
0x1e2e   : > { %v4040_v24 = vpop.xlane.xlu0 %4039 }
0x1e2f   : > { %v4041_v16 = vsub.f32 %v4037_v6, %v4040_v24 }
0x1e31   : > { %v4042_v18 = vmul.f32 1.442695, %v4041_v16 }
0x1e33   : > { %6569 = vpow2.f32 %v4042_v18  ;;  %v5505_v18 = vld [vmem:[%s6654_s18 + $0x140] sm:$0xff] }
0x1e40   : > { %v6570_v35 = vpop.eup %6569 }
0x1e41   : > { %v4044_v19 = vsel %vm691_vm3, %v6570_v35, 0.0 }
0x1e42   : > { %4045 = vadd.xlane.f32.xlu1 %v4044_v19  ;;  %v5503_v19 = vld [vmem:[%s6654_s18 + $0x130] sm:$0xff] }
0x1ecb   : > { %v4046_v57 = vpop.xlane.xlu1 %4045 }
0x1ecc   : > { %6571 = vrcp.f32 %v4046_v57  ;;  %v5502_v57 = vld [vmem:[%s6654_s18 + $0x128] sm:$0xff] }
0x1ed9   : > { %v6572_v26 = vpop.eup %6571 }
0x1eda   : > { %v4048_v27 = vmul.f32 %v6572_v26, %v6570_v35  ;;  %v5504_v35 = vld [vmem:[%s6654_s18 + $0x138] sm:$0xff] }
0x1edb   : > { %v8087_v26 = vld [vmem:[#allocation8_spill] sm:$0xff] }
0x1edc   : > { %6372 = vmatmul.mubr.msk.f32.vlgmr.msra.gmra.mxu1 %vm691_vm3, %v4048_v27  ;;  %v4304_v27 = vrot.slane %v7640_v31, %v8087_v26 }
0x1edd   : > { %6375 = vmatpush3.msra.mxu1 %v3590_v61  ;;  %6382 = vmatprep.mubr.msk.f32.mxu1 %vm6600_vm1, %v8017_v11 }
0x1ede   : > { %6376 = vmatprep.subr.mxu1 %v8017_v11 }
0x1edf   : > { %6377 = vmatpush3.msra.mxu1 %v3589_v33 }
0x1ee0   : > { %6378 = vmatprep.subr.mxu1 %v8017_v11 }
0x1ee1   : > { %6379 = vmatpush3.msra.mxu1 %v3588_v38 }
0x1ee2   : > { %6380 = vmatprep.subr.mxu1 %v8017_v11 }
0x1ee3   : > { %6381 = vmatpush3.msra.mxu1 %v3587_v59 }
0x1ee4   : > { %6396 = vmatprep.subr.mxu1 %v8017_v11 }
0x1f9c   : > { %v4118_v7 = vpop.f32.mrf.mxu1 }
0x1f9d   : > { %6383 = vmatmul.mubr.msk.f32.vlgmr.msra.gmra.mxu1 %vm211_vm0, %v4118_v7 }
0x1f9e   : > { %v6373_v62 = vpop.f32.mrf.mxu1  ;;  %6412 = vmatprep.mubr.msk.f32.mxu1 %vm6600_vm1, %v8017_v11  ;;  %6397 = vmatpush3.msra.mxu1 %v3598_v40  ;;  %v8088_v40 = vld [vmem:[#allocation18_spill] sm:$0xff] }
0x1f9f   : > { %6398 = vmatprep.subr.mxu1 %v8017_v11 }
0x1fa0   : > { %6399 = vmatpush3.msra.mxu1 %v3597_v1  ;;  %v4395_v1 = vrot.slane %v7640_v31, %v8088_v40  ;;  %v5499_v31 = vld [vmem:[%s6654_s18 + $0x110] sm:$0xff] }
0x1fa1   : > { %6400 = vmatprep.subr.mxu1 %v8017_v11 }
0x1fa2   : > { %6401 = vmatpush3.msra.mxu1 %v3596_v52 }
0x1fa3   : > { %6402 = vmatprep.subr.mxu1 %v8017_v11 }
0x1fa4   : > { %6403 = vmatpush3.msra.mxu1 %v3595_v2  ;;  %v4400_v2 = vrot.slane %v7644_v34, %v8083_v36  ;;  %v5498_v34 = vld [vmem:[%s6654_s18 + $0x108] sm:$0xff] }
0x1fa5   : > { %6404 = vmatprep.subr.mxu1 %v8017_v11 }
0x1fa6   : > { %6405 = vmatpush3.msra.mxu1 %v3594_v56 }
0x1fa7   : > { %6406 = vmatprep.subr.mxu1 %v8017_v11 }
0x1fa8   : > { %6407 = vmatpush3.msra.mxu1 %v3593_v9 }
0x1fa9   : > { %6408 = vmatprep.subr.mxu1 %v8017_v11 }
0x1faa   : > { %6409 = vmatpush3.msra.mxu1 %v3592_v25 }
0x1fab   : > { %6410 = vmatprep.subr.mxu1 %v8017_v11 }
0x1fac   : > { %6411 = vmatpush3.msra.mxu1 %v3591_v8 }
0x1fad   : > { %6443 = vmatprep.subr.mxu1 %v8017_v11 }
0x205d   : > { %v4195_v5 = vpop.f32.mrf.mxu1 }
0x205e   : > { %v4196_v45 = vadd.f32 %v4195_v5, %v4125_v14 }
0x205f   : > { %v6384_v54 = vpop.f32.mrf.mxu1 }
0x2060   : > { %v4199_v47 = vadd.f32 %v4196_v45, %v7575_v4  ;;  %v3605_v4 = vld [vmem:[%s6881_s25 + $0x8] sm:$0xff] }
0x2061   : > { %6390 = vmatpush3.msra.mxu0 %v3605_v4 }
0x2062   : > { %v4200_v22 = vsel %vm211_vm0, %v4199_v47, 0.0  ;;  %6391 = vmatprep.subr.mxu0 %v8017_v11 }
0x2063   : > { %4201 = vadd.xlane.f32.xlu0 %v4200_v22  ;;  %6392 = vmatpush3.msra.mxu0 %v3604_v32 }
0x2064   : > { %6415 = vmatprep.subr.mxu0 %v8017_v11 }
0x20ec   : > { %v4202_v0 = vpop.xlane.xlu0 %4201 }
0x20ed   : > { %v4203_v42 = vmul.f32 0.03125, %v4202_v0 }
0x20ef   : > { %v4204_v41 = vsub.f32 %v4199_v47, %v4203_v42 }
0x20f1   : > { %v4205_v51 = vmul.f32 %v4204_v41, %v4204_v41 }
0x20f3   : > { %v4206_v30 = vsel %vm211_vm0, %v4205_v51, 0.0  ;;  %v5496_v51 = vld [vmem:[%s6654_s18 + $0xf8] sm:$0xff] }
0x20f4   : > { %4207 = vadd.xlane.f32.xlu1 %v4206_v30  ;;  %v5495_v30 = vld [vmem:[%s6654_s18 + $0xf0] sm:$0xff] }
0x217d   : > { %v4208_v46 = vpop.xlane.xlu1 %4207 }
0x217e   : > { %v4209_v10 = vmul.f32 0.03125, %v4208_v46 }
0x2180   : > { %v4210_v58 = vadd.f32 1e-05, %v4209_v10  ;;  %v5501_v10 = vld [vmem:[%s6654_s18 + $0x120] sm:$0xff] }
0x2182   : > { %6573 = vrsqrt.f32 %v4210_v58  ;;  %v5500_v58 = vld [vmem:[%s6654_s18 + $0x118] sm:$0xff] }
0x218f   : > { %v6574_v23 = vpop.eup %6573 }
0x2190   : > { %v4212_v13 = vmul.f32 %v6574_v23, %v4204_v41  ;;  %v5497_v41 = vld [vmem:[%s6654_s18 + $0x100] sm:$0xff]  ;;  %v5520_v23 = vld [vmem:[%s6654_s18 + $0x1b8] sm:$0xff] }
0x2192   : > { %v4217_v48 = vmul.f32 %v4216_v12, %v4212_v13  ;;  %v5519_v13 = vld [vmem:[%s6654_s18 + $0x1b0] sm:$0xff] }
0x2194   : > { %v4222_v44 = vadd.f32 %v4221_v15, %v4217_v48  ;;  %v7828_v15 = vld [vmem:[%s6654_s18 + $0x1c0] sm:$0xff] }
0x2195   : > { %v4445_v48 = vrot.slane %v7828_v15, %v8083_v36 }
0x2196   : > { %6394 = vmatmul.mubr.msk.f32.vlgmr.msra.gmra.mxu0 %vm211_vm0, %v4222_v44 }
0x2197   : > { %6423 = vmatprep.mubr.msk.f32.mxu0 %vm6600_vm1, %v8017_v11  ;;  %6416 = vmatpush3.msra.mxu0 %v5497_v41 }
0x2198   : > { %6417 = vmatprep.subr.mxu0 %v8017_v11 }
0x2199   : > { %6418 = vmatpush3.msra.mxu0 %v5496_v51 }
0x219a   : > { %6419 = vmatprep.subr.mxu0 %v8017_v11 }
0x219b   : > { %6420 = vmatpush3.msra.mxu0 %v5495_v30 }
0x219c   : > { %6421 = vmatprep.subr.mxu0 %v8017_v11 }
0x219d   : > { %6422 = vmatpush3.msra.mxu0 %v5494_v39 }
0x219e   : > { %6426 = vmatprep.subr.mxu0 %v8017_v11 }
0x2256   : > { %v4296_v6 = vpop.f32.mrf.mxu0 }
0x2257   : > { %v4297_v53 = vadd.f32 %v5491_v49, %v4296_v6 }
0x2258   : > { %v6395_v24 = vpop.f32.mrf.mxu0 }
0x2259   : > { %v4300_v16 = vmax.f32 %v4297_v53, 0.0  ;;  %v4615_v53 = vrot.slane %v7828_v15, %v8084_v60 }
0x225b   : > { %6413 = vmatmul.mubr.msk.f32.vlgmr.msra.gmra.mxu1 %vm960_vm4, %v4300_v16 }
0x225c   : > { %6444 = vmatpush3.msra.mxu1 %v5505_v18  ;;  %6451 = vmatprep.mubr.msk.f32.mxu1 %vm6600_vm1, %v8017_v11 }
0x225d   : > { %6445 = vmatprep.subr.mxu1 %v8017_v11 }
0x225e   : > { %6446 = vmatpush3.msra.mxu1 %v5504_v35 }
0x225f   : > { %6447 = vmatprep.subr.mxu1 %v8017_v11 }
0x2260   : > { %6448 = vmatpush3.msra.mxu1 %v5503_v19 }
0x2261   : > { %6449 = vmatprep.subr.mxu1 %v8017_v11 }
0x2262   : > { %6450 = vmatpush3.msra.mxu1 %v5502_v57 }
0x2263   : > { %6452 = vmatmul.mubr.msk.f32.vlgmr.msra.gmra.mxu1 %vm211_vm0, %v7493_v3  ;;  %6469 = vmatprep.subr.mxu1 %v8017_v11 }
0x2264   : > { %6454 = vmatprep.mubr.msk.f32.mxu1 %vm6600_vm1, %v8017_v11 }
0x2267   : > { %6455 = vmatmul.mubr.msk.f32.gmra.mxu1 %vm211_vm0, %v7495_v50 }
0x2268   : > { %6457 = vmatprep.mubr.msk.f32.mxu1 %vm6600_vm1, %v8017_v11 }
0x231b   : > { %v4374_v61 = vpop.f32.mrf.mxu1 }
0x231c   : > { %v4375_v33 = vadd.f32 %v4374_v61, %v4304_v27 }
0x231d   : > { %v6414_v38 = vpop.f32.mrf.mxu1 }
0x231e   : > { %v4378_v59 = vadd.f32 %v4375_v33, %v4222_v44 }
0x2320   : > { %v4379_v7 = vsel %vm211_vm0, %v4378_v59, 0.0 }
0x2321   : > { %4380 = vadd.xlane.f32.xlu0 %v4379_v7 }
0x2323   : > { %v7770_v62 = vpop.f32.mrf.mxu1 }
0x2324   : > { %v4683_v61 = vadd.f32 %v7770_v62, %v4615_v53 }
0x2325   : > { %v6453_v14 = vpop.f32.mrf.mxu1 }
0x2327   : > { %v7772_v5 = vpop.f32.mrf.mxu1 }
0x2328   : > { %v4688_v57 = vadd.f32 %v7772_v5, %v4615_v53 }
0x2329   : > { %v6456_v45 = vpop.f32.mrf.mxu1 }
0x23aa   : > { %v4381_v54 = vpop.xlane.xlu0 %4380 }
0x23ab   : > { %v4382_v47 = vmul.f32 0.03125, %v4381_v54 }
0x23ad   : > { %v4383_v22 = vsub.f32 %v4378_v59, %v4382_v47 }
0x23af   : > { %v4384_v0 = vmul.f32 %v4383_v22, %v4383_v22 }
0x23b1   : > { %v4385_v42 = vsel %vm211_vm0, %v4384_v0, 0.0 }
0x23b2   : > { %4386 = vadd.xlane.f32.xlu1 %v4385_v42 }
0x243b   : > { %v4387_v21 = vpop.xlane.xlu1 %4386 }
0x243c   : > { %v4388_v4 = vmul.f32 0.03125, %v4387_v21 }
0x243e   : > { %v4389_v32 = vadd.f32 1e-05, %v4388_v4 }
0x2440   : > { %6575 = vrsqrt.f32 %v4389_v32 }
0x244d   : > { %v6576_v52 = vpop.eup %6575 }
0x244e   : > { %v4391_v56 = vmul.f32 %v6576_v52, %v4383_v22 }
0x2450   : > { %v4396_v9 = vmul.f32 %v4395_v1, %v4391_v56  ;;  %v5508_v56 = vld [vmem:[%s6654_s18 + $0x158] sm:$0xff] }
0x2452   : > { %v7787_v46 = vadd.f32 %v4400_v2, %v4396_v9  ;;  %v5509_v2 = vld [vmem:[%s6654_s18 + $0x160] sm:$0xff]  ;;  %v5507_v9 = vld [vmem:[%s6654_s18 + $0x150] sm:$0xff] }
0x2454   : > { %4404 = vst.msk [vmem:[#allocation2 + $0x28] sm:$0xff] %vm211_vm0, %v7787_v46  ;;  %6424 = vmatmul.mubr.msk.f32.vlgmr.msra.gmra.mxu0 %vm211_vm0, %v7787_v46 }
0x2455   : > { %6427 = vmatpush3.msra.mxu0 %v5501_v10  ;;  %6434 = vmatprep.mubr.msk.f32.mxu0 %vm6600_vm1, %v8017_v11  ;;  %v5506_v10 = vld [vmem:[%s6654_s18 + $0x148] sm:$0xff] }
0x2456   : > { %6428 = vmatprep.subr.mxu0 %v8017_v11 }
0x2457   : > { %6429 = vmatpush3.msra.mxu0 %v5500_v58 }
0x2458   : > { %6430 = vmatprep.subr.mxu0 %v8017_v11 }
0x2459   : > { %6431 = vmatpush3.msra.mxu0 %v5499_v31 }
0x245a   : > { %6432 = vmatprep.subr.mxu0 %v8017_v11 }
0x245b   : > { %6433 = vmatpush3.msra.mxu0 %v5498_v34  ;;  %v4407_v12 = vld [vmem:[#allocation2 + $0x28] sm:$0xff]  ;;  %v7877_v34 = vld [vmem:[%s6654_s18 + $0x1c0] sm:$0xff] }
0x245c   : > { %6435 = vmatmul.mubr.msk.f32.vlgmr.msra.gmra.mxu0 %vm211_vm0, %v7493_v3  ;;  %6458 = vmatmul.mubr.msk.f32.gmra.mxu1 %vm211_vm0, %v4407_v12  ;;  %5236 = vst.msk [vmem:[#allocation2 + $0x20] sm:$0xff] %vm211_vm0, %v4407_v12  ;;  %v5518_v3 = vld [vmem:[%s6654_s18 + $0x1a8] sm:$0xff] }
0x245d   : > { %6437 = vmatprep.mubr.msk.f32.mxu0 %vm6600_vm1, %v8017_v11  ;;  %6460 = vmatprep.subr.mxu0 %v8017_v11 }
0x245e   : > { %6461 = vmatpush3.xpose.msk.msra.mxu0 %vm211_vm0, %v5520_v23  ;;  %6475 = vmatprep.mubr.msk.f32.mxu1 %vm6600_vm1, %v8017_v11  ;;  %v4958_v23 = vrot.slane %v7828_v15, %v8086_v63 }
0x245f   : > { %6462 = vmatprep.subr.mxu0 %v8017_v11 }
0x2460   : > { %6438 = vmatmul.mubr.msk.f32.gmra.mxu0 %vm211_vm0, %v7495_v50  ;;  %v7831_v50 = vld [vmem:[%s6654_s18 + $0x1c8] sm:$0xff] }
0x2461   : > { %6440 = vmatprep.mubr.msk.f32.mxu0 %vm6600_vm1, %v8017_v11  ;;  %v4704_v44 = vrot.slane %v7831_v50, %v8084_v60  ;;  %v4522_v60 = vrot.slane %v7828_v15, %v8085_v43  ;;  %v4699_v62 = vrot.slane %v7831_v50, %v8085_v43 }
0x2462   : > { %6463 = vmatpush3.xpose.msk.msra.mxu0 %vm211_vm0, %v5519_v13 }
0x2463   : > { %6464 = vmatprep.subr.mxu0 %v8017_v11 }
0x2464   : > { %6441 = vmatmul.mubr.msk.f32.gmra.mxu0 %vm211_vm0, %v4407_v12  ;;  %v1797_v12 = vrot.slane %v7877_v34, %v8087_v26 }
0x2465   : > { %6466 = vmatprep.mubr.msk.f32.mxu0 %vm6600_vm1, %v8017_v11 }
0x2466   : > { %6465 = vmatpush3.xpose.msk.msra.mxu0 %vm211_vm0, %v5518_v3  ;;  %v1868_v3 = vadd.f32 %v7372_v37, %v1797_v12  ;;  %v3540_v63 = vadd.f32 %v7688_v55, %v1797_v12 }
0x2467   : > { %6478 = vmatprep.subr.mxu0 %v8017_v11 }
0x2514   : > { %v4515_v25 = vpop.f32.mrf.mxu0 }
0x2515   : > { %v4516_v8 = vadd.f32 %v4515_v25, %v4445_v48 }
0x2516   : > { %v6425_v49 = vpop.f32.mrf.mxu0 }
0x2517   : > { %v4705_v6 = vadd.f32 %v4704_v44, %v4516_v8  ;;  %v4700_v45 = vadd.f32 %v4699_v62, %v4516_v8  ;;  %v1871_v49 = vadd.f32 %v1868_v3, %v7257_v20  ;;  %v7891_v20 = vadd.f32 %v3540_v63, %v7591_v17  ;;  %v5525_v17 = vld [vmem:[%s6881_s25 + $0x38] sm:$0xff]  ;;  %v5513_v62 = vld [vmem:[%s6654_s18 + $0x180] sm:$0xff] }
0x2518   : > { %v5137_v3 = vrot.slane %v7828_v15, %v8087_v26 }
0x2519   : > { %6467 = vmatmul.mubr.msk.f32.vlgmr.msra.gmra.mxu0 %vm211_vm0, %v4705_v6  ;;  %v1872_v6 = vsel %vm211_vm0, %v1871_v49, 0.0 }
0x251a   : > { %6484 = vmatprep.mubr.msk.f32.mxu0 %vm6600_vm1, %v8017_v11 }
0x251c   : > { %v4598_v24 = vpop.f32.mrf.mxu0  ;;  %v4692_v16 = vpop.f32.mrf.mxu1 }
0x251d   : > { %v4693_v18 = vadd.f32 %v4692_v16, %v4615_v53  ;;  %v4599_v5 = vadd.f32 %v4598_v24, %v4522_v60 }
0x251e   : > { %v6436_v35 = vpop.f32.mrf.mxu0  ;;  %v6459_v19 = vpop.f32.mrf.mxu1 }
0x251f   : > { %6479 = vmatpush3.msra.mxu0 %v4693_v18 }
0x2520   : > { %v4603_v27 = vpop.f32.mrf.mxu0  ;;  %6480 = vmatprep.subr.mxu0 %v8017_v11 }
0x2521   : > { %6481 = vmatpush3.msra.mxu0 %v4688_v57  ;;  %v4604_v14 = vadd.f32 %v4603_v27, %v4522_v60  ;;  %v3544_v57 = vsel %vm211_vm0, %v7891_v20, 0.0 }
0x2522   : > { %v6439_v33 = vpop.f32.mrf.mxu0  ;;  %6482 = vmatprep.subr.mxu0 %v8017_v11 }
0x2523   : > { %6483 = vmatpush3.msra.mxu0 %v4683_v61  ;;  %v5526_v61 = vld [vmem:[%s6881_s25 + $0x40] sm:$0xff]  ;;  %v5524_v33 = vld [vmem:[%s6881_s25 + $0x30] sm:$0xff] }
0x2524   : > { %v4608_v38 = vpop.f32.mrf.mxu0  ;;  %6487 = vmatprep.subr.mxu0 %v8017_v11 }
0x2525   : > { %v4609_v59 = vadd.f32 %v4608_v38, %v4522_v60  ;;  %v5523_v60 = vld [vmem:[%s6881_s25 + $0x28] sm:$0xff]  ;;  %v5517_v38 = vld [vmem:[%s6654_s18 + $0x1a0] sm:$0xff] }
0x2526   : > { %v6442_v7 = vpop.f32.mrf.mxu0 }
0x2527   : > { %6470 = vmatpush3.xpose.msk.msra.mxu1 %vm211_vm0, %v4609_v59  ;;  %v5516_v59 = vld [vmem:[%s6654_s18 + $0x198] sm:$0xff]  ;;  %v5515_v7 = vld [vmem:[%s6654_s18 + $0x190] sm:$0xff] }
0x2528   : > { %6471 = vmatprep.subr.mxu1 %v8017_v11 }
0x252b   : > { %6472 = vmatpush3.xpose.msk.msra.mxu1 %vm211_vm0, %v4604_v14  ;;  %v5514_v14 = vld [vmem:[%s6654_s18 + $0x188] sm:$0xff] }
0x252c   : > { %6473 = vmatprep.subr.mxu1 %v8017_v11 }
0x252f   : > { %6474 = vmatpush3.xpose.msk.msra.mxu1 %vm211_vm0, %v4599_v5 }
0x2530   : > { %6498 = vmatprep.subr.mxu1 %v8017_v11 }
0x2532   : > { %6476 = vmatmul.mubr.msk.f32.vlgmr.msra.gmra.mxu1 %vm211_vm0, %v4700_v45 }
0x2533   : > { %6506 = vmatprep.mubr.msk.f32.mxu1 %vm6600_vm1, %v8017_v11  ;;  %6499 = vmatpush3.msra.mxu1 %v5526_v61 }
0x2534   : > { %6500 = vmatprep.subr.mxu1 %v8017_v11 }
0x2535   : > { %6501 = vmatpush3.msra.mxu1 %v5525_v17 }
0x2536   : > { %6502 = vmatprep.subr.mxu1 %v8017_v11 }
0x2537   : > { %6503 = vmatpush3.msra.mxu1 %v5524_v33  ;;  %v5228_v33 = vrot.slane %v7828_v15, %v8088_v40 }
0x2538   : > { %6504 = vmatprep.subr.mxu1 %v8017_v11 }
0x2539   : > { %6505 = vmatpush3.msra.mxu1 %v5523_v60 }
0x25d9   : > { %v4784_v54 = vpop.f32.mrf.mxu0 }
0x25db   : > { %v6468_v47 = vpop.f32.mrf.mxu0 }
0x25f2   : > { %v4866_v22 = vpop.f32.mrf.mxu1 }
0x25f3   : > { %v4867_v0 = vadd.f32 %v4866_v22, %v4784_v54 }
0x25f4   : > { %v6477_v42 = vpop.f32.mrf.mxu1 }
0x25f5   : > { %v4870_v43 = vmul.f32 0.17677669, %v4867_v0 }
0x25f7   : > { %v4871_v41 = vsel %vm691_vm3, %v4870_v43, -inf }
0x25f8   : > { %4872 = vmax.xlane.f32.xlu0 %v4871_v41 }
0x2681   : > { %v4873_v51 = vpop.xlane.xlu0 %4872 }
0x2682   : > { %v4874_v30 = vsub.f32 %v4870_v43, %v4873_v51  ;;  %v5049_v43 = vrot.slane %v7828_v15, %v6929_v28 }
0x2684   : > { %v4875_v39 = vmul.f32 1.442695, %v4874_v30  ;;  %v5054_v30 = vrot.slane %v7828_v15, %v6932_v29 }
0x2686   : > { %6577 = vpow2.f32 %v4875_v39 }
0x2693   : > { %v6578_v21 = vpop.eup %6577 }
0x2694   : > { %v4877_v4 = vsel %vm691_vm3, %v6578_v21, 0.0 }
0x2695   : > { %4878 = vadd.xlane.f32.xlu1 %v4877_v4  ;;  %v1888_v4 = vrot.slane %v7877_v34, %v8088_v40 }
0x271e   : > { %v4879_v32 = vpop.xlane.xlu1 %4878 }
0x271f   : > { %6579 = vrcp.f32 %v4879_v32 }
0x272c   : > { %v6580_v1 = vpop.eup %6579 }
0x272d   : > { %v4881_v52 = vmul.f32 %v6580_v1, %v6578_v21  ;;  %v6590_v1 = vld [vmem:[%s6654_s18 + $0x1c8] sm:$0xff] }
0x272e   : > { %v1893_v28 = vrot.slane %v6590_v1, %v8083_v36 }
0x272f   : > { %6485 = vmatmul.mubr.msk.f32.vlgmr.msra.gmra.mxu0 %vm691_vm3, %v4881_v52 }
0x2730   : > { %6488 = vmatpush3.msra.mxu0 %v5509_v2  ;;  %6495 = vmatprep.mubr.msk.f32.mxu0 %vm6600_vm1, %v8017_v11 }
0x2731   : > { %6489 = vmatprep.subr.mxu0 %v8017_v11 }
0x2732   : > { %6490 = vmatpush3.msra.mxu0 %v5508_v56  ;;  %v5512_v56 = vld [vmem:[%s6654_s18 + $0x178] sm:$0xff] }
0x2733   : > { %6491 = vmatprep.subr.mxu0 %v8017_v11 }
0x2734   : > { %6492 = vmatpush3.msra.mxu0 %v5507_v9  ;;  %v5511_v9 = vld [vmem:[%s6654_s18 + $0x170] sm:$0xff] }
0x2735   : > { %6493 = vmatprep.subr.mxu0 %v8017_v11 }
0x2736   : > { %6494 = vmatpush3.msra.mxu0 %v5506_v10  ;;  %v5510_v10 = vld [vmem:[%s6654_s18 + $0x168] sm:$0xff] }
0x2737   : > { %6509 = vmatprep.subr.mxu0 %v8017_v11 }
0x27ef   : > { %v4951_v58 = vpop.f32.mrf.mxu0 }
0x27f0   : > { %6496 = vmatmul.mubr.msk.f32.vlgmr.msra.gmra.mxu0 %vm211_vm0, %v4951_v58  ;;  %v5545_v58 = vld [vmem:[%s6881_s25 + $0x48] ss:$0 sm:$0xff] }
0x27f1   : > { %v6486_v31 = vpop.f32.mrf.mxu0  ;;  %6525 = vmatprep.mubr.msk.f32.mxu0 %vm6600_vm1, %v8017_v11  ;;  %6510 = vmatpush3.msra.mxu0 %v5517_v38  ;;  %v5233_v38 = vrot.slane %v7831_v50, %v8083_v36 }
0x27f2   : > { %6511 = vmatprep.subr.mxu0 %v8017_v11 }
0x27f3   : > { %6512 = vmatpush3.msra.mxu0 %v5516_v59 }
0x27f4   : > { %6513 = vmatprep.subr.mxu0 %v8017_v11 }
0x27f5   : > { %6514 = vmatpush3.msra.mxu0 %v5515_v7 }
0x27f6   : > { %6515 = vmatprep.subr.mxu0 %v8017_v11 }
0x27f7   : > { %6516 = vmatpush3.msra.mxu0 %v5514_v14 }
0x27f8   : > { %6517 = vmatprep.subr.mxu0 %v8017_v11 }
0x27f9   : > { %6518 = vmatpush3.msra.mxu0 %v5513_v62 }
0x27fa   : > { %6519 = vmatprep.subr.mxu0 %v8017_v11 }
0x27fb   : > { %6520 = vmatpush3.msra.mxu0 %v5512_v56 }
0x27fc   : > { %6521 = vmatprep.subr.mxu0 %v8017_v11 }
0x27fd   : > { %6522 = vmatpush3.msra.mxu0 %v5511_v9 }
0x27fe   : > { %6523 = vmatprep.subr.mxu0 %v8017_v11 }
0x27ff   : > { %6524 = vmatpush3.msra.mxu0 %v5510_v10 }
0x28b0   : > { %v5028_v13 = vpop.f32.mrf.mxu0 }
0x28b1   : > { %v5029_v48 = vadd.f32 %v5028_v13, %v4958_v23 }
0x28b2   : > { %v6497_v44 = vpop.f32.mrf.mxu0 }
0x28b3   : > { %v5032_v25 = vadd.f32 %v5029_v48, %v7787_v46 }
0x28b5   : > { %v5033_v8 = vsel %vm211_vm0, %v5032_v25, 0.0 }
0x28b6   : > { %5034 = vadd.xlane.f32.xlu0 %v5033_v8 }
0x28ba   : > { %1873 = vadd.xlane.f32.xlu0 %v1872_v6 }
0x293f   : > { %v5035_v53 = vpop.xlane.xlu0 %5034 }
0x2940   : > { %v5036_v24 = vmul.f32 0.03125, %v5035_v53 }
0x2942   : > { %v5037_v16 = vsub.f32 %v5032_v25, %v5036_v24 }
0x2943   : > { %v1874_v37 = vpop.xlane.xlu0 %1873 }
0x2944   : > { %v1875_v18 = vmul.f32 0.03125, %v1874_v37  ;;  %v5038_v35 = vmul.f32 %v5037_v16, %v5037_v16 }
0x2946   : > { %v1876_v46 = vsub.f32 %v1871_v49, %v1875_v18  ;;  %v5039_v19 = vsel %vm211_vm0, %v5038_v35, 0.0 }
0x2947   : > { %5040 = vadd.xlane.f32.xlu1 %v5039_v19 }
0x2948   : > { %v1877_v27 = vmul.f32 %v1876_v46, %v1876_v46 }
0x294a   : > { %v1878_v55 = vsel %vm211_vm0, %v1877_v27, 0.0 }
0x294b   : > { %3545 = vadd.xlane.f32.xlu1 %v3544_v57 }
0x294f   : > { %1879 = vadd.xlane.f32.xlu1 %v1878_v55 }
0x29d0   : > { %v5041_v5 = vpop.xlane.xlu1 %5040 }
0x29d1   : > { %v5042_v45 = vmul.f32 0.03125, %v5041_v5 }
0x29d3   : > { %v5043_v54 = vadd.f32 1e-05, %v5042_v45 }
0x29d4   : > { %v3546_v47 = vpop.xlane.xlu1 %3545 }
0x29d5   : > { %6581 = vrsqrt.f32 %v5043_v54  ;;  %v3547_v13 = vmul.f32 0.03125, %v3546_v47 }
0x29d7   : > { %v3548_v44 = vsub.f32 %v7891_v20, %v3547_v13 }
0x29d8   : > { %v1880_v22 = vpop.xlane.xlu1 %1879 }
0x29d9   : > { %v1881_v0 = vmul.f32 0.03125, %v1880_v22  ;;  %v3549_v6 = vmul.f32 %v3548_v44, %v3548_v44 }
0x29db   : > { %v1882_v42 = vadd.f32 1e-05, %v1881_v0  ;;  %v3550_v53 = vsel %vm211_vm0, %v3549_v6, 0.0 }
0x29dd   : > { %6583 = vrsqrt.f32 %v1882_v42 }
0x29e2   : > { %v6582_v41 = vpop.eup %6581 }
0x29e3   : > { %v5045_v51 = vmul.f32 %v6582_v41, %v5037_v16 }
0x29e5   : > { %v5050_v39 = vmul.f32 %v5049_v43, %v5045_v51 }
0x29e7   : > { %v5055_v21 = vadd.f32 %v5054_v30, %v5050_v39 }
0x29e9   : > { %6507 = vmatmul.mubr.msk.f32.vlgmr.msra.gmra.mxu1 %vm211_vm0, %v5055_v21 }
0x29ea   : > { %v6584_v32 = vpop.eup %6583 }
0x29eb   : > { %v1884_v52 = vmul.f32 %v6584_v32, %v1876_v46 }
0x29ed   : > { %v1889_v2 = vmul.f32 %v1888_v4, %v1884_v52 }
0x29ef   : > { %v1894_v29 = vadd.f32 %v1893_v28, %v1889_v2 }
0x29f1   : > { %1897 = vst.msk [vmem:[%s7927_s28] sm:$0xff] %vm211_vm0, %v1894_v29 }
0x2aa9   : > { %v5129_v31 = vpop.f32.mrf.mxu1 }
0x2aaa   : > { %v5130_v34 = vadd.f32 %v5545_v58, %v5129_v31 }
0x2aab   : > { %v6508_v12 = vpop.f32.mrf.mxu1 }
0x2aac   : > { %v5133_v23 = vmax.f32 %v5130_v34, 0.0 }
0x2aae   : > { %6526 = vmatmul.mubr.msk.f32.vlgmr.msra.gmra.mxu0 %vm960_vm4, %v5133_v23 }
0x2b6e   : > { %v5207_v48 = vpop.f32.mrf.mxu0 }
0x2b6f   : > { %v5208_v25 = vadd.f32 %v5207_v48, %v5137_v3 }
0x2b70   : > { %v6527_v8 = vpop.f32.mrf.mxu0 }
0x2b71   : > { %v5211_v49 = vadd.f32 %v5208_v25, %v5055_v21 }
0x2b73   : > { %v5212_v11 = vsel %vm211_vm0, %v5211_v49, 0.0 }
0x2b74   : > { %5213 = vadd.xlane.f32.xlu0 %v5212_v11 }
0x2b78   : > { %3551 = vadd.xlane.f32.xlu0 %v3550_v53 }
0x2bfd   : > { %v5214_v24 = vpop.xlane.xlu0 %5213 }
0x2bfe   : > { %v5215_v63 = vmul.f32 0.03125, %v5214_v24 }
0x2c00   : > { %v5216_v16 = vsub.f32 %v5211_v49, %v5215_v63 }
0x2c01   : > { %v3552_v37 = vpop.xlane.xlu0 %3551 }
0x2c02   : > { %v3553_v18 = vmul.f32 0.03125, %v3552_v37  ;;  %v5217_v26 = vmul.f32 %v5216_v16, %v5216_v16 }
0x2c04   : > { %v3554_v35 = vadd.f32 1e-05, %v3553_v18  ;;  %v5218_v46 = vsel %vm211_vm0, %v5217_v26, 0.0 }
0x2c05   : > { %5219 = vadd.xlane.f32.xlu1 %v5218_v46 }
0x2c06   : > { %6585 = vrsqrt.f32 %v3554_v35 }
0x2c13   : > { %v6586_v19 = vpop.eup %6585 }
0x2c14   : > { %v3556_v20 = vmul.f32 %v6586_v19, %v3548_v44 }
0x2c16   : > { %v3561_v57 = vmul.f32 %v3556_v20, %v1888_v4 }
0x2c18   : > { %v3566_v27 = vadd.f32 %v3561_v57, %v1893_v28 }
0x2c1a   : > { %3569 = vst.msk [vmem:[%s7927_s28 + $0x8] sm:$0xff] %vm211_vm0, %v3566_v27 }
0x2c8e   : > { %v5220_v55 = vpop.xlane.xlu1 %5219 }
0x2c8f   : > { %v5221_v61 = vmul.f32 0.03125, %v5220_v55 }
0x2c91   : > { %v5222_v17 = vadd.f32 1e-05, %v5221_v61 }
0x2c93   : > { %6587 = vrsqrt.f32 %v5222_v17 }
0x2ca0   : > { %v6588_v60 = vpop.eup %6587 }
0x2ca1   : > { %v5224_v59 = vmul.f32 %v6588_v60, %v5216_v16 }
0x2ca3   : > { %v5229_v7 = vmul.f32 %v5228_v33, %v5224_v59 }
0x2ca5   : > { %v5234_v14 = vadd.f32 %v5233_v38, %v5229_v7 }
0x2ca7   : > { %5237 = vst.msk [vmem:[%s7927_s28 + $0x10] sm:$0xff] %vm211_vm0, %v5234_v14 }
0x2ca8 PF: > { %s13_s12 = sadd.s32 1, %s6597_s12  }
0x2ca9   : > { %p10_p4 = scmp.ge.s32.totalorder %s13_s12, 4  }
0x2cab   :  { %12 = sbr.rel (!%p10_p4) target bundleno = 1 (0x1), region = 71 }

</bundles_post_ra>
